<compile_context>
chip_gen: v7x
topology: tpu7x:2x2x1
jax: 0.10.0
libtpu: 0.0.40
codegen_flags: <defaults>
</compile_context>

<pallas_src>
import jax
import jax.numpy as jnp
from jax import lax
from jax.experimental import pallas as pl
from jax.experimental.pallas import tpu as pltpu

DIM = 64
LEAKY_SLOPE = 0.01          # nn.LeakyReLU() default negative_slope

# ---- fixed geometry for the 32x32x3 input this module implies (4*4*4*DIM linear) --
H_IN, C_IN = 32, 3
C1, G1 = 16, 8              # layer-1 input: channels padded 3->16, width packed by 8
C2, G2 = DIM, 4             # layer-2 input (= conv1 out channels), width packed by 4
C3, G3 = 2 * DIM, 2         # layer-3 input (= conv2 out channels), width packed by 2
CO1, CO2, CO3 = DIM, 2 * DIM, 4 * DIM
HO1, HO2, HO3 = 16, 8, 4    # conv output heights
NR = 4                      # output columns per stream (= Wo / n_streams, all layers)
BW = 5                      # packed width  (= ceil((W + 2) / G), same for all layers)
HP1, HP2, HP3 = 34, 18, 10  # padded heights of the packed activations


# -----------------------------------------------------------------------------------
# Fused kernel: whole discriminator for one image per grid step.
# -----------------------------------------------------------------------------------
def _fused_disc_kernel(sig_ref, x_ref, w1_ref, b1_ref, w2_ref, b2_ref,
                       w3_ref, b3_ref, wl_ref, bl_ref, out_ref, a2_ref, a3_ref):
    # Zero the activation scratches: untouched rows / slots are the zero padding
    # (pad=1) seen by the next conv layer.
    a2_ref[...] = jnp.zeros_like(a2_ref)
    a3_ref[...] = jnp.zeros_like(a3_ref)

    inv_s1 = sig_ref[0]
    inv_s2 = sig_ref[1]
    inv_s3 = sig_ref[2]
    inv_sl = sig_ref[3]

    def conv_row(ho, read_row, w_ref, b_ref, inv_s, c, g, co):
        """One output row `ho` of a k=4, s=2, p=1 conv over a G-width-packed input.

        Returns g//2 "streams"; stream k holds output columns wo = k, k+S, ... as an
        (NR, co) f32 array, already scaled by 1/sigma, biased and LeakyReLU'd.
        All operand pieces are contiguous slices (weights laid out (kh, kw, c)).
        """
        s = g // 2
        rows = [read_row(2 * ho + kh) for kh in range(4)]       # 4 x (BW, g*c) bf16
        outs = []
        for k in range(s):
            acc = jnp.zeros((NR, co), jnp.float32)
            for kh in range(4):
                row = rows[kh]
                w0 = kh * 4 * c
                if k < s - 1:
                    # taps kw = 0..3 are the contiguous lane window of group k
                    acc = acc + jnp.dot(row[0:NR, 2 * k * c:(2 * k + 4) * c],
                                        w_ref[w0:w0 + 4 * c, :],
                                        preferred_element_type=jnp.float32)
                else:
                    # last stream wraps into the next packed column: two pieces
                    acc = acc + jnp.dot(row[0:NR, (g - 2) * c:g * c],
                                        w_ref[w0:w0 + 2 * c, :],
                                        preferred_element_type=jnp.float32)
                    acc = acc + jnp.dot(row[1:NR + 1, 0:2 * c],
                                        w_ref[w0 + 2 * c:w0 + 4 * c, :],
                                        preferred_element_type=jnp.float32)
            y = acc * inv_s + b_ref[...]
            outs.append(jnp.where(y >= 0.0, y, LEAKY_SLOPE * y))
        return outs

    def write_packed(dst_ref, ho, streams, co):
        # Store the streams of output row `ho` into the next layer's width-packed,
        # zero-padded (pad=1 top/left) activation buffer.  Contiguous slab stores.
        s = len(streams)
        for k, y in enumerate(streams):
            yb = y.astype(jnp.bfloat16)
            if k < s - 1:
                dst_ref[ho + 1, 0:NR, (k + 1) * co:(k + 2) * co] = yb
            else:
                dst_ref[ho + 1, 1:NR + 1, 0:co] = yb

    # conv1: 32x32x16 (packed G=8)  ->  16x16x64, kept in a2 (packed G=4)
    def l1_body(ho, carry):
        streams = conv_row(ho, lambda h: x_ref[0, h], w1_ref, b1_ref, inv_s1,
                           C1, G1, CO1)
        write_packed(a2_ref, ho, streams, CO1)
        return carry

    lax.fori_loop(0, HO1, l1_body, 0)

    # conv2: 16x16x64  ->  8x8x128, kept in a3 (packed G=2)
    def l2_body(ho, carry):
        streams = conv_row(ho, lambda h: a2_ref[h], w2_ref, b2_ref, inv_s2,
                           C2, G2, CO2)
        write_packed(a3_ref, ho, streams, CO2)
        return carry

    lax.fori_loop(0, HO2, l2_body, 0)

    # conv3: 8x8x128 -> 4x4x256, folded directly into the SNLinear reduction.
    def l3_body(ho, acc):
        (y,) = conv_row(ho, lambda h: a3_ref[h], w3_ref, b3_ref, inv_s3,
                        C3, G3, CO3)                             # (NR, 256) f32
        part = y * wl_ref[ho]                                    # (NR, 256) f32
        contrib = jnp.sum(jnp.sum(part, axis=-1, keepdims=True),
                          axis=-2, keepdims=True)                # (1, 1)
        return acc + contrib

    total = lax.fori_loop(0, HO3, l3_body, jnp.zeros((1, 1), jnp.float32))

    out_ref[0] = total * inv_sl + bl_ref[0]


# -----------------------------------------------------------------------------------
# Plain-JAX glue: spectral-norm sigma, one-time layout prep, input packing.
# -----------------------------------------------------------------------------------
def _l2normalize(v, eps=1e-12):
    return v / (jnp.linalg.norm(v) + eps)


def _sigma_from_wt(w_t, u):
    """One SN-GAN power iteration. w_t is W^T (in_features, out); u: (out,)."""
    v = _l2normalize(w_t @ u)
    wv = w_t.T @ v                       # = W @ v
    u_new = _l2normalize(wv)
    return jnp.dot(u_new, wv)


def prepare_params(params):
    """One-time layout prep: im2col weight matrices with rows ordered (kh, kw, c)
    (f32 for sigma + bf16 copies for the MXU), reshaped biases, and the linear
    weight re-ordered to the kernel's (ho, wo, c) production order."""
    def conv_wt(w, c_pad):
        co, ci = w.shape[0], w.shape[1]
        wt = jnp.transpose(w, (2, 3, 1, 0))                      # (kh, kw, ci, co)
        if c_pad > ci:
            wt = jnp.pad(wt, ((0, 0), (0, 0), (0, c_pad - ci), (0, 0)))
        return wt.reshape(16 * c_pad, co)

    w1t = conv_wt(params["w1"], C1)                              # (256, 64)
    w2t = conv_wt(params["w2"], C2)                              # (1024, 128)
    w3t = conv_wt(params["w3"], C3)                              # (2048, 256)
    # wl indexed c*16 + ho*4 + wo  ->  (ho, wo, c)
    wl_r = jnp.transpose(params["wl"].reshape(CO3, HO3, NR), (1, 2, 0))
    return dict(
        w1t=w1t, w2t=w2t, w3t=w3t,
        w1b=w1t.astype(jnp.bfloat16), w2b=w2t.astype(jnp.bfloat16),
        w3b=w3t.astype(jnp.bfloat16),
        b1=params["b1"].reshape(1, CO1).astype(jnp.float32),
        b2=params["b2"].reshape(1, CO2).astype(jnp.float32),
        b3=params["b3"].reshape(1, CO3).astype(jnp.float32),
        wl=wl_r.astype(jnp.float32),
        bl=params["bl"].reshape(1, 1, 1).astype(jnp.float32),
        u1=params["u1"], u2=params["u2"], u3=params["u3"], ul=params["ul"],
    )


def _pack_input(x):
    """NCHW (N,3,32,32) -> width-packed NHWC bf16 (N, 34, 5, 8*16); spatial pad=1
    (top/left), channels zero-padded 3 -> 16, extra right padding to fill groups."""
    n = x.shape[0]
    xh = jnp.transpose(x, (0, 2, 3, 1))
    xh = jnp.pad(xh, ((0, 0), (1, 1), (1, G1 * BW - H_IN - 1), (0, C1 - C_IN)))
    return xh.reshape(n, HP1, BW, G1 * C1).astype(jnp.bfloat16)


def good_sn_discriminator(x, prep):
    """Forward pass.  `prep` = prepare_params(raw_params)."""
    assert x.shape[1:] == (C_IN, H_IN, H_IN), x.shape
    n = x.shape[0]

    inv_sig = jnp.stack([
        1.0 / _sigma_from_wt(prep["w1t"], prep["u1"]),
        1.0 / _sigma_from_wt(prep["w2t"], prep["u2"]),
        1.0 / _sigma_from_wt(prep["w3t"], prep["u3"]),
        1.0 / _sigma_from_wt(prep["wl"].reshape(-1, 1), prep["ul"]),
    ]).astype(jnp.float32)
    xp = _pack_input(x)

    out = pl.pallas_call(
        _fused_disc_kernel,
        out_shape=jax.ShapeDtypeStruct((n, 1, 1), jnp.float32),
        grid=(n,),
        in_specs=[
            pl.BlockSpec(memory_space=pltpu.MemorySpace.SMEM),               # 1/sigma
            pl.BlockSpec((1, HP1, BW, G1 * C1), lambda i: (i, 0, 0, 0)),     # packed x
            pl.BlockSpec((16 * C1, CO1), lambda i: (0, 0)),                  # w1 bf16
            pl.BlockSpec((1, CO1), lambda i: (0, 0)),                        # b1
            pl.BlockSpec((16 * C2, CO2), lambda i: (0, 0)),                  # w2 bf16
            pl.BlockSpec((1, CO2), lambda i: (0, 0)),                        # b2
            pl.BlockSpec((16 * C3, CO3), lambda i: (0, 0)),                  # w3 bf16
            pl.BlockSpec((1, CO3), lambda i: (0, 0)),                        # b3
            pl.BlockSpec((HO3, NR, CO3), lambda i: (0, 0, 0)),               # linear w
            pl.BlockSpec((1, 1, 1), lambda i: (0, 0, 0)),                    # linear b
        ],
        out_specs=pl.BlockSpec((1, 1, 1), lambda i: (i, 0, 0)),
        scratch_shapes=[
            pltpu.VMEM((HP2, BW, G2 * C2), jnp.bfloat16),    # conv1 out, packed G=4
            pltpu.VMEM((HP3, BW, G3 * C3), jnp.bfloat16),    # conv2 out, packed G=2
        ],
        compiler_params=pltpu.CompilerParams(
            dimension_semantics=("parallel",)),
    )(inv_sig, xp, prep["w1b"], prep["b1"], prep["w2b"], prep["b2"],
      prep["w3b"], prep["b3"], prep["wl"], prep["bl"])
    return out.reshape(n, 1)


# -----------------------------------------------------------------------------------
# Reference (pure JAX, same bf16 weight/activation quantization as the kernel).
# -----------------------------------------------------------------------------------
def reference_forward(x, params):
    def sigma_of(w_mat, u):                      # w_mat: (out, in)
        v = _l2normalize(w_mat.T @ u)
        wv = w_mat @ v
        return jnp.dot(_l2normalize(wv), wv)

    def conv_block(h, w, b, u):
        sig = sigma_of(w.reshape(w.shape[0], -1), u)
        y = lax.conv_general_dilated(
            h.astype(jnp.bfloat16), w.astype(jnp.bfloat16),
            window_strides=(2, 2), padding=((1, 1), (1, 1)),
            dimension_numbers=("NCHW", "OIHW", "NCHW"),
            preferred_element_type=jnp.float32)
        y = y * (1.0 / sig) + b.reshape(1, -1, 1, 1)
        return jnp.where(y >= 0.0, y, LEAKY_SLOPE * y)

    h = conv_block(x, params["w1"], params["b1"], params["u1"])
    h = conv_block(h, params["w2"], params["b2"], params["u2"])
    h = conv_block(h, params["w3"], params["b3"], params["u3"])
    flat = h.reshape(h.shape[0], -1)                             # NCHW flatten
    sig_l = sigma_of(params["wl"], params["ul"])
    return flat @ params["wl"].T * (1.0 / sig_l) + params["bl"]


def init_params(key):
    ks = jax.random.split(key, 12)

    def conv_init(kw, kb, ku, out_c, in_c):
        fan_in = in_c * 4 * 4
        w = jax.random.normal(kw, (out_c, in_c, 4, 4), jnp.float32) / jnp.sqrt(fan_in)
        b = 0.01 * jax.random.normal(kb, (out_c,), jnp.float32)
        u = jax.random.normal(ku, (out_c,), jnp.float32)
        return w, b, u

    w1, b1, u1 = conv_init(ks[0], ks[1], ks[2], DIM, 3)
    w2, b2, u2 = conv_init(ks[3], ks[4], ks[5], 2 * DIM, DIM)
    w3, b3, u3 = conv_init(ks[6], ks[7], ks[8], 4 * DIM, 2 * DIM)
    fan_in = 4 * 4 * 4 * DIM
    wl = jax.random.normal(ks[9], (1, fan_in), jnp.float32) / jnp.sqrt(fan_in)
    bl = 0.01 * jax.random.normal(ks[10], (1,), jnp.float32)
    ul = jax.random.normal(ks[11], (1,), jnp.float32)
    return dict(w1=w1, b1=b1, u1=u1, w2=w2, b2=b2, u2=u2,
                w3=w3, b3=b3, u3=u3, wl=wl, bl=bl, ul=ul)


if __name__ == "__main__":
    key = jax.random.PRNGKey(0)
    k_x, k_p = jax.random.split(key)
    x = jax.random.normal(k_x, (2, 3, 32, 32), jnp.float32)
    params = init_params(k_p)

    prep = prepare_params(params)
    out = jax.jit(good_sn_discriminator)(x, prep)
    out = jax.block_until_ready(out)
    assert out.shape == (2, 1), out.shape

    ref = reference_forward(x, params)
    assert bool(jnp.allclose(out, ref, rtol=5e-2, atol=2e-3)), (out, ref)
    print("KERNEL_OK")
</pallas_src>

<mosaic_0001>
module attributes {stable_mosaic.version = 11 : i64} {
  func.func @_fused_disc_kernel(%arg0: i32, %arg1: memref<4xf32, #tpu.memory_space<smem>>, %arg2: memref<1x34x5x128xbf16, #tpu.memory_space<vmem>>, %arg3: memref<256x64xbf16, #tpu.memory_space<vmem>>, %arg4: memref<1x64xf32, #tpu.memory_space<vmem>>, %arg5: memref<1024x128xbf16, #tpu.memory_space<vmem>>, %arg6: memref<1x128xf32, #tpu.memory_space<vmem>>, %arg7: memref<2048x256xbf16, #tpu.memory_space<vmem>>, %arg8: memref<1x256xf32, #tpu.memory_space<vmem>>, %arg9: memref<4x4x256xf32, #tpu.memory_space<vmem>>, %arg10: memref<1x1x1xf32, #tpu.memory_space<vmem>>, %arg11: memref<1x1x1xf32, #tpu.memory_space<vmem>>, %arg12: memref<18x5x256xbf16, #tpu.memory_space<vmem>>, %arg13: memref<10x5x256xbf16, #tpu.memory_space<vmem>>) attributes {dimension_semantics = [#tpu.dimension_semantics<parallel>], iteration_bounds = array<i64: 2>, scalar_prefetch = 0 : i64, scratch_operands = 2 : i64, tpu.core_type = #tpu.core_type<tc>, window_params = [{transform_indices = @transform_0, window_bounds = array<i64: 4>}, {transform_indices = @transform_1, window_bounds = array<i64: 1, 34, 5, 128>}, {pipeline_mode = #tpu.pipeline_mode<synchronous>, transform_indices = @transform_2, window_bounds = array<i64: 256, 64>}, {pipeline_mode = #tpu.pipeline_mode<synchronous>, transform_indices = @transform_3, window_bounds = array<i64: 1, 64>}, {pipeline_mode = #tpu.pipeline_mode<synchronous>, transform_indices = @transform_4, window_bounds = array<i64: 1024, 128>}, {pipeline_mode = #tpu.pipeline_mode<synchronous>, transform_indices = @transform_5, window_bounds = array<i64: 1, 128>}, {pipeline_mode = #tpu.pipeline_mode<synchronous>, transform_indices = @transform_6, window_bounds = array<i64: 2048, 256>}, {pipeline_mode = #tpu.pipeline_mode<synchronous>, transform_indices = @transform_7, window_bounds = array<i64: 1, 256>}, {pipeline_mode = #tpu.pipeline_mode<synchronous>, transform_indices = @transform_8, window_bounds = array<i64: 4, 4, 256>}, {pipeline_mode = #tpu.pipeline_mode<synchronous>, transform_indices = @transform_9, window_bounds = array<i64: 1, 1, 1>}, {transform_indices = @transform_10, window_bounds = array<i64: 1, 1, 1>}]} {
    %cst = arith.constant 0.000000e+00 : bf16
    %0 = vector.broadcast %cst : bf16 to vector<18x5x256xbf16>
    %c0 = arith.constant 0 : index
    %c0_0 = arith.constant 0 : index
    %c0_1 = arith.constant 0 : index
    %1 = vector.load %arg12[%c0, %c0_0, %c0_1] : memref<18x5x256xbf16, #tpu.memory_space<vmem>>, vector<18x5x256xbf16>
    tpu.vector_store %arg12[%c0, %c0_0, %c0_1], %0 {strides = array<i32>} : memref<18x5x256xbf16, #tpu.memory_space<vmem>>, vector<18x5x256xbf16>,
    %cst_2 = arith.constant 0.000000e+00 : bf16
    %2 = vector.broadcast %cst_2 : bf16 to vector<10x5x256xbf16>
    %c0_3 = arith.constant 0 : index
    %c0_4 = arith.constant 0 : index
    %c0_5 = arith.constant 0 : index
    %3 = vector.load %arg13[%c0_3, %c0_4, %c0_5] : memref<10x5x256xbf16, #tpu.memory_space<vmem>>, vector<10x5x256xbf16>
    tpu.vector_store %arg13[%c0_3, %c0_4, %c0_5], %2 {strides = array<i32>} : memref<10x5x256xbf16, #tpu.memory_space<vmem>>, vector<10x5x256xbf16>,
    %c0_6 = arith.constant 0 : index
    %4 = memref.load %arg1[%c0_6] : memref<4xf32, #tpu.memory_space<smem>>
    %c1 = arith.constant 1 : index
    %5 = memref.load %arg1[%c1] : memref<4xf32, #tpu.memory_space<smem>>
    %c2 = arith.constant 2 : index
    %6 = memref.load %arg1[%c2] : memref<4xf32, #tpu.memory_space<smem>>
    %c3 = arith.constant 3 : index
    %7 = memref.load %arg1[%c3] : memref<4xf32, #tpu.memory_space<smem>>
    %c0_i32 = arith.constant 0 : i32
    %c16_i32 = arith.constant 16 : i32
    %8 = arith.addi %c0_i32, %c16_i32 : i32
    %c1_i32 = arith.constant 1 : i32
    scf.for %arg14 = %c0_i32 to %8 step %c1_i32  : i32 {
      %c2_i32 = arith.constant 2 : i32
      %21 = arith.muli %c2_i32, %arg14 : i32
      %c0_i32_21 = arith.constant 0 : i32
      %22 = arith.addi %21, %c0_i32_21 : i32
      %c0_22 = arith.constant 0 : index
      %23 = arith.index_cast %22 : i32 to index
      %c0_23 = arith.constant 0 : index
      %c0_24 = arith.constant 0 : index
      %24 = vector.load %arg2[%c0_22, %23, %c0_23, %c0_24] : memref<1x34x5x128xbf16, #tpu.memory_space<vmem>>, vector<1x1x5x128xbf16>
      %25 = vector.shape_cast %24 : vector<1x1x5x128xbf16> to vector<5x128xbf16>
      %c2_i32_25 = arith.constant 2 : i32
      %26 = arith.muli %c2_i32_25, %arg14 : i32
      %c1_i32_26 = arith.constant 1 : i32
      %27 = arith.addi %26, %c1_i32_26 : i32
      %c0_27 = arith.constant 0 : index
      %28 = arith.index_cast %27 : i32 to index
      %c0_28 = arith.constant 0 : index
      %c0_29 = arith.constant 0 : index
      %29 = vector.load %arg2[%c0_27, %28, %c0_28, %c0_29] : memref<1x34x5x128xbf16, #tpu.memory_space<vmem>>, vector<1x1x5x128xbf16>
      %30 = vector.shape_cast %29 : vector<1x1x5x128xbf16> to vector<5x128xbf16>
      %c2_i32_30 = arith.constant 2 : i32
      %31 = arith.muli %c2_i32_30, %arg14 : i32
      %c2_i32_31 = arith.constant 2 : i32
      %32 = arith.addi %31, %c2_i32_31 : i32
      %c0_32 = arith.constant 0 : index
      %33 = arith.index_cast %32 : i32 to index
      %c0_33 = arith.constant 0 : index
      %c0_34 = arith.constant 0 : index
      %34 = vector.load %arg2[%c0_32, %33, %c0_33, %c0_34] : memref<1x34x5x128xbf16, #tpu.memory_space<vmem>>, vector<1x1x5x128xbf16>
      %35 = vector.shape_cast %34 : vector<1x1x5x128xbf16> to vector<5x128xbf16>
      %c2_i32_35 = arith.constant 2 : i32
      %36 = arith.muli %c2_i32_35, %arg14 : i32
      %c3_i32 = arith.constant 3 : i32
      %37 = arith.addi %36, %c3_i32 : i32
      %c0_36 = arith.constant 0 : index
      %38 = arith.index_cast %37 : i32 to index
      %c0_37 = arith.constant 0 : index
      %c0_38 = arith.constant 0 : index
      %39 = vector.load %arg2[%c0_36, %38, %c0_37, %c0_38] : memref<1x34x5x128xbf16, #tpu.memory_space<vmem>>, vector<1x1x5x128xbf16>
      %40 = vector.shape_cast %39 : vector<1x1x5x128xbf16> to vector<5x128xbf16>
      %cst_39 = arith.constant 0.000000e+00 : f32
      %41 = vector.broadcast %cst_39 : f32 to vector<4x64xf32>
      %42 = vector.extract_strided_slice %25 {offsets = [0, 0], sizes = [4, 64], strides = [1, 1]} : vector<5x128xbf16> to vector<4x64xbf16>
      %c0_40 = arith.constant 0 : index
      %c0_41 = arith.constant 0 : index
      %43 = vector.load %arg3[%c0_40, %c0_41] : memref<256x64xbf16, #tpu.memory_space<vmem>>, vector<64x64xbf16>
      %cst_42 = arith.constant dense<0.000000e+00> : vector<4x64xf32>
      %44 = tpu.matmul %42, %43, %cst_42 {dimension_numbers = #tpu.dot_dimension_numbers<[1], [0], [0], [1], [0, 0, 1, 1], [], []>} : vector<4x64xbf16>, vector<64x64xbf16>, vector<4x64xf32> -> vector<4x64xf32>
      %45 = arith.addf %41, %44 : vector<4x64xf32>
      %46 = vector.extract_strided_slice %30 {offsets = [0, 0], sizes = [4, 64], strides = [1, 1]} : vector<5x128xbf16> to vector<4x64xbf16>
      %c64 = arith.constant 64 : index
      %c0_43 = arith.constant 0 : index
      %47 = vector.load %arg3[%c64, %c0_43] : memref<256x64xbf16, #tpu.memory_space<vmem>>, vector<64x64xbf16>
      %cst_44 = arith.constant dense<0.000000e+00> : vector<4x64xf32>
      %48 = tpu.matmul %46, %47, %cst_44 {dimension_numbers = #tpu.dot_dimension_numbers<[1], [0], [0], [1], [0, 0, 1, 1], [], []>} : vector<4x64xbf16>, vector<64x64xbf16>, vector<4x64xf32> -> vector<4x64xf32>
      %49 = arith.addf %45, %48 : vector<4x64xf32>
      %50 = vector.extract_strided_slice %35 {offsets = [0, 0], sizes = [4, 64], strides = [1, 1]} : vector<5x128xbf16> to vector<4x64xbf16>
      %c128 = arith.constant 128 : index
      %c0_45 = arith.constant 0 : index
      %51 = vector.load %arg3[%c128, %c0_45] : memref<256x64xbf16, #tpu.memory_space<vmem>>, vector<64x64xbf16>
      %cst_46 = arith.constant dense<0.000000e+00> : vector<4x64xf32>
      %52 = tpu.matmul %50, %51, %cst_46 {dimension_numbers = #tpu.dot_dimension_numbers<[1], [0], [0], [1], [0, 0, 1, 1], [], []>} : vector<4x64xbf16>, vector<64x64xbf16>, vector<4x64xf32> -> vector<4x64xf32>
      %53 = arith.addf %49, %52 : vector<4x64xf32>
      %54 = vector.extract_strided_slice %40 {offsets = [0, 0], sizes = [4, 64], strides = [1, 1]} : vector<5x128xbf16> to vector<4x64xbf16>
      %c192 = arith.constant 192 : index
      %c0_47 = arith.constant 0 : index
      %55 = vector.load %arg3[%c192, %c0_47] : memref<256x64xbf16, #tpu.memory_space<vmem>>, vector<64x64xbf16>
      %cst_48 = arith.constant dense<0.000000e+00> : vector<4x64xf32>
      %56 = tpu.matmul %54, %55, %cst_48 {dimension_numbers = #tpu.dot_dimension_numbers<[1], [0], [0], [1], [0, 0, 1, 1], [], []>} : vector<4x64xbf16>, vector<64x64xbf16>, vector<4x64xf32> -> vector<4x64xf32>
      %57 = arith.addf %53, %56 : vector<4x64xf32>
      %58 = vector.broadcast %4 : f32 to vector<4x64xf32>
      %59 = arith.mulf %57, %58 : vector<4x64xf32>
      %c0_49 = arith.constant 0 : index
      %c0_50 = arith.constant 0 : index
      %60 = vector.load %arg4[%c0_49, %c0_50] : memref<1x64xf32, #tpu.memory_space<vmem>>, vector<1x64xf32>
      %61 = vector.broadcast %60 : vector<1x64xf32> to vector<4x64xf32>
      %62 = arith.addf %59, %61 : vector<4x64xf32>
      %cst_51 = arith.constant 0.000000e+00 : f32
      %63 = vector.broadcast %cst_51 : f32 to vector<4x64xf32>
      %64 = arith.cmpf oge, %62, %63 : vector<4x64xf32>
      %cst_52 = arith.constant 0.00999999977 : f32
      %65 = vector.broadcast %cst_52 : f32 to vector<4x64xf32>
      %66 = arith.mulf %65, %62 : vector<4x64xf32>
      %67 = arith.select %64, %62, %66 : vector<4x64xi1>, vector<4x64xf32>
      %cst_53 = arith.constant 0.000000e+00 : f32
      %68 = vector.broadcast %cst_53 : f32 to vector<4x64xf32>
      %69 = vector.extract_strided_slice %25 {offsets = [0, 32], sizes = [4, 64], strides = [1, 1]} : vector<5x128xbf16> to vector<4x64xbf16>
      %c0_54 = arith.constant 0 : index
      %c0_55 = arith.constant 0 : index
      %70 = vector.load %arg3[%c0_54, %c0_55] : memref<256x64xbf16, #tpu.memory_space<vmem>>, vector<64x64xbf16>
      %cst_56 = arith.constant dense<0.000000e+00> : vector<4x64xf32>
      %71 = tpu.matmul %69, %70, %cst_56 {dimension_numbers = #tpu.dot_dimension_numbers<[1], [0], [0], [1], [0, 0, 1, 1], [], []>} : vector<4x64xbf16>, vector<64x64xbf16>, vector<4x64xf32> -> vector<4x64xf32>
      %72 = arith.addf %68, %71 : vector<4x64xf32>
      %73 = vector.extract_strided_slice %30 {offsets = [0, 32], sizes = [4, 64], strides = [1, 1]} : vector<5x128xbf16> to vector<4x64xbf16>
      %c64_57 = arith.constant 64 : index
      %c0_58 = arith.constant 0 : index
      %74 = vector.load %arg3[%c64_57, %c0_58] : memref<256x64xbf16, #tpu.memory_space<vmem>>, vector<64x64xbf16>
      %cst_59 = arith.constant dense<0.000000e+00> : vector<4x64xf32>
      %75 = tpu.matmul %73, %74, %cst_59 {dimension_numbers = #tpu.dot_dimension_numbers<[1], [0], [0], [1], [0, 0, 1, 1], [], []>} : vector<4x64xbf16>, vector<64x64xbf16>, vector<4x64xf32> -> vector<4x64xf32>
      %76 = arith.addf %72, %75 : vector<4x64xf32>
      %77 = vector.extract_strided_slice %35 {offsets = [0, 32], sizes = [4, 64], strides = [1, 1]} : vector<5x128xbf16> to vector<4x64xbf16>
      %c128_60 = arith.constant 128 : index
      %c0_61 = arith.constant 0 : index
      %78 = vector.load %arg3[%c128_60, %c0_61] : memref<256x64xbf16, #tpu.memory_space<vmem>>, vector<64x64xbf16>
      %cst_62 = arith.constant dense<0.000000e+00> : vector<4x64xf32>
      %79 = tpu.matmul %77, %78, %cst_62 {dimension_numbers = #tpu.dot_dimension_numbers<[1], [0], [0], [1], [0, 0, 1, 1], [], []>} : vector<4x64xbf16>, vector<64x64xbf16>, vector<4x64xf32> -> vector<4x64xf32>
      %80 = arith.addf %76, %79 : vector<4x64xf32>
      %81 = vector.extract_strided_slice %40 {offsets = [0, 32], sizes = [4, 64], strides = [1, 1]} : vector<5x128xbf16> to vector<4x64xbf16>
      %c192_63 = arith.constant 192 : index
      %c0_64 = arith.constant 0 : index
      %82 = vector.load %arg3[%c192_63, %c0_64] : memref<256x64xbf16, #tpu.memory_space<vmem>>, vector<64x64xbf16>
      %cst_65 = arith.constant dense<0.000000e+00> : vector<4x64xf32>
      %83 = tpu.matmul %81, %82, %cst_65 {dimension_numbers = #tpu.dot_dimension_numbers<[1], [0], [0], [1], [0, 0, 1, 1], [], []>} : vector<4x64xbf16>, vector<64x64xbf16>, vector<4x64xf32> -> vector<4x64xf32>
      %84 = arith.addf %80, %83 : vector<4x64xf32>
      %85 = vector.broadcast %4 : f32 to vector<4x64xf32>
      %86 = arith.mulf %84, %85 : vector<4x64xf32>
      %c0_66 = arith.constant 0 : index
      %c0_67 = arith.constant 0 : index
      %87 = vector.load %arg4[%c0_66, %c0_67] : memref<1x64xf32, #tpu.memory_space<vmem>>, vector<1x64xf32>
      %88 = vector.broadcast %87 : vector<1x64xf32> to vector<4x64xf32>
      %89 = arith.addf %86, %88 : vector<4x64xf32>
      %cst_68 = arith.constant 0.000000e+00 : f32
      %90 = vector.broadcast %cst_68 : f32 to vector<4x64xf32>
      %91 = arith.cmpf oge, %89, %90 : vector<4x64xf32>
      %cst_69 = arith.constant 0.00999999977 : f32
      %92 = vector.broadcast %cst_69 : f32 to vector<4x64xf32>
      %93 = arith.mulf %92, %89 : vector<4x64xf32>
      %94 = arith.select %91, %89, %93 : vector<4x64xi1>, vector<4x64xf32>
      %cst_70 = arith.constant 0.000000e+00 : f32
      %95 = vector.broadcast %cst_70 : f32 to vector<4x64xf32>
      %96 = vector.extract_strided_slice %25 {offsets = [0, 64], sizes = [4, 64], strides = [1, 1]} : vector<5x128xbf16> to vector<4x64xbf16>
      %c0_71 = arith.constant 0 : index
      %c0_72 = arith.constant 0 : index
      %97 = vector.load %arg3[%c0_71, %c0_72] : memref<256x64xbf16, #tpu.memory_space<vmem>>, vector<64x64xbf16>
      %cst_73 = arith.constant dense<0.000000e+00> : vector<4x64xf32>
      %98 = tpu.matmul %96, %97, %cst_73 {dimension_numbers = #tpu.dot_dimension_numbers<[1], [0], [0], [1], [0, 0, 1, 1], [], []>} : vector<4x64xbf16>, vector<64x64xbf16>, vector<4x64xf32> -> vector<4x64xf32>
      %99 = arith.addf %95, %98 : vector<4x64xf32>
      %100 = vector.extract_strided_slice %30 {offsets = [0, 64], sizes = [4, 64], strides = [1, 1]} : vector<5x128xbf16> to vector<4x64xbf16>
      %c64_74 = arith.constant 64 : index
      %c0_75 = arith.constant 0 : index
      %101 = vector.load %arg3[%c64_74, %c0_75] : memref<256x64xbf16, #tpu.memory_space<vmem>>, vector<64x64xbf16>
      %cst_76 = arith.constant dense<0.000000e+00> : vector<4x64xf32>
      %102 = tpu.matmul %100, %101, %cst_76 {dimension_numbers = #tpu.dot_dimension_numbers<[1], [0], [0], [1], [0, 0, 1, 1], [], []>} : vector<4x64xbf16>, vector<64x64xbf16>, vector<4x64xf32> -> vector<4x64xf32>
      %103 = arith.addf %99, %102 : vector<4x64xf32>
      %104 = vector.extract_strided_slice %35 {offsets = [0, 64], sizes = [4, 64], strides = [1, 1]} : vector<5x128xbf16> to vector<4x64xbf16>
      %c128_77 = arith.constant 128 : index
      %c0_78 = arith.constant 0 : index
      %105 = vector.load %arg3[%c128_77, %c0_78] : memref<256x64xbf16, #tpu.memory_space<vmem>>, vector<64x64xbf16>
      %cst_79 = arith.constant dense<0.000000e+00> : vector<4x64xf32>
      %106 = tpu.matmul %104, %105, %cst_79 {dimension_numbers = #tpu.dot_dimension_numbers<[1], [0], [0], [1], [0, 0, 1, 1], [], []>} : vector<4x64xbf16>, vector<64x64xbf16>, vector<4x64xf32> -> vector<4x64xf32>
      %107 = arith.addf %103, %106 : vector<4x64xf32>
      %108 = vector.extract_strided_slice %40 {offsets = [0, 64], sizes = [4, 64], strides = [1, 1]} : vector<5x128xbf16> to vector<4x64xbf16>
      %c192_80 = arith.constant 192 : index
      %c0_81 = arith.constant 0 : index
      %109 = vector.load %arg3[%c192_80, %c0_81] : memref<256x64xbf16, #tpu.memory_space<vmem>>, vector<64x64xbf16>
      %cst_82 = arith.constant dense<0.000000e+00> : vector<4x64xf32>
      %110 = tpu.matmul %108, %109, %cst_82 {dimension_numbers = #tpu.dot_dimension_numbers<[1], [0], [0], [1], [0, 0, 1, 1], [], []>} : vector<4x64xbf16>, vector<64x64xbf16>, vector<4x64xf32> -> vector<4x64xf32>
      %111 = arith.addf %107, %110 : vector<4x64xf32>
      %112 = vector.broadcast %4 : f32 to vector<4x64xf32>
      %113 = arith.mulf %111, %112 : vector<4x64xf32>
      %c0_83 = arith.constant 0 : index
      %c0_84 = arith.constant 0 : index
      %114 = vector.load %arg4[%c0_83, %c0_84] : memref<1x64xf32, #tpu.memory_space<vmem>>, vector<1x64xf32>
      %115 = vector.broadcast %114 : vector<1x64xf32> to vector<4x64xf32>
      %116 = arith.addf %113, %115 : vector<4x64xf32>
      %cst_85 = arith.constant 0.000000e+00 : f32
      %117 = vector.broadcast %cst_85 : f32 to vector<4x64xf32>
      %118 = arith.cmpf oge, %116, %117 : vector<4x64xf32>
      %cst_86 = arith.constant 0.00999999977 : f32
      %119 = vector.broadcast %cst_86 : f32 to vector<4x64xf32>
      %120 = arith.mulf %119, %116 : vector<4x64xf32>
      %121 = arith.select %118, %116, %120 : vector<4x64xi1>, vector<4x64xf32>
      %cst_87 = arith.constant 0.000000e+00 : f32
      %122 = vector.broadcast %cst_87 : f32 to vector<4x64xf32>
      %123 = vector.extract_strided_slice %25 {offsets = [0, 96], sizes = [4, 32], strides = [1, 1]} : vector<5x128xbf16> to vector<4x32xbf16>
      %c0_88 = arith.constant 0 : index
      %c0_89 = arith.constant 0 : index
      %124 = vector.load %arg3[%c0_88, %c0_89] : memref<256x64xbf16, #tpu.memory_space<vmem>>, vector<32x64xbf16>
      %cst_90 = arith.constant dense<0.000000e+00> : vector<4x64xf32>
      %125 = tpu.matmul %123, %124, %cst_90 {dimension_numbers = #tpu.dot_dimension_numbers<[1], [0], [0], [1], [0, 0, 1, 1], [], []>} : vector<4x32xbf16>, vector<32x64xbf16>, vector<4x64xf32> -> vector<4x64xf32>
      %126 = arith.addf %122, %125 : vector<4x64xf32>
      %127 = vector.extract_strided_slice %25 {offsets = [1, 0], sizes = [4, 32], strides = [1, 1]} : vector<5x128xbf16> to vector<4x32xbf16>
      %c32 = arith.constant 32 : index
      %c0_91 = arith.constant 0 : index
      %128 = vector.load %arg3[%c32, %c0_91] : memref<256x64xbf16, #tpu.memory_space<vmem>>, vector<32x64xbf16>
      %cst_92 = arith.constant dense<0.000000e+00> : vector<4x64xf32>
      %129 = tpu.matmul %127, %128, %cst_92 {dimension_numbers = #tpu.dot_dimension_numbers<[1], [0], [0], [1], [0, 0, 1, 1], [], []>} : vector<4x32xbf16>, vector<32x64xbf16>, vector<4x64xf32> -> vector<4x64xf32>
      %130 = arith.addf %126, %129 : vector<4x64xf32>
      %131 = vector.extract_strided_slice %30 {offsets = [0, 96], sizes = [4, 32], strides = [1, 1]} : vector<5x128xbf16> to vector<4x32xbf16>
      %c64_93 = arith.constant 64 : index
      %c0_94 = arith.constant 0 : index
      %132 = vector.load %arg3[%c64_93, %c0_94] : memref<256x64xbf16, #tpu.memory_space<vmem>>, vector<32x64xbf16>
      %cst_95 = arith.constant dense<0.000000e+00> : vector<4x64xf32>
      %133 = tpu.matmul %131, %132, %cst_95 {dimension_numbers = #tpu.dot_dimension_numbers<[1], [0], [0], [1], [0, 0, 1, 1], [], []>} : vector<4x32xbf16>, vector<32x64xbf16>, vector<4x64xf32> -> vector<4x64xf32>
      %134 = arith.addf %130, %133 : vector<4x64xf32>
      %135 = vector.extract_strided_slice %30 {offsets = [1, 0], sizes = [4, 32], strides = [1, 1]} : vector<5x128xbf16> to vector<4x32xbf16>
      %c96 = arith.constant 96 : index
      %c0_96 = arith.constant 0 : index
      %136 = vector.load %arg3[%c96, %c0_96] : memref<256x64xbf16, #tpu.memory_space<vmem>>, vector<32x64xbf16>
      %cst_97 = arith.constant dense<0.000000e+00> : vector<4x64xf32>
      %137 = tpu.matmul %135, %136, %cst_97 {dimension_numbers = #tpu.dot_dimension_numbers<[1], [0], [0], [1], [0, 0, 1, 1], [], []>} : vector<4x32xbf16>, vector<32x64xbf16>, vector<4x64xf32> -> vector<4x64xf32>
      %138 = arith.addf %134, %137 : vector<4x64xf32>
      %139 = vector.extract_strided_slice %35 {offsets = [0, 96], sizes = [4, 32], strides = [1, 1]} : vector<5x128xbf16> to vector<4x32xbf16>
      %c128_98 = arith.constant 128 : index
      %c0_99 = arith.constant 0 : index
      %140 = vector.load %arg3[%c128_98, %c0_99] : memref<256x64xbf16, #tpu.memory_space<vmem>>, vector<32x64xbf16>
      %cst_100 = arith.constant dense<0.000000e+00> : vector<4x64xf32>
      %141 = tpu.matmul %139, %140, %cst_100 {dimension_numbers = #tpu.dot_dimension_numbers<[1], [0], [0], [1], [0, 0, 1, 1], [], []>} : vector<4x32xbf16>, vector<32x64xbf16>, vector<4x64xf32> -> vector<4x64xf32>
      %142 = arith.addf %138, %141 : vector<4x64xf32>
      %143 = vector.extract_strided_slice %35 {offsets = [1, 0], sizes = [4, 32], strides = [1, 1]} : vector<5x128xbf16> to vector<4x32xbf16>
      %c160 = arith.constant 160 : index
      %c0_101 = arith.constant 0 : index
      %144 = vector.load %arg3[%c160, %c0_101] : memref<256x64xbf16, #tpu.memory_space<vmem>>, vector<32x64xbf16>
      %cst_102 = arith.constant dense<0.000000e+00> : vector<4x64xf32>
      %145 = tpu.matmul %143, %144, %cst_102 {dimension_numbers = #tpu.dot_dimension_numbers<[1], [0], [0], [1], [0, 0, 1, 1], [], []>} : vector<4x32xbf16>, vector<32x64xbf16>, vector<4x64xf32> -> vector<4x64xf32>
      %146 = arith.addf %142, %145 : vector<4x64xf32>
      %147 = vector.extract_strided_slice %40 {offsets = [0, 96], sizes = [4, 32], strides = [1, 1]} : vector<5x128xbf16> to vector<4x32xbf16>
      %c192_103 = arith.constant 192 : index
      %c0_104 = arith.constant 0 : index
      %148 = vector.load %arg3[%c192_103, %c0_104] : memref<256x64xbf16, #tpu.memory_space<vmem>>, vector<32x64xbf16>
      %cst_105 = arith.constant dense<0.000000e+00> : vector<4x64xf32>
      %149 = tpu.matmul %147, %148, %cst_105 {dimension_numbers = #tpu.dot_dimension_numbers<[1], [0], [0], [1], [0, 0, 1, 1], [], []>} : vector<4x32xbf16>, vector<32x64xbf16>, vector<4x64xf32> -> vector<4x64xf32>
      %150 = arith.addf %146, %149 : vector<4x64xf32>
      %151 = vector.extract_strided_slice %40 {offsets = [1, 0], sizes = [4, 32], strides = [1, 1]} : vector<5x128xbf16> to vector<4x32xbf16>
      %c224 = arith.constant 224 : index
      %c0_106 = arith.constant 0 : index
      %152 = vector.load %arg3[%c224, %c0_106] : memref<256x64xbf16, #tpu.memory_space<vmem>>, vector<32x64xbf16>
      %cst_107 = arith.constant dense<0.000000e+00> : vector<4x64xf32>
      %153 = tpu.matmul %151, %152, %cst_107 {dimension_numbers = #tpu.dot_dimension_numbers<[1], [0], [0], [1], [0, 0, 1, 1], [], []>} : vector<4x32xbf16>, vector<32x64xbf16>, vector<4x64xf32> -> vector<4x64xf32>
      %154 = arith.addf %150, %153 : vector<4x64xf32>
      %155 = vector.broadcast %4 : f32 to vector<4x64xf32>
      %156 = arith.mulf %154, %155 : vector<4x64xf32>
      %c0_108 = arith.constant 0 : index
      %c0_109 = arith.constant 0 : index
      %157 = vector.load %arg4[%c0_108, %c0_109] : memref<1x64xf32, #tpu.memory_space<vmem>>, vector<1x64xf32>
      %158 = vector.broadcast %157 : vector<1x64xf32> to vector<4x64xf32>
      %159 = arith.addf %156, %158 : vector<4x64xf32>
      %cst_110 = arith.constant 0.000000e+00 : f32
      %160 = vector.broadcast %cst_110 : f32 to vector<4x64xf32>
      %161 = arith.cmpf oge, %159, %160 : vector<4x64xf32>
      %cst_111 = arith.constant 0.00999999977 : f32
      %162 = vector.broadcast %cst_111 : f32 to vector<4x64xf32>
      %163 = arith.mulf %162, %159 : vector<4x64xf32>
      %164 = arith.select %161, %159, %163 : vector<4x64xi1>, vector<4x64xf32>
      %165 = arith.truncf %67 : vector<4x64xf32> to vector<4x64xbf16>
      %c1_i32_112 = arith.constant 1 : i32
      %166 = arith.addi %arg14, %c1_i32_112 : i32
      %167 = arith.index_cast %166 : i32 to index
      %c0_113 = arith.constant 0 : index
      %c64_114 = arith.constant 64 : index
      %168 = vector.load %arg12[%167, %c0_113, %c64_114] : memref<18x5x256xbf16, #tpu.memory_space<vmem>>, vector<1x4x64xbf16>
      %169 = vector.shape_cast %168 : vector<1x4x64xbf16> to vector<4x64xbf16>
      %170 = vector.shape_cast %165 : vector<4x64xbf16> to vector<1x4x64xbf16>
      tpu.vector_store %arg12[%167, %c0_113, %c64_114], %170 {strides = array<i32>} : memref<18x5x256xbf16, #tpu.memory_space<vmem>>, vector<1x4x64xbf16>,
      %171 = arith.truncf %94 : vector<4x64xf32> to vector<4x64xbf16>
      %c1_i32_115 = arith.constant 1 : i32
      %172 = arith.addi %arg14, %c1_i32_115 : i32
      %173 = arith.index_cast %172 : i32 to index
      %c0_116 = arith.constant 0 : index
      %c128_117 = arith.constant 128 : index
      %174 = vector.load %arg12[%173, %c0_116, %c128_117] : memref<18x5x256xbf16, #tpu.memory_space<vmem>>, vector<1x4x64xbf16>
      %175 = vector.shape_cast %174 : vector<1x4x64xbf16> to vector<4x64xbf16>
      %176 = vector.shape_cast %171 : vector<4x64xbf16> to vector<1x4x64xbf16>
      tpu.vector_store %arg12[%173, %c0_116, %c128_117], %176 {strides = array<i32>} : memref<18x5x256xbf16, #tpu.memory_space<vmem>>, vector<1x4x64xbf16>,
      %177 = arith.truncf %121 : vector<4x64xf32> to vector<4x64xbf16>
      %c1_i32_118 = arith.constant 1 : i32
      %178 = arith.addi %arg14, %c1_i32_118 : i32
      %179 = arith.index_cast %178 : i32 to index
      %c0_119 = arith.constant 0 : index
      %c192_120 = arith.constant 192 : index
      %180 = vector.load %arg12[%179, %c0_119, %c192_120] : memref<18x5x256xbf16, #tpu.memory_space<vmem>>, vector<1x4x64xbf16>
      %181 = vector.shape_cast %180 : vector<1x4x64xbf16> to vector<4x64xbf16>
      %182 = vector.shape_cast %177 : vector<4x64xbf16> to vector<1x4x64xbf16>
      tpu.vector_store %arg12[%179, %c0_119, %c192_120], %182 {strides = array<i32>} : memref<18x5x256xbf16, #tpu.memory_space<vmem>>, vector<1x4x64xbf16>,
      %183 = arith.truncf %164 : vector<4x64xf32> to vector<4x64xbf16>
      %c1_i32_121 = arith.constant 1 : i32
      %184 = arith.addi %arg14, %c1_i32_121 : i32
      %185 = arith.index_cast %184 : i32 to index
      %c1_122 = arith.constant 1 : index
      %c0_123 = arith.constant 0 : index
      %186 = vector.load %arg12[%185, %c1_122, %c0_123] : memref<18x5x256xbf16, #tpu.memory_space<vmem>>, vector<1x4x64xbf16>
      %187 = vector.shape_cast %186 : vector<1x4x64xbf16> to vector<4x64xbf16>
      %188 = vector.shape_cast %183 : vector<4x64xbf16> to vector<1x4x64xbf16>
      tpu.vector_store %arg12[%185, %c1_122, %c0_123], %188 {strides = array<i32>} : memref<18x5x256xbf16, #tpu.memory_space<vmem>>, vector<1x4x64xbf16>,
    }
    %c16_i32_7 = arith.constant 16 : i32
    %c0_i32_8 = arith.constant 0 : i32
    %c8_i32 = arith.constant 8 : i32
    %9 = arith.addi %c0_i32_8, %c8_i32 : i32
    %c1_i32_9 = arith.constant 1 : i32
    scf.for %arg14 = %c0_i32_8 to %9 step %c1_i32_9  : i32 {
      %c2_i32 = arith.constant 2 : i32
      %21 = arith.muli %c2_i32, %arg14 : i32
      %c0_i32_21 = arith.constant 0 : i32
      %22 = arith.addi %21, %c0_i32_21 : i32
      %23 = arith.index_cast %22 : i32 to index
      %c0_22 = arith.constant 0 : index
      %c0_23 = arith.constant 0 : index
      %24 = vector.load %arg12[%23, %c0_22, %c0_23] : memref<18x5x256xbf16, #tpu.memory_space<vmem>>, vector<1x5x256xbf16>
      %25 = vector.shape_cast %24 : vector<1x5x256xbf16> to vector<5x256xbf16>
      %c2_i32_24 = arith.constant 2 : i32
      %26 = arith.muli %c2_i32_24, %arg14 : i32
      %c1_i32_25 = arith.constant 1 : i32
      %27 = arith.addi %26, %c1_i32_25 : i32
      %28 = arith.index_cast %27 : i32 to index
      %c0_26 = arith.constant 0 : index
      %c0_27 = arith.constant 0 : index
      %29 = vector.load %arg12[%28, %c0_26, %c0_27] : memref<18x5x256xbf16, #tpu.memory_space<vmem>>, vector<1x5x256xbf16>
      %30 = vector.shape_cast %29 : vector<1x5x256xbf16> to vector<5x256xbf16>
      %c2_i32_28 = arith.constant 2 : i32
      %31 = arith.muli %c2_i32_28, %arg14 : i32
      %c2_i32_29 = arith.constant 2 : i32
      %32 = arith.addi %31, %c2_i32_29 : i32
      %33 = arith.index_cast %32 : i32 to index
      %c0_30 = arith.constant 0 : index
      %c0_31 = arith.constant 0 : index
      %34 = vector.load %arg12[%33, %c0_30, %c0_31] : memref<18x5x256xbf16, #tpu.memory_space<vmem>>, vector<1x5x256xbf16>
      %35 = vector.shape_cast %34 : vector<1x5x256xbf16> to vector<5x256xbf16>
      %c2_i32_32 = arith.constant 2 : i32
      %36 = arith.muli %c2_i32_32, %arg14 : i32
      %c3_i32 = arith.constant 3 : i32
      %37 = arith.addi %36, %c3_i32 : i32
      %38 = arith.index_cast %37 : i32 to index
      %c0_33 = arith.constant 0 : index
      %c0_34 = arith.constant 0 : index
      %39 = vector.load %arg12[%38, %c0_33, %c0_34] : memref<18x5x256xbf16, #tpu.memory_space<vmem>>, vector<1x5x256xbf16>
      %40 = vector.shape_cast %39 : vector<1x5x256xbf16> to vector<5x256xbf16>
      %cst_35 = arith.constant 0.000000e+00 : f32
      %41 = vector.broadcast %cst_35 : f32 to vector<4x128xf32>
      %42 = vector.extract_strided_slice %25 {offsets = [0, 0], sizes = [4, 256], strides = [1, 1]} : vector<5x256xbf16> to vector<4x256xbf16>
      %c0_36 = arith.constant 0 : index
      %c0_37 = arith.constant 0 : index
      %43 = vector.load %arg5[%c0_36, %c0_37] : memref<1024x128xbf16, #tpu.memory_space<vmem>>, vector<256x128xbf16>
      %cst_38 = arith.constant dense<0.000000e+00> : vector<4x128xf32>
      %44 = tpu.matmul %42, %43, %cst_38 {dimension_numbers = #tpu.dot_dimension_numbers<[1], [0], [0], [1], [0, 0, 1, 1], [], []>} : vector<4x256xbf16>, vector<256x128xbf16>, vector<4x128xf32> -> vector<4x128xf32>
      %45 = arith.addf %41, %44 : vector<4x128xf32>
      %46 = vector.extract_strided_slice %30 {offsets = [0, 0], sizes = [4, 256], strides = [1, 1]} : vector<5x256xbf16> to vector<4x256xbf16>
      %c256 = arith.constant 256 : index
      %c0_39 = arith.constant 0 : index
      %47 = vector.load %arg5[%c256, %c0_39] : memref<1024x128xbf16, #tpu.memory_space<vmem>>, vector<256x128xbf16>
      %cst_40 = arith.constant dense<0.000000e+00> : vector<4x128xf32>
      %48 = tpu.matmul %46, %47, %cst_40 {dimension_numbers = #tpu.dot_dimension_numbers<[1], [0], [0], [1], [0, 0, 1, 1], [], []>} : vector<4x256xbf16>, vector<256x128xbf16>, vector<4x128xf32> -> vector<4x128xf32>
      %49 = arith.addf %45, %48 : vector<4x128xf32>
      %50 = vector.extract_strided_slice %35 {offsets = [0, 0], sizes = [4, 256], strides = [1, 1]} : vector<5x256xbf16> to vector<4x256xbf16>
      %c512 = arith.constant 512 : index
      %c0_41 = arith.constant 0 : index
      %51 = vector.load %arg5[%c512, %c0_41] : memref<1024x128xbf16, #tpu.memory_space<vmem>>, vector<256x128xbf16>
      %cst_42 = arith.constant dense<0.000000e+00> : vector<4x128xf32>
      %52 = tpu.matmul %50, %51, %cst_42 {dimension_numbers = #tpu.dot_dimension_numbers<[1], [0], [0], [1], [0, 0, 1, 1], [], []>} : vector<4x256xbf16>, vector<256x128xbf16>, vector<4x128xf32> -> vector<4x128xf32>
      %53 = arith.addf %49, %52 : vector<4x128xf32>
      %54 = vector.extract_strided_slice %40 {offsets = [0, 0], sizes = [4, 256], strides = [1, 1]} : vector<5x256xbf16> to vector<4x256xbf16>
      %c768 = arith.constant 768 : index
      %c0_43 = arith.constant 0 : index
      %55 = vector.load %arg5[%c768, %c0_43] : memref<1024x128xbf16, #tpu.memory_space<vmem>>, vector<256x128xbf16>
      %cst_44 = arith.constant dense<0.000000e+00> : vector<4x128xf32>
      %56 = tpu.matmul %54, %55, %cst_44 {dimension_numbers = #tpu.dot_dimension_numbers<[1], [0], [0], [1], [0, 0, 1, 1], [], []>} : vector<4x256xbf16>, vector<256x128xbf16>, vector<4x128xf32> -> vector<4x128xf32>
      %57 = arith.addf %53, %56 : vector<4x128xf32>
      %58 = vector.broadcast %5 : f32 to vector<4x128xf32>
      %59 = arith.mulf %57, %58 : vector<4x128xf32>
      %c0_45 = arith.constant 0 : index
      %c0_46 = arith.constant 0 : index
      %60 = vector.load %arg6[%c0_45, %c0_46] : memref<1x128xf32, #tpu.memory_space<vmem>>, vector<1x128xf32>
      %61 = vector.broadcast %60 : vector<1x128xf32> to vector<4x128xf32>
      %62 = arith.addf %59, %61 : vector<4x128xf32>
      %cst_47 = arith.constant 0.000000e+00 : f32
      %63 = vector.broadcast %cst_47 : f32 to vector<4x128xf32>
      %64 = arith.cmpf oge, %62, %63 : vector<4x128xf32>
      %cst_48 = arith.constant 0.00999999977 : f32
      %65 = vector.broadcast %cst_48 : f32 to vector<4x128xf32>
      %66 = arith.mulf %65, %62 : vector<4x128xf32>
      %67 = arith.select %64, %62, %66 : vector<4x128xi1>, vector<4x128xf32>
      %cst_49 = arith.constant 0.000000e+00 : f32
      %68 = vector.broadcast %cst_49 : f32 to vector<4x128xf32>
      %69 = vector.extract_strided_slice %25 {offsets = [0, 128], sizes = [4, 128], strides = [1, 1]} : vector<5x256xbf16> to vector<4x128xbf16>
      %c0_50 = arith.constant 0 : index
      %c0_51 = arith.constant 0 : index
      %70 = vector.load %arg5[%c0_50, %c0_51] : memref<1024x128xbf16, #tpu.memory_space<vmem>>, vector<128x128xbf16>
      %cst_52 = arith.constant dense<0.000000e+00> : vector<4x128xf32>
      %71 = tpu.matmul %69, %70, %cst_52 {dimension_numbers = #tpu.dot_dimension_numbers<[1], [0], [0], [1], [0, 0, 1, 1], [], []>} : vector<4x128xbf16>, vector<128x128xbf16>, vector<4x128xf32> -> vector<4x128xf32>
      %72 = arith.addf %68, %71 : vector<4x128xf32>
      %73 = vector.extract_strided_slice %25 {offsets = [1, 0], sizes = [4, 128], strides = [1, 1]} : vector<5x256xbf16> to vector<4x128xbf16>
      %c128 = arith.constant 128 : index
      %c0_53 = arith.constant 0 : index
      %74 = vector.load %arg5[%c128, %c0_53] : memref<1024x128xbf16, #tpu.memory_space<vmem>>, vector<128x128xbf16>
      %cst_54 = arith.constant dense<0.000000e+00> : vector<4x128xf32>
      %75 = tpu.matmul %73, %74, %cst_54 {dimension_numbers = #tpu.dot_dimension_numbers<[1], [0], [0], [1], [0, 0, 1, 1], [], []>} : vector<4x128xbf16>, vector<128x128xbf16>, vector<4x128xf32> -> vector<4x128xf32>
      %76 = arith.addf %72, %75 : vector<4x128xf32>
      %77 = vector.extract_strided_slice %30 {offsets = [0, 128], sizes = [4, 128], strides = [1, 1]} : vector<5x256xbf16> to vector<4x128xbf16>
      %c256_55 = arith.constant 256 : index
      %c0_56 = arith.constant 0 : index
      %78 = vector.load %arg5[%c256_55, %c0_56] : memref<1024x128xbf16, #tpu.memory_space<vmem>>, vector<128x128xbf16>
      %cst_57 = arith.constant dense<0.000000e+00> : vector<4x128xf32>
      %79 = tpu.matmul %77, %78, %cst_57 {dimension_numbers = #tpu.dot_dimension_numbers<[1], [0], [0], [1], [0, 0, 1, 1], [], []>} : vector<4x128xbf16>, vector<128x128xbf16>, vector<4x128xf32> -> vector<4x128xf32>
      %80 = arith.addf %76, %79 : vector<4x128xf32>
      %81 = vector.extract_strided_slice %30 {offsets = [1, 0], sizes = [4, 128], strides = [1, 1]} : vector<5x256xbf16> to vector<4x128xbf16>
      %c384 = arith.constant 384 : index
      %c0_58 = arith.constant 0 : index
      %82 = vector.load %arg5[%c384, %c0_58] : memref<1024x128xbf16, #tpu.memory_space<vmem>>, vector<128x128xbf16>
      %cst_59 = arith.constant dense<0.000000e+00> : vector<4x128xf32>
      %83 = tpu.matmul %81, %82, %cst_59 {dimension_numbers = #tpu.dot_dimension_numbers<[1], [0], [0], [1], [0, 0, 1, 1], [], []>} : vector<4x128xbf16>, vector<128x128xbf16>, vector<4x128xf32> -> vector<4x128xf32>
      %84 = arith.addf %80, %83 : vector<4x128xf32>
      %85 = vector.extract_strided_slice %35 {offsets = [0, 128], sizes = [4, 128], strides = [1, 1]} : vector<5x256xbf16> to vector<4x128xbf16>
      %c512_60 = arith.constant 512 : index
      %c0_61 = arith.constant 0 : index
      %86 = vector.load %arg5[%c512_60, %c0_61] : memref<1024x128xbf16, #tpu.memory_space<vmem>>, vector<128x128xbf16>
      %cst_62 = arith.constant dense<0.000000e+00> : vector<4x128xf32>
      %87 = tpu.matmul %85, %86, %cst_62 {dimension_numbers = #tpu.dot_dimension_numbers<[1], [0], [0], [1], [0, 0, 1, 1], [], []>} : vector<4x128xbf16>, vector<128x128xbf16>, vector<4x128xf32> -> vector<4x128xf32>
      %88 = arith.addf %84, %87 : vector<4x128xf32>
      %89 = vector.extract_strided_slice %35 {offsets = [1, 0], sizes = [4, 128], strides = [1, 1]} : vector<5x256xbf16> to vector<4x128xbf16>
      %c640 = arith.constant 640 : index
      %c0_63 = arith.constant 0 : index
      %90 = vector.load %arg5[%c640, %c0_63] : memref<1024x128xbf16, #tpu.memory_space<vmem>>, vector<128x128xbf16>
      %cst_64 = arith.constant dense<0.000000e+00> : vector<4x128xf32>
      %91 = tpu.matmul %89, %90, %cst_64 {dimension_numbers = #tpu.dot_dimension_numbers<[1], [0], [0], [1], [0, 0, 1, 1], [], []>} : vector<4x128xbf16>, vector<128x128xbf16>, vector<4x128xf32> -> vector<4x128xf32>
      %92 = arith.addf %88, %91 : vector<4x128xf32>
      %93 = vector.extract_strided_slice %40 {offsets = [0, 128], sizes = [4, 128], strides = [1, 1]} : vector<5x256xbf16> to vector<4x128xbf16>
      %c768_65 = arith.constant 768 : index
      %c0_66 = arith.constant 0 : index
      %94 = vector.load %arg5[%c768_65, %c0_66] : memref<1024x128xbf16, #tpu.memory_space<vmem>>, vector<128x128xbf16>
      %cst_67 = arith.constant dense<0.000000e+00> : vector<4x128xf32>
      %95 = tpu.matmul %93, %94, %cst_67 {dimension_numbers = #tpu.dot_dimension_numbers<[1], [0], [0], [1], [0, 0, 1, 1], [], []>} : vector<4x128xbf16>, vector<128x128xbf16>, vector<4x128xf32> -> vector<4x128xf32>
      %96 = arith.addf %92, %95 : vector<4x128xf32>
      %97 = vector.extract_strided_slice %40 {offsets = [1, 0], sizes = [4, 128], strides = [1, 1]} : vector<5x256xbf16> to vector<4x128xbf16>
      %c896 = arith.constant 896 : index
      %c0_68 = arith.constant 0 : index
      %98 = vector.load %arg5[%c896, %c0_68] : memref<1024x128xbf16, #tpu.memory_space<vmem>>, vector<128x128xbf16>
      %cst_69 = arith.constant dense<0.000000e+00> : vector<4x128xf32>
      %99 = tpu.matmul %97, %98, %cst_69 {dimension_numbers = #tpu.dot_dimension_numbers<[1], [0], [0], [1], [0, 0, 1, 1], [], []>} : vector<4x128xbf16>, vector<128x128xbf16>, vector<4x128xf32> -> vector<4x128xf32>
      %100 = arith.addf %96, %99 : vector<4x128xf32>
      %101 = vector.broadcast %5 : f32 to vector<4x128xf32>
      %102 = arith.mulf %100, %101 : vector<4x128xf32>
      %c0_70 = arith.constant 0 : index
      %c0_71 = arith.constant 0 : index
      %103 = vector.load %arg6[%c0_70, %c0_71] : memref<1x128xf32, #tpu.memory_space<vmem>>, vector<1x128xf32>
      %104 = vector.broadcast %103 : vector<1x128xf32> to vector<4x128xf32>
      %105 = arith.addf %102, %104 : vector<4x128xf32>
      %cst_72 = arith.constant 0.000000e+00 : f32
      %106 = vector.broadcast %cst_72 : f32 to vector<4x128xf32>
      %107 = arith.cmpf oge, %105, %106 : vector<4x128xf32>
      %cst_73 = arith.constant 0.00999999977 : f32
      %108 = vector.broadcast %cst_73 : f32 to vector<4x128xf32>
      %109 = arith.mulf %108, %105 : vector<4x128xf32>
      %110 = arith.select %107, %105, %109 : vector<4x128xi1>, vector<4x128xf32>
      %111 = arith.truncf %67 : vector<4x128xf32> to vector<4x128xbf16>
      %c1_i32_74 = arith.constant 1 : i32
      %112 = arith.addi %arg14, %c1_i32_74 : i32
      %113 = arith.index_cast %112 : i32 to index
      %c0_75 = arith.constant 0 : index
      %c128_76 = arith.constant 128 : index
      %114 = vector.load %arg13[%113, %c0_75, %c128_76] : memref<10x5x256xbf16, #tpu.memory_space<vmem>>, vector<1x4x128xbf16>
      %115 = vector.shape_cast %114 : vector<1x4x128xbf16> to vector<4x128xbf16>
      %116 = vector.shape_cast %111 : vector<4x128xbf16> to vector<1x4x128xbf16>
      tpu.vector_store %arg13[%113, %c0_75, %c128_76], %116 {strides = array<i32>} : memref<10x5x256xbf16, #tpu.memory_space<vmem>>, vector<1x4x128xbf16>,
      %117 = arith.truncf %110 : vector<4x128xf32> to vector<4x128xbf16>
      %c1_i32_77 = arith.constant 1 : i32
      %118 = arith.addi %arg14, %c1_i32_77 : i32
      %119 = arith.index_cast %118 : i32 to index
      %c1_78 = arith.constant 1 : index
      %c0_79 = arith.constant 0 : index
      %120 = vector.load %arg13[%119, %c1_78, %c0_79] : memref<10x5x256xbf16, #tpu.memory_space<vmem>>, vector<1x4x128xbf16>
      %121 = vector.shape_cast %120 : vector<1x4x128xbf16> to vector<4x128xbf16>
      %122 = vector.shape_cast %117 : vector<4x128xbf16> to vector<1x4x128xbf16>
      tpu.vector_store %arg13[%119, %c1_78, %c0_79], %122 {strides = array<i32>} : memref<10x5x256xbf16, #tpu.memory_space<vmem>>, vector<1x4x128xbf16>,
    }
    %c8_i32_10 = arith.constant 8 : i32
    %cst_11 = arith.constant 0.000000e+00 : f32
    %10 = vector.broadcast %cst_11 : f32 to vector<1x1xf32>
    %c0_i32_12 = arith.constant 0 : i32
    %c4_i32 = arith.constant 4 : i32
    %11 = arith.addi %c0_i32_12, %c4_i32 : i32
    %c1_i32_13 = arith.constant 1 : i32
    %12 = scf.for %arg14 = %c0_i32_12 to %11 step %c1_i32_13 iter_args(%arg15 = %10) -> (vector<1x1xf32>)  : i32 {
      %c2_i32 = arith.constant 2 : i32
      %21 = arith.muli %c2_i32, %arg14 : i32
      %c0_i32_21 = arith.constant 0 : i32
      %22 = arith.addi %21, %c0_i32_21 : i32
      %23 = arith.index_cast %22 : i32 to index
      %c0_22 = arith.constant 0 : index
      %c0_23 = arith.constant 0 : index
      %24 = vector.load %arg13[%23, %c0_22, %c0_23] : memref<10x5x256xbf16, #tpu.memory_space<vmem>>, vector<1x5x256xbf16>
      %25 = vector.shape_cast %24 : vector<1x5x256xbf16> to vector<5x256xbf16>
      %c2_i32_24 = arith.constant 2 : i32
      %26 = arith.muli %c2_i32_24, %arg14 : i32
      %c1_i32_25 = arith.constant 1 : i32
      %27 = arith.addi %26, %c1_i32_25 : i32
      %28 = arith.index_cast %27 : i32 to index
      %c0_26 = arith.constant 0 : index
      %c0_27 = arith.constant 0 : index
      %29 = vector.load %arg13[%28, %c0_26, %c0_27] : memref<10x5x256xbf16, #tpu.memory_space<vmem>>, vector<1x5x256xbf16>
      %30 = vector.shape_cast %29 : vector<1x5x256xbf16> to vector<5x256xbf16>
      %c2_i32_28 = arith.constant 2 : i32
      %31 = arith.muli %c2_i32_28, %arg14 : i32
      %c2_i32_29 = arith.constant 2 : i32
      %32 = arith.addi %31, %c2_i32_29 : i32
      %33 = arith.index_cast %32 : i32 to index
      %c0_30 = arith.constant 0 : index
      %c0_31 = arith.constant 0 : index
      %34 = vector.load %arg13[%33, %c0_30, %c0_31] : memref<10x5x256xbf16, #tpu.memory_space<vmem>>, vector<1x5x256xbf16>
      %35 = vector.shape_cast %34 : vector<1x5x256xbf16> to vector<5x256xbf16>
      %c2_i32_32 = arith.constant 2 : i32
      %36 = arith.muli %c2_i32_32, %arg14 : i32
      %c3_i32 = arith.constant 3 : i32
      %37 = arith.addi %36, %c3_i32 : i32
      %38 = arith.index_cast %37 : i32 to index
      %c0_33 = arith.constant 0 : index
      %c0_34 = arith.constant 0 : index
      %39 = vector.load %arg13[%38, %c0_33, %c0_34] : memref<10x5x256xbf16, #tpu.memory_space<vmem>>, vector<1x5x256xbf16>
      %40 = vector.shape_cast %39 : vector<1x5x256xbf16> to vector<5x256xbf16>
      %cst_35 = arith.constant 0.000000e+00 : f32
      %41 = vector.broadcast %cst_35 : f32 to vector<4x256xf32>
      %42 = vector.extract_strided_slice %25 {offsets = [0, 0], sizes = [4, 256], strides = [1, 1]} : vector<5x256xbf16> to vector<4x256xbf16>
      %c0_36 = arith.constant 0 : index
      %c0_37 = arith.constant 0 : index
      %43 = vector.load %arg7[%c0_36, %c0_37] : memref<2048x256xbf16, #tpu.memory_space<vmem>>, vector<256x256xbf16>
      %cst_38 = arith.constant dense<0.000000e+00> : vector<4x256xf32>
      %44 = tpu.matmul %42, %43, %cst_38 {dimension_numbers = #tpu.dot_dimension_numbers<[1], [0], [0], [1], [0, 0, 1, 1], [], []>} : vector<4x256xbf16>, vector<256x256xbf16>, vector<4x256xf32> -> vector<4x256xf32>
      %45 = arith.addf %41, %44 : vector<4x256xf32>
      %46 = vector.extract_strided_slice %25 {offsets = [1, 0], sizes = [4, 256], strides = [1, 1]} : vector<5x256xbf16> to vector<4x256xbf16>
      %c256 = arith.constant 256 : index
      %c0_39 = arith.constant 0 : index
      %47 = vector.load %arg7[%c256, %c0_39] : memref<2048x256xbf16, #tpu.memory_space<vmem>>, vector<256x256xbf16>
      %cst_40 = arith.constant dense<0.000000e+00> : vector<4x256xf32>
      %48 = tpu.matmul %46, %47, %cst_40 {dimension_numbers = #tpu.dot_dimension_numbers<[1], [0], [0], [1], [0, 0, 1, 1], [], []>} : vector<4x256xbf16>, vector<256x256xbf16>, vector<4x256xf32> -> vector<4x256xf32>
      %49 = arith.addf %45, %48 : vector<4x256xf32>
      %50 = vector.extract_strided_slice %30 {offsets = [0, 0], sizes = [4, 256], strides = [1, 1]} : vector<5x256xbf16> to vector<4x256xbf16>
      %c512 = arith.constant 512 : index
      %c0_41 = arith.constant 0 : index
      %51 = vector.load %arg7[%c512, %c0_41] : memref<2048x256xbf16, #tpu.memory_space<vmem>>, vector<256x256xbf16>
      %cst_42 = arith.constant dense<0.000000e+00> : vector<4x256xf32>
      %52 = tpu.matmul %50, %51, %cst_42 {dimension_numbers = #tpu.dot_dimension_numbers<[1], [0], [0], [1], [0, 0, 1, 1], [], []>} : vector<4x256xbf16>, vector<256x256xbf16>, vector<4x256xf32> -> vector<4x256xf32>
      %53 = arith.addf %49, %52 : vector<4x256xf32>
      %54 = vector.extract_strided_slice %30 {offsets = [1, 0], sizes = [4, 256], strides = [1, 1]} : vector<5x256xbf16> to vector<4x256xbf16>
      %c768 = arith.constant 768 : index
      %c0_43 = arith.constant 0 : index
      %55 = vector.load %arg7[%c768, %c0_43] : memref<2048x256xbf16, #tpu.memory_space<vmem>>, vector<256x256xbf16>
      %cst_44 = arith.constant dense<0.000000e+00> : vector<4x256xf32>
      %56 = tpu.matmul %54, %55, %cst_44 {dimension_numbers = #tpu.dot_dimension_numbers<[1], [0], [0], [1], [0, 0, 1, 1], [], []>} : vector<4x256xbf16>, vector<256x256xbf16>, vector<4x256xf32> -> vector<4x256xf32>
      %57 = arith.addf %53, %56 : vector<4x256xf32>
      %58 = vector.extract_strided_slice %35 {offsets = [0, 0], sizes = [4, 256], strides = [1, 1]} : vector<5x256xbf16> to vector<4x256xbf16>
      %c1024 = arith.constant 1024 : index
      %c0_45 = arith.constant 0 : index
      %59 = vector.load %arg7[%c1024, %c0_45] : memref<2048x256xbf16, #tpu.memory_space<vmem>>, vector<256x256xbf16>
      %cst_46 = arith.constant dense<0.000000e+00> : vector<4x256xf32>
      %60 = tpu.matmul %58, %59, %cst_46 {dimension_numbers = #tpu.dot_dimension_numbers<[1], [0], [0], [1], [0, 0, 1, 1], [], []>} : vector<4x256xbf16>, vector<256x256xbf16>, vector<4x256xf32> -> vector<4x256xf32>
      %61 = arith.addf %57, %60 : vector<4x256xf32>
      %62 = vector.extract_strided_slice %35 {offsets = [1, 0], sizes = [4, 256], strides = [1, 1]} : vector<5x256xbf16> to vector<4x256xbf16>
      %c1280 = arith.constant 1280 : index
      %c0_47 = arith.constant 0 : index
      %63 = vector.load %arg7[%c1280, %c0_47] : memref<2048x256xbf16, #tpu.memory_space<vmem>>, vector<256x256xbf16>
      %cst_48 = arith.constant dense<0.000000e+00> : vector<4x256xf32>
      %64 = tpu.matmul %62, %63, %cst_48 {dimension_numbers = #tpu.dot_dimension_numbers<[1], [0], [0], [1], [0, 0, 1, 1], [], []>} : vector<4x256xbf16>, vector<256x256xbf16>, vector<4x256xf32> -> vector<4x256xf32>
      %65 = arith.addf %61, %64 : vector<4x256xf32>
      %66 = vector.extract_strided_slice %40 {offsets = [0, 0], sizes = [4, 256], strides = [1, 1]} : vector<5x256xbf16> to vector<4x256xbf16>
      %c1536 = arith.constant 1536 : index
      %c0_49 = arith.constant 0 : index
      %67 = vector.load %arg7[%c1536, %c0_49] : memref<2048x256xbf16, #tpu.memory_space<vmem>>, vector<256x256xbf16>
      %cst_50 = arith.constant dense<0.000000e+00> : vector<4x256xf32>
      %68 = tpu.matmul %66, %67, %cst_50 {dimension_numbers = #tpu.dot_dimension_numbers<[1], [0], [0], [1], [0, 0, 1, 1], [], []>} : vector<4x256xbf16>, vector<256x256xbf16>, vector<4x256xf32> -> vector<4x256xf32>
      %69 = arith.addf %65, %68 : vector<4x256xf32>
      %70 = vector.extract_strided_slice %40 {offsets = [1, 0], sizes = [4, 256], strides = [1, 1]} : vector<5x256xbf16> to vector<4x256xbf16>
      %c1792 = arith.constant 1792 : index
      %c0_51 = arith.constant 0 : index
      %71 = vector.load %arg7[%c1792, %c0_51] : memref<2048x256xbf16, #tpu.memory_space<vmem>>, vector<256x256xbf16>
      %cst_52 = arith.constant dense<0.000000e+00> : vector<4x256xf32>
      %72 = tpu.matmul %70, %71, %cst_52 {dimension_numbers = #tpu.dot_dimension_numbers<[1], [0], [0], [1], [0, 0, 1, 1], [], []>} : vector<4x256xbf16>, vector<256x256xbf16>, vector<4x256xf32> -> vector<4x256xf32>
      %73 = arith.addf %69, %72 : vector<4x256xf32>
      %74 = vector.broadcast %6 : f32 to vector<4x256xf32>
      %75 = arith.mulf %73, %74 : vector<4x256xf32>
      %c0_53 = arith.constant 0 : index
      %c0_54 = arith.constant 0 : index
      %76 = vector.load %arg8[%c0_53, %c0_54] : memref<1x256xf32, #tpu.memory_space<vmem>>, vector<1x256xf32>
      %77 = vector.broadcast %76 : vector<1x256xf32> to vector<4x256xf32>
      %78 = arith.addf %75, %77 : vector<4x256xf32>
      %cst_55 = arith.constant 0.000000e+00 : f32
      %79 = vector.broadcast %cst_55 : f32 to vector<4x256xf32>
      %80 = arith.cmpf oge, %78, %79 : vector<4x256xf32>
      %cst_56 = arith.constant 0.00999999977 : f32
      %81 = vector.broadcast %cst_56 : f32 to vector<4x256xf32>
      %82 = arith.mulf %81, %78 : vector<4x256xf32>
      %83 = arith.select %80, %78, %82 : vector<4x256xi1>, vector<4x256xf32>
      %84 = arith.index_cast %arg14 : i32 to index
      %c0_57 = arith.constant 0 : index
      %c0_58 = arith.constant 0 : index
      %85 = vector.load %arg9[%84, %c0_57, %c0_58] : memref<4x4x256xf32, #tpu.memory_space<vmem>>, vector<1x4x256xf32>
      %86 = vector.shape_cast %85 : vector<1x4x256xf32> to vector<4x256xf32>
      %87 = arith.mulf %83, %86 : vector<4x256xf32>
      %cst_59 = arith.constant dense<0.000000e+00> : vector<4xf32>
      %88 = vector.multi_reduction <add>, %87, %cst_59 [1] : vector<4x256xf32> to vector<4xf32>
      %89 = vector.shape_cast %88 : vector<4xf32> to vector<4x1xf32>
      %cst_60 = arith.constant dense<0.000000e+00> : vector<1xf32>
      %90 = vector.multi_reduction <add>, %89, %cst_60 [0] : vector<4x1xf32> to vector<1xf32>
      %91 = vector.shape_cast %90 : vector<1xf32> to vector<1x1xf32>
      %92 = arith.addf %arg15, %91 : vector<1x1xf32>
      scf.yield %92 : vector<1x1xf32>
    }
    %c4_i32_14 = arith.constant 4 : i32
    %13 = vector.broadcast %7 : f32 to vector<1x1xf32>
    %14 = arith.mulf %12, %13 : vector<1x1xf32>
    %c0_15 = arith.constant 0 : index
    %c0_16 = arith.constant 0 : index
    %c0_17 = arith.constant 0 : index
    %15 = vector.load %arg10[%c0_15, %c0_16, %c0_17] : memref<1x1x1xf32, #tpu.memory_space<vmem>>, vector<1x1x1xf32>
    %16 = vector.shape_cast %15 : vector<1x1x1xf32> to vector<1x1xf32>
    %17 = arith.addf %14, %16 : vector<1x1xf32>
    %c0_18 = arith.constant 0 : index
    %c0_19 = arith.constant 0 : index
    %c0_20 = arith.constant 0 : index
    %18 = vector.load %arg11[%c0_18, %c0_19, %c0_20] : memref<1x1x1xf32, #tpu.memory_space<vmem>>, vector<1x1x1xf32>
    %19 = vector.shape_cast %18 : vector<1x1x1xf32> to vector<1x1xf32>
    %20 = vector.shape_cast %17 : vector<1x1xf32> to vector<1x1x1xf32>
    tpu.vector_store %arg11[%c0_18, %c0_19, %c0_20], %20 {strides = array<i32>} : memref<1x1x1xf32, #tpu.memory_space<vmem>>, vector<1x1x1xf32>,
    return
  }
  func.func @transform_0(%arg0: i32) -> i32 {
    %c0_i32 = arith.constant 0 : i32
    %c0_i32_0 = arith.constant 0 : i32
    return %c0_i32 : i32
  }
  func.func @transform_1(%arg0: i32) -> (i32, i32, i32, i32) {
    %c0_i32 = arith.constant 0 : i32
    %c0_i32_0 = arith.constant 0 : i32
    %c0_i32_1 = arith.constant 0 : i32
    %c0_i32_2 = arith.constant 0 : i32
    return %arg0, %c0_i32, %c0_i32_0, %c0_i32_1 : i32, i32, i32, i32
  }
  func.func @transform_2(%arg0: i32) -> (i32, i32) {
    %c0_i32 = arith.constant 0 : i32
    %c0_i32_0 = arith.constant 0 : i32
    %c0_i32_1 = arith.constant 0 : i32
    return %c0_i32, %c0_i32_0 : i32, i32
  }
  func.func @transform_3(%arg0: i32) -> (i32, i32) {
    %c0_i32 = arith.constant 0 : i32
    %c0_i32_0 = arith.constant 0 : i32
    %c0_i32_1 = arith.constant 0 : i32
    return %c0_i32, %c0_i32_0 : i32, i32
  }
  func.func @transform_4(%arg0: i32) -> (i32, i32) {
    %c0_i32 = arith.constant 0 : i32
    %c0_i32_0 = arith.constant 0 : i32
    %c0_i32_1 = arith.constant 0 : i32
    return %c0_i32, %c0_i32_0 : i32, i32
  }
  func.func @transform_5(%arg0: i32) -> (i32, i32) {
    %c0_i32 = arith.constant 0 : i32
    %c0_i32_0 = arith.constant 0 : i32
    %c0_i32_1 = arith.constant 0 : i32
    return %c0_i32, %c0_i32_0 : i32, i32
  }
  func.func @transform_6(%arg0: i32) -> (i32, i32) {
    %c0_i32 = arith.constant 0 : i32
    %c0_i32_0 = arith.constant 0 : i32
    %c0_i32_1 = arith.constant 0 : i32
    return %c0_i32, %c0_i32_0 : i32, i32
  }
  func.func @transform_7(%arg0: i32) -> (i32, i32) {
    %c0_i32 = arith.constant 0 : i32
    %c0_i32_0 = arith.constant 0 : i32
    %c0_i32_1 = arith.constant 0 : i32
    return %c0_i32, %c0_i32_0 : i32, i32
  }
  func.func @transform_8(%arg0: i32) -> (i32, i32, i32) {
    %c0_i32 = arith.constant 0 : i32
    %c0_i32_0 = arith.constant 0 : i32
    %c0_i32_1 = arith.constant 0 : i32
    %c0_i32_2 = arith.constant 0 : i32
    return %c0_i32, %c0_i32_0, %c0_i32_1 : i32, i32, i32
  }
  func.func @transform_9(%arg0: i32) -> (i32, i32, i32) {
    %c0_i32 = arith.constant 0 : i32
    %c0_i32_0 = arith.constant 0 : i32
    %c0_i32_1 = arith.constant 0 : i32
    %c0_i32_2 = arith.constant 0 : i32
    return %c0_i32, %c0_i32_0, %c0_i32_1 : i32, i32, i32
  }
  func.func @transform_10(%arg0: i32) -> (i32, i32, i32) {
    %c0_i32 = arith.constant 0 : i32
    %c0_i32_0 = arith.constant 0 : i32
    %c0_i32_1 = arith.constant 0 : i32
    return %arg0, %c0_i32, %c0_i32_0 : i32, i32, i32
  }
}

</mosaic_0001>

<bundles_post_ra>
// kernel: good_sn_discriminator.1
= control target key start
LH: loop header
LB: loop body
LE: loop exit
PB: predicated region body
PF: predicated region fallthrough
CT: control target
= control target key end

     0   :  { %s9034_s0 = inlined_call_operand.vmem [shape: f32[4], index: 0, kind: input, shape index: {}]   ;;  %s9035_s1 = inlined_call_operand.vmem [shape: bf16[2,34,5,128], index: 1, kind: input, shape index: {}]   ;;  %s9036_s2 = inlined_call_operand.vmem [shape: bf16[256,64], index: 2, kind: input, shape index: {}]   ;;  %s9037_s3 = inlined_call_operand.vmem [shape: f32[1,64], index: 3, kind: input, shape index: {}]   ;;  %s9038_s4 = inlined_call_operand.vmem [shape: bf16[1024,128], index: 4, kind: input, shape index: {}]   ;;  %s9039_s5 = inlined_call_operand.vmem [shape: f32[1,128], index: 5, kind: input, shape index: {}]   ;;  %s9040_s6 = inlined_call_operand.vmem [shape: bf16[2048,256], index: 6, kind: input, shape index: {}]   ;;  %s9041_s7 = inlined_call_operand.vmem [shape: f32[1,256], index: 7, kind: input, shape index: {}]   ;;  %s9042_s8 = inlined_call_operand.vmem [shape: f32[4,4,256], index: 8, kind: input, shape index: {}]   ;;  %s9043_s9 = inlined_call_operand.<no memory space> [shape: f32[1,1,1], index: 9, kind: input, shape index: {}]   ;;  %s9044_s10 = inlined_call_operand.vmem [shape: f32[2,1,1], index: 10, kind: output, shape index: {}]  }
   0x1   :  { %v15_v0 = vstv %s9043_s9 }
   0x2   :  { %16 = vst [vmem:[#allocation4] sm:$0x1] %v15_v0 }
   0x3   :  { %17 = vsyncpa [#allocation6], 0  ;;  %s7182_s15 = smov 0  }
   0x4 LB: > { %s7188_s16 = sadd.s32 4294967295, %s7098_s15   ;;  %p5248_p0 = scmp.ge.s32.totalorder %s7098_s15, 1  ;;  %s7098_s15 = sphi %s7182_s15, %s23_s15  }
   0x5   : > { %p269_p1 = scmp.lt.s32.totalorder %s7098_s15, 3  ;;  %s282_s18 = sshll.u32 %s9034_s0, 4  ;;  %s283_s18 = int_to_ptr.vmem [resolvable:$true] %s282_s18 }
   0x6   : > { %p6482_p3 = scmp.eq.s32.totalorder %s7188_s16, 0  ;;  %s7057_s20 = scalar_lea.vmem %s283_s18, 16 }
   0x7   : > { %p7195_p2 = pnand %p5248_p0, %p269_p1  ;;  %p7058_p6 = scmp.ne.s32.totalorder %s283_s18, %s7057_s20 }
   0x8   : > { %p7065_p10 = scmp.lt.s32.totalorder %s283_s18, %s283_s18  ;;  %p7066_p11 = scmp.lt.s32.totalorder %s7057_s20, %s7057_s20 }
   0x9   : > { %p6478_p4 = pneg %p7195_p2 }
   0xa   : > { %p7067_p12 = por %p7066_p11, %p7065_p10 }
   0xb   : > { %p6479_p5 = pnand %p6482_p3, %p6478_p4 }
   0xd   : > { %p7059_p7 = pneg %p6479_p5 }
   0xf   : > { %p7060_p8 = pnand %p7059_p7, %p7058_p6 }
  0x11   : > { %p7061_p9 = pneg %p7060_p8 }
  0x13   : > { %p7068_p13 = pnand %p7067_p12, %p7061_p9 }
  0x15   : > { %7071 = shalt.err (!%p7068_p13)
}
  0x16   : > { %s7116_s21 = smov [#allocation5]   ;;  %327 = sbr.rel (%p7195_p2) target bundleno = 1639 (0x667), region = 60 }
  0x17   : > { %6481 = dma.vmem_to_smem (!%p6479_p5), %s283_s18, 16, %s7116_s21, [#allocation6]  }
  0x1d   : > { %7093 = dma.done.wait (%p6482_p3), [#allocation6], 16  }
  0x1e   : > { %7095 = vsyncadd (%p6482_p3), [#allocation6], 4294967280 }
  0x1f   : > { %333 = sfence }
  0x20   : > { %p364_p0 = scmp.lt.s32.totalorder %s7188_s16, 1  ;;  %vm373_vm0 = vcmask 1042432   ;;  %vm374_vm1 = vsmask.f32 2304  ;;  %vm376_vm2 = vcmask 1046532   ;;  %s7219_s22 = sld [smem:[#allocation5]] }
  0x21   : > { %vm375_vm3 = vmand %vm373_vm0, %vm374_vm1  ;;  %vm377_vm4 = vsmask.f32 6400  ;;  %v380_v1 = vld [vmem:[#allocation2] sm:$0x77]  ;;  %v383_v2 = vld [vmem:[#allocation2 + $0x8] sm:$0x77] }
  0x22   : > { %s9050_s16 = smov (!%p364_p0, %s7188_s16), 1  ;;  %vm378_vm5 = vmand %vm376_vm2, %vm377_vm4  ;;  %v386_v3 = vld [vmem:[#allocation2 + $0x10] sm:$0x77]  ;;  %v389_v4 = vld [vmem:[#allocation2 + $0x18] sm:$0x77]  ;;  %s7287_s30 = sld [smem:[#allocation5 + $0x1]] }
  0x23   : > { %vm7215_vm6 = vmor %vm378_vm5, %vm375_vm3  ;;  %v392_v6 = vld [vmem:[#allocation2 + $0x20] sm:$0x77]  ;;  %v395_v7 = vld [vmem:[#allocation2 + $0x28] sm:$0x77]  ;;  %s6473_s23 = smul.u32 136, %s9050_s16  ;;  %s371_s26 = scalar_lea.vmem %s9044_s10, %s9050_s16 }
  0x24   : > { %v381_v8 = vsel %vm7215_vm6, 0, %v380_v1  ;;  %v384_v9 = vsel %vm7215_vm6, 0, %v383_v2  ;;  %v387_v10 = vsel %vm7215_vm6, 0, %v386_v3  ;;  %v390_v11 = vsel %vm7215_vm6, 0, %v389_v4  ;;  %v398_v14 = vld [vmem:[#allocation2 + $0x30] sm:$0x77] }
  0x25   : > { %382 = vst [vmem:[#allocation2] sm:$0x77] %v381_v8  ;;  %385 = vst [vmem:[#allocation2 + $0x8] sm:$0x77] %v384_v9  ;;  %v393_v12 = vsel %vm7215_vm6, 0, %v392_v6  ;;  %v396_v13 = vsel %vm7215_vm6, 0, %v395_v7  ;;  %s7241_s29 = scalar_lea.vmem %s9035_s1, %s6473_s23 }
  0x26   : > { %388 = vst [vmem:[#allocation2 + $0x10] sm:$0x77] %v387_v10  ;;  %391 = vst [vmem:[#allocation2 + $0x18] sm:$0x77] %v390_v11  ;;  %v401_v15 = vld [vmem:[#allocation2 + $0x38] sm:$0x77] }
  0x27   : > { %394 = vst [vmem:[#allocation2 + $0x20] sm:$0x77] %v393_v12  ;;  %397 = vst [vmem:[#allocation2 + $0x28] sm:$0x77] %v396_v13  ;;  %v399_v16 = vsel %vm7215_vm6, 0, %v398_v14  ;;  %v402_v17 = vsel %vm7215_vm6, 0, %v401_v15 }
  0x28   : > { %v404_v18 = vld [vmem:[#allocation2 + $0x40] sm:$0x77]  ;;  %v407_v19 = vld [vmem:[#allocation2 + $0x48] sm:$0x77]  ;;  %400 = vst [vmem:[#allocation2 + $0x30] sm:$0x77] %v399_v16 }
  0x29   : > { %403 = vst [vmem:[#allocation2 + $0x38] sm:$0x77] %v402_v17  ;;  %v405_v20 = vsel %vm7215_vm6, 0, %v404_v18  ;;  %v408_v21 = vsel %vm7215_vm6, 0, %v407_v19  ;;  %v410_v22 = vld [vmem:[#allocation2 + $0x50] sm:$0x77] }
  0x2a   : > { %v413_v23 = vld [vmem:[#allocation2 + $0x58] sm:$0x77]  ;;  %406 = vst [vmem:[#allocation2 + $0x40] sm:$0x77] %v405_v20  ;;  %409 = vst [vmem:[#allocation2 + $0x48] sm:$0x77] %v408_v21 }
  0x2b   : > { %v411_v24 = vsel %vm7215_vm6, 0, %v410_v22  ;;  %v414_v25 = vsel %vm7215_vm6, 0, %v413_v23  ;;  %v416_v26 = vld [vmem:[#allocation2 + $0x60] sm:$0x77]  ;;  %v419_v27 = vld [vmem:[#allocation2 + $0x68] sm:$0x77] }
  0x2c   : > { %412 = vst [vmem:[#allocation2 + $0x50] sm:$0x77] %v411_v24  ;;  %415 = vst [vmem:[#allocation2 + $0x58] sm:$0x77] %v414_v25  ;;  %v417_v28 = vsel %vm7215_vm6, 0, %v416_v26  ;;  %v420_v29 = vsel %vm7215_vm6, 0, %v419_v27 }
  0x2d   : > { %v422_v30 = vld [vmem:[#allocation2 + $0x70] sm:$0x77]  ;;  %v425_v31 = vld [vmem:[#allocation2 + $0x78] sm:$0x77]  ;;  %418 = vst [vmem:[#allocation2 + $0x60] sm:$0x77] %v417_v28 }
  0x2e   : > { %421 = vst [vmem:[#allocation2 + $0x68] sm:$0x77] %v420_v29  ;;  %v423_v32 = vsel %vm7215_vm6, 0, %v422_v30  ;;  %v426_v33 = vsel %vm7215_vm6, 0, %v425_v31  ;;  %v428_v34 = vld [vmem:[#allocation2 + $0x80] sm:$0x77] }
  0x2f   : > { %v431_v35 = vld [vmem:[#allocation2 + $0x88] sm:$0x77]  ;;  %424 = vst [vmem:[#allocation2 + $0x70] sm:$0x77] %v423_v32  ;;  %427 = vst [vmem:[#allocation2 + $0x78] sm:$0x77] %v426_v33 }
  0x30   : > { %v429_v36 = vsel %vm7215_vm6, 0, %v428_v34  ;;  %v432_v37 = vsel %vm7215_vm6, 0, %v431_v35  ;;  %v434_v38 = vld [vmem:[#allocation3] sm:$0x77]  ;;  %v437_v39 = vld [vmem:[#allocation3 + $0x8] sm:$0x77] }
  0x31   : > { %430 = vst [vmem:[#allocation2 + $0x80] sm:$0x77] %v429_v36  ;;  %433 = vst [vmem:[#allocation2 + $0x88] sm:$0x77] %v432_v37  ;;  %v435_v40 = vsel %vm7215_vm6, 0, %v434_v38  ;;  %v438_v41 = vsel %vm7215_vm6, 0, %v437_v39 }
  0x32   : > { %v440_v42 = vld [vmem:[#allocation3 + $0x10] sm:$0x77]  ;;  %v443_v43 = vld [vmem:[#allocation3 + $0x18] sm:$0x77]  ;;  %436 = vst [vmem:[#allocation3] sm:$0x77] %v435_v40 }
  0x33   : > { %439 = vst [vmem:[#allocation3 + $0x8] sm:$0x77] %v438_v41  ;;  %v441_v44 = vsel %vm7215_vm6, 0, %v440_v42  ;;  %v444_v45 = vsel %vm7215_vm6, 0, %v443_v43  ;;  %v446_v46 = vld [vmem:[#allocation3 + $0x20] sm:$0x77] }
  0x34   : > { %v449_v47 = vld [vmem:[#allocation3 + $0x28] sm:$0x77]  ;;  %442 = vst [vmem:[#allocation3 + $0x10] sm:$0x77] %v441_v44  ;;  %445 = vst [vmem:[#allocation3 + $0x18] sm:$0x77] %v444_v45 }
  0x35   : > { %v447_v48 = vsel %vm7215_vm6, 0, %v446_v46  ;;  %v450_v49 = vsel %vm7215_vm6, 0, %v449_v47  ;;  %v452_v50 = vld [vmem:[#allocation3 + $0x30] sm:$0x77]  ;;  %v455_v51 = vld [vmem:[#allocation3 + $0x38] sm:$0x77] }
  0x36   : > { %448 = vst [vmem:[#allocation3 + $0x20] sm:$0x77] %v447_v48  ;;  %451 = vst [vmem:[#allocation3 + $0x28] sm:$0x77] %v450_v49  ;;  %v453_v52 = vsel %vm7215_vm6, 0, %v452_v50  ;;  %v456_v53 = vsel %vm7215_vm6, 0, %v455_v51 }
  0x37   : > { %v458_v54 = vld [vmem:[#allocation3 + $0x40] sm:$0x77]  ;;  %v461_v55 = vld [vmem:[#allocation3 + $0x48] sm:$0x77]  ;;  %454 = vst [vmem:[#allocation3 + $0x30] sm:$0x77] %v453_v52 }
  0x38   : > { %457 = vst [vmem:[#allocation3 + $0x38] sm:$0x77] %v456_v53  ;;  %v459_v56 = vsel %vm7215_vm6, 0, %v458_v54  ;;  %v462_v57 = vsel %vm7215_vm6, 0, %v461_v55  ;;  %s7289_s11 = sld [smem:[#allocation5 + $0x2]]  ;;  %s7291_s12 = sld [smem:[#allocation5 + $0x3]] }
  0x39   : > { %460 = vst [vmem:[#allocation3 + $0x40] sm:$0x77] %v459_v56  ;;  %463 = vst [vmem:[#allocation3 + $0x48] sm:$0x77] %v462_v57  ;;  %s7293_s13 = smov 0  }
  0x3a LB: >> { %v7301_v58 = vld [vmem:[%s9036_s2 + $0x20] sm:$0xff]   ;;  %v7117_v59 = vmov 0.0   ;;  %v7309_v60 = vld [vmem:[%s9036_s2 + $0x28] sm:$0xff]   ;;  %s5727_s19 = sshll.u32 %s7102_s13, 3  ;;  %vm7118_vm7 = vmmov 0   ;;  %v7338_v1 = vld [vmem:[%s9036_s2 + $0x30] sm:$0xff]   ;;  %v793_v55 = vstv %s7219_s22  ;;  %s7102_s13 = sphi %s7293_s13, %s473_s13  }
  0x3b   : >> { %5990 = vmatprep.subr.bf16.mxu0 %v7117_v59  ;;  %6038 = vmatprep.subr.bf16.mxu1 %v7117_v59  ;;  %s7317_s20 = scalar_lea.vmem %s7241_s29, %s5727_s19  ;;  %s7119_s24 = smov 96   ;;  %v7352_v4 = vld [vmem:[%s9036_s2 + $0x38] sm:$0xff]   ;;  %vm530_vm8 = vcmask 523264   ;;  %v7364_v5 = vld [vmem:[%s9036_s2] sm:$0xff]   ;;  %v7378_v8 = vld [vmem:[%s9036_s2 + $0x8] sm:$0xff]   ;;  %vm1203_vm9 = vcmask 261120  }
  0x3c   : >> { %5991 = vmatpush3.bf16.msra.mxu0 %v7301_v58  ;;  %6039 = vmatpush3.bf16.msra.mxu1 %v7301_v58  ;;  %v7321_v61 = vld [vmem:[%s7317_s20 + $0x8] sm:$0x7]  ;;  %v5261_v62 = vld [vmem:[%s7317_s20 + $0x4] sm:$0x7]  ;;  %v477_v2 = vld [vmem:[%s7317_s20] sm:$0x7] }
  0x3d   : >> { %5992 = vmatprep.subr.bf16.mxu0 %v7117_v59  ;;  %6040 = vmatprep.subr.bf16.mxu1 %v7117_v59  ;;  %v7326_v63 = vcombine.low %v7321_v61, %v7321_v61  ;;  %v7328_v0 = vcombine.low %v5261_v62, %v5261_v62  ;;  %v7345_v3 = vcombine.low %v477_v2, %v477_v2  ;;  %s7120_s28 = smov 64   ;;  %v5267_v6 = vld [vmem:[%s7317_s20 + $0xc] sm:$0x7]  ;;  %v7390_v9 = vld [vmem:[%s9036_s2 + $0x10] sm:$0xff]   ;;  %s7121_s23 = smov 32   ;;  %v7402_v10 = vld [vmem:[%s9036_s2 + $0x18] sm:$0xff]  }
  0x3e   : >> { %5998 = vmatprep.mubr.msk.bf16.mxu0 %vm7118_vm7, %v7117_v59  ;;  %6046 = vmatprep.mubr.msk.bf16.mxu1 %vm7118_vm7, %v7117_v59  ;;  %v7371_v7 = vcombine.low %v5267_v6, %v5267_v6  ;;  %v7411_v11 = vld [vmem:[%s9036_s2 + $0x40] sm:$0xff]   ;;  %v7419_v12 = vld [vmem:[%s9036_s2 + $0x48] sm:$0xff]   ;;  %v7428_v13 = vld [vmem:[%s9036_s2 + $0x50] sm:$0xff]   ;;  %vm1662_vm12 = vcmask 517120   ;;  %s5162_s18 = scalar_lea.vmem [#allocation2], %s5727_s19  ;;  %vm1659_vm14 = vcmask 1041920  }
  0x3f   : >> { %905 = vrot.lane.b32.xlu1 %v7326_v63, %s7119_s24  ;;  %809 = vrot.lane.b32.xlu0 %v7328_v0, %s7119_s24  ;;  %v7435_v14 = vld [vmem:[%s9036_s2 + $0x58] sm:$0xff]   ;;  %v7442_v15 = vld [vmem:[%s9036_s2 + $0x60] sm:$0xff]   ;;  %v1199_v25 = vshll.u32 %v7345_v3, 16  ;;  %v1197_v27 = vshrl.u32 %v7345_v3, 16  ;;  %v1369_v37 = vshll.u32 %v7328_v0, 16  ;;  %v1367_v38 = vshrl.u32 %v7328_v0, 16 }
  0x40   : >> { %5993 = vmatpush3.bf16.msra.mxu0 %v7309_v60  ;;  %6041 = vmatpush3.bf16.msra.mxu1 %v7309_v60  ;;  %v7451_v16 = vld [vmem:[%s9036_s2 + $0x68] sm:$0xff]   ;;  %v7460_v17 = vld [vmem:[%s9036_s2 + $0x70] sm:$0xff]   ;;  %v7467_v18 = vld [vmem:[%s9036_s2 + $0x78] sm:$0xff]   ;;  %v1482_v44 = vshll.u32 %v7326_v63, 16  ;;  %v1480_v45 = vshrl.u32 %v7326_v63, 16  ;;  %v1595_v51 = vshll.u32 %v7371_v7, 16 }
  0x41   : >> { %5994 = vmatprep.subr.bf16.mxu0 %v7117_v59  ;;  %6042 = vmatprep.subr.bf16.mxu1 %v7117_v59  ;;  %v1201_v28 = vrot.slane %v1199_v25, 1  ;;  %v6552_v31 = vld [vmem:[%s9036_s2] sm:$0xff]   ;;  %v6553_v32 = vld [vmem:[%s9036_s2 + $0x8] sm:$0xff]   ;;  %v1371_v39 = vrot.slane %v1369_v37, 1  ;;  %v1593_v52 = vshrl.u32 %v7371_v7, 16  ;;  %vm1684_vm1 = vcmask 518144  }
  0x42   : >> { %v6554_v34 = vld [vmem:[%s9036_s2 + $0x20] sm:$0xff]   ;;  %v6555_v35 = vld [vmem:[%s9036_s2 + $0x28] sm:$0xff]   ;;  %v1484_v46 = vrot.slane %v1482_v44, 1  ;;  %v1597_v53 = vrot.slane %v1595_v51, 1  ;;  %vm1685_vm2 = vsmask.f32 2306 }
  0x43   : >> { %1005 = vrot.lane.b32.xlu1 %v7328_v0, %s7120_s28  ;;  %857 = vrot.lane.b32.xlu0 %v7345_v3, %s7119_s24  ;;  %v1202_v30 = vor.u32 %v1201_v28, %v1197_v27  ;;  %v1372_v40 = vor.u32 %v1371_v39, %v1367_v38  ;;  %v6556_v41 = vld [vmem:[%s9036_s2 + $0x40] sm:$0xff]   ;;  %v6557_v42 = vld [vmem:[%s9036_s2 + $0x48] sm:$0xff]   ;;  %vm1686_vm3 = vmand %vm1684_vm1, %vm1685_vm2  ;;  %s473_s13 = sadd.s32 1, %s7102_s13  }
  0x44   : >> { %5995 = vmatpush3.bf16.msra.mxu0 %v7338_v1  ;;  %6043 = vmatpush3.bf16.msra.mxu1 %v7338_v1  ;;  %v1485_v47 = vor.u32 %v1484_v46, %v1480_v45  ;;  %v6558_v48 = vld [vmem:[%s9036_s2 + $0x60] sm:$0xff]   ;;  %v6559_v49 = vld [vmem:[%s9036_s2 + $0x68] sm:$0xff]   ;;  %v1598_v54 = vor.u32 %v1597_v53, %v1593_v52  ;;  %p470_p1 = scmp.ge.s32.totalorder %s473_s13, 16  }
  0x45   : >> { %5996 = vmatprep.subr.bf16.mxu0 %v7117_v59  ;;  %6044 = vmatprep.subr.bf16.mxu1 %v7117_v59  ;;  %v5288_v57 = vld [vmem:[%s9037_s3] ss:$0 sm:$0xff]  ;;  %s7643_s19 = smov (%p470_p1), 0  }
  0x47   : >> { %1050 = vrot.lane.b32.xlu1 %v7345_v3, %s7120_s28  ;;  %954 = vrot.lane.b32.xlu0 %v7371_v7, %s7119_s24 }
  0x48   : >> { %5997 = vmatpush3.bf16.msra.mxu0 %v7352_v4  ;;  %6045 = vmatpush3.bf16.msra.mxu1 %v7352_v4 }
  0x49   : >> { %6002 = vmatprep.subr.bf16.mxu0 %v7117_v59  ;;  %6050 = vmatprep.subr.bf16.mxu1 %v7117_v59 }
  0x4b   : >> { %5999 = vmatmul.mubr.msk.bf16.vlgmr.msra.gmra.mrb[0].mxu0 %vm530_vm8, %v5261_v62  ;;  %1095 = vrot.lane.b32.xlu1 %v7326_v63, %s7120_s28 }
  0x4c   : >> { %6003 = vmatpush3.bf16.msra.mxu0 %v7364_v5  ;;  %6010 = vmatprep.mubr.msk.bf16.mxu0 %vm7118_vm7, %v7117_v59 }
  0x4d   : >> { %6004 = vmatprep.subr.bf16.mxu0 %v7117_v59  ;;  %1247 = vrot.lane.b32.xlu0 %v7345_v3, %s7121_s23 }
  0x4f   : >> { %1141 = vrot.lane.b32.xlu1 %v7371_v7, %s7120_s28 }
  0x50   : >> { %6005 = vmatpush3.bf16.msra.mxu0 %v7378_v8 }
  0x51   : >> { %6006 = vmatprep.subr.bf16.mxu0 %v7117_v59  ;;  %1308 = vrot.lane.b32.xlu0 %v7328_v0, %s7121_s23 }
  0x53   : >> { %1534 = vrot.lane.b32.xlu1 %v7371_v7, %s7121_s23 }
  0x54   : >> { %6007 = vmatpush3.bf16.msra.mxu0 %v7390_v9 }
  0x55   : >> { %6008 = vmatprep.subr.bf16.mxu0 %v7117_v59  ;;  %1421 = vrot.lane.b32.xlu0 %v7326_v63, %s7121_s23 }
  0x58   : >> { %6009 = vmatpush3.bf16.msra.mxu0 %v7402_v10 }
  0x59   : >> { %6014 = vmatprep.subr.bf16.mxu0 %v7117_v59 }
  0x5b   : >> { %6011 = vmatmul.mubr.msk.bf16.vlgmr.msra.gmra.mrb[0].mxu0 %vm530_vm8, %v477_v2 }
  0x5c   : >> { %6015 = vmatpush3.bf16.msra.mxu0 %v7411_v11  ;;  %6022 = vmatprep.mubr.msk.bf16.mxu0 %vm7118_vm7, %v7117_v59 }
  0x5d   : >> { %6016 = vmatprep.subr.bf16.mxu0 %v7117_v59 }
  0x60   : >> { %6017 = vmatpush3.bf16.msra.mxu0 %v7419_v12 }
  0x61   : >> { %6018 = vmatprep.subr.bf16.mxu0 %v7117_v59 }
  0x64   : >> { %6019 = vmatpush3.bf16.msra.mxu0 %v7428_v13 }
  0x65   : >> { %6020 = vmatprep.subr.bf16.mxu0 %v7117_v59 }
  0x68   : >> { %6021 = vmatpush3.bf16.msra.mxu0 %v7435_v14 }
  0x69   : >> { %6026 = vmatprep.subr.bf16.mxu0 %v7117_v59 }
  0x6b   : >> { %6023 = vmatmul.mubr.msk.bf16.vlgmr.msra.gmra.mrb[0].mxu0 %vm530_vm8, %v7321_v61 }
  0x6c   : >> { %6027 = vmatpush3.bf16.msra.mxu0 %v7442_v15  ;;  %6034 = vmatprep.mubr.msk.bf16.mxu0 %vm7118_vm7, %v7117_v59 }
  0x6d   : >> { %6028 = vmatprep.subr.bf16.mxu0 %v7117_v59 }
  0x70   : >> { %6029 = vmatpush3.bf16.msra.mxu0 %v7451_v16 }
  0x71   : >> { %6030 = vmatprep.subr.bf16.mxu0 %v7117_v59 }
  0x74   : >> { %6031 = vmatpush3.bf16.msra.mxu0 %v7460_v17 }
  0x75   : >> { %6032 = vmatprep.subr.bf16.mxu0 %v7117_v59 }
  0x78   : >> { %6033 = vmatpush3.bf16.msra.mxu0 %v7467_v18 }
  0x79   : >> { %6086 = vmatprep.subr.bf16.mxu0 %v7117_v59 }
  0x7b   : >> { %6035 = vmatmul.mubr.msk.bf16.vlgmr.msra.gmra.mrb[0].mxu0 %vm530_vm8, %v5267_v6 }
  0x7c   : >> { %6087 = vmatpush3.bf16.msra.mxu0 %v7301_v58  ;;  %6094 = vmatprep.mubr.msk.bf16.mxu0 %vm7118_vm7, %v7117_v59 }
  0x7d   : >> { %6088 = vmatprep.subr.bf16.mxu0 %v7117_v59 }
  0x80   : >> { %6089 = vmatpush3.bf16.msra.mxu0 %v7309_v60 }
  0x81   : >> { %6090 = vmatprep.subr.bf16.mxu0 %v7117_v59 }
  0x84   : >> { %6091 = vmatpush3.bf16.msra.mxu0 %v7338_v1 }
  0x85   : >> { %6092 = vmatprep.subr.bf16.mxu0 %v7117_v59 }
  0x88   : >> { %6093 = vmatpush3.bf16.msra.mxu0 %v7352_v4 }
  0x89   : >> { %6098 = vmatprep.subr.bf16.mxu0 %v7117_v59 }
  0xb1   : >> { %v906_v19 = vpop.permute.xlu1 %905  ;;  %v810_v20 = vpop.permute.xlu0 %809 }
  0xb2   : >> { %6047 = vmatmul.mubr.msk.bf16.vlgmr.msra.gmra.mrb[0].mxu1 %vm530_vm8, %v810_v20 }
  0xb3   : >> { %6051 = vmatpush3.bf16.msra.mxu1 %v7364_v5  ;;  %6058 = vmatprep.mubr.msk.bf16.mxu1 %vm7118_vm7, %v7117_v59 }
  0xb4   : >> { %6052 = vmatprep.subr.bf16.mxu1 %v7117_v59 }
  0xb5   : >> { %v1006_v21 = vpop.permute.xlu1 %1005  ;;  %v858_v22 = vpop.permute.xlu0 %857 }
  0xb6   : >> { %6095 = vmatmul.mubr.msk.bf16.vlgmr.msra.gmra.mrb[4].mxu0 %vm530_vm8, %v1006_v21 }
  0xb7   : >> { %6053 = vmatpush3.bf16.msra.mxu1 %v7378_v8  ;;  %6099 = vmatpush3.bf16.msra.mxu0 %v7364_v5 }
  0xb8   : >> { %6054 = vmatprep.subr.bf16.mxu1 %v7117_v59  ;;  %6100 = vmatprep.subr.bf16.mxu0 %v7117_v59 }
  0xb9   : >> { %6106 = vmatprep.mubr.msk.bf16.mxu0 %vm7118_vm7, %v7117_v59  ;;  %v1051_v23 = vpop.permute.xlu1 %1050  ;;  %v955_v26 = vpop.permute.xlu0 %954 }
  0xbb   : >> { %6055 = vmatpush3.bf16.msra.mxu1 %v7390_v9  ;;  %6101 = vmatpush3.bf16.msra.mxu0 %v7378_v8 }
  0xbc   : >> { %6056 = vmatprep.subr.bf16.mxu1 %v7117_v59  ;;  %6102 = vmatprep.subr.bf16.mxu0 %v7117_v59 }
  0xbd   : >> { %v1096_v24 = vpop.permute.xlu1 %1095 }
  0xbf   : >> { %6057 = vmatpush3.bf16.msra.mxu1 %v7402_v10  ;;  %6103 = vmatpush3.bf16.msra.mxu0 %v7390_v9  ;;  %v1248_v33 = vpop.permute.xlu0 %1247 }
  0xc0   : >> { %6062 = vmatprep.subr.bf16.mxu1 %v7117_v59  ;;  %6104 = vmatprep.subr.bf16.mxu0 %v7117_v59 }
  0xc1   : >> { %v1142_v29 = vpop.permute.xlu1 %1141 }
  0xc2   : >> { %6059 = vmatmul.mubr.msk.bf16.vlgmr.msra.gmra.mrb[0].mxu1 %vm530_vm8, %v858_v22 }
  0xc3   : >> { %6063 = vmatpush3.bf16.msra.mxu1 %v7411_v11  ;;  %6105 = vmatpush3.bf16.msra.mxu0 %v7402_v10  ;;  %v1309_v36 = vpop.permute.xlu0 %1308 }
  0xc4   : >> { %6064 = vmatprep.subr.bf16.mxu1 %v7117_v59  ;;  %6110 = vmatprep.subr.bf16.mxu0 %v7117_v59 }
  0xc5   : >> { %6070 = vmatprep.mubr.msk.bf16.mxu1 %vm7118_vm7, %v7117_v59  ;;  %v1535_v50 = vpop.permute.xlu1 %1534 }
  0xc6   : >> { %6107 = vmatmul.mubr.msk.bf16.vlgmr.msra.gmra.mrb[4].mxu0 %vm530_vm8, %v1051_v23 }
  0xc7   : >> { %6065 = vmatpush3.bf16.msra.mxu1 %v7419_v12  ;;  %6111 = vmatpush3.bf16.msra.mxu0 %v7411_v11  ;;  %v1422_v43 = vpop.permute.xlu0 %1421 }
  0xc8   : >> { %6066 = vmatprep.subr.bf16.mxu1 %v7117_v59  ;;  %6112 = vmatprep.subr.bf16.mxu0 %v7117_v59 }
  0xc9   : >> { %6118 = vmatprep.mubr.msk.bf16.mxu0 %vm7118_vm7, %v7117_v59 }
  0xcb   : >> { %6067 = vmatpush3.bf16.msra.mxu1 %v7428_v13  ;;  %6113 = vmatpush3.bf16.msra.mxu0 %v7419_v12 }
  0xcc   : >> { %6068 = vmatprep.subr.bf16.mxu1 %v7117_v59  ;;  %6114 = vmatprep.subr.bf16.mxu0 %v7117_v59 }
  0xcf   : >> { %6069 = vmatpush3.bf16.msra.mxu1 %v7435_v14  ;;  %6115 = vmatpush3.bf16.msra.mxu0 %v7428_v13 }
  0xd0   : >> { %6074 = vmatprep.subr.bf16.mxu1 %v7117_v59  ;;  %6116 = vmatprep.subr.bf16.mxu0 %v7117_v59 }
  0xd2   : >> { %6071 = vmatmul.mubr.msk.bf16.vlgmr.msra.gmra.mrb[0].mxu1 %vm530_vm8, %v906_v19 }
  0xd3   : >> { %6075 = vmatpush3.bf16.msra.mxu1 %v7442_v15  ;;  %6117 = vmatpush3.bf16.msra.mxu0 %v7435_v14 }
  0xd4   : >> { %6076 = vmatprep.subr.bf16.mxu1 %v7117_v59  ;;  %6122 = vmatprep.subr.bf16.mxu0 %v7117_v59 }
  0xd5   : >> { %6082 = vmatprep.mubr.msk.bf16.mxu1 %vm7118_vm7, %v7117_v59 }
  0xd6   : >> { %6119 = vmatmul.mubr.msk.bf16.vlgmr.msra.gmra.mrb[4].mxu0 %vm530_vm8, %v1096_v24 }
  0xd7   : >> { %6077 = vmatpush3.bf16.msra.mxu1 %v7451_v16  ;;  %6123 = vmatpush3.bf16.msra.mxu0 %v7442_v15 }
  0xd8   : >> { %6078 = vmatprep.subr.bf16.mxu1 %v7117_v59  ;;  %6124 = vmatprep.subr.bf16.mxu0 %v7117_v59 }
  0xd9   : >> { %6130 = vmatprep.mubr.msk.bf16.mxu0 %vm7118_vm7, %v7117_v59 }
  0xdb   : >> { %6079 = vmatpush3.bf16.msra.mxu1 %v7460_v17  ;;  %6125 = vmatpush3.bf16.msra.mxu0 %v7451_v16 }
  0xdc   : >> { %6080 = vmatprep.subr.bf16.mxu1 %v7117_v59  ;;  %6126 = vmatprep.subr.bf16.mxu0 %v7117_v59 }
  0xdf   : >> { %6081 = vmatpush3.bf16.msra.mxu1 %v7467_v18  ;;  %6127 = vmatpush3.bf16.msra.mxu0 %v7460_v17 }
  0xe0   : >> { %6128 = vmatprep.subr.bf16.mxu0 %v7117_v59  ;;  %6134 = vmatprep.subr.bf16.mxu1 %v7117_v59 }
  0xe2   : >> { %6083 = vmatmul.mubr.msk.bf16.vlgmr.msra.gmra.mrb[0].mxu1 %vm530_vm8, %v955_v26 }
  0xe3   : >> { %6129 = vmatpush3.bf16.msra.mxu0 %v7467_v18  ;;  %6135 = vmatpush3.bf16.msra.mxu1 %v7390_v9 }
  0xe4   : >> { %6136 = vmatprep.subr.bf16.mxu1 %v7117_v59  ;;  %6138 = vmatprep.mubr.msk.bf16.mxu1 %vm7118_vm7, %v7117_v59 }
  0xe6   : >> { %6131 = vmatmul.mubr.msk.bf16.vlgmr.msra.gmra.mrb[4].mxu0 %vm530_vm8, %v1142_v29 }
  0xe7   : >> { %6137 = vmatpush3.bf16.msra.mxu1 %v7402_v10 }
  0xe8   : >> { %6142 = vmatprep.subr.bf16.mxu1 %v7117_v59 }
  0xea   : >> { %6139 = vmatmul.mubr.msk.bf16.vlgmr.msra.gmra.mrb[4].mxu1 %vm1203_vm9, %v1202_v30 }
  0xeb   : >> { %6143 = vmatpush3.bf16.msra.mxu1 %v6552_v31  ;;  %6146 = vmatprep.mubr.msk.bf16.mxu1 %vm7118_vm7, %v7117_v59 }
  0xec   : >> { %6144 = vmatprep.subr.bf16.mxu1 %v7117_v59 }
  0xef   : >> { %6145 = vmatpush3.bf16.msra.mxu1 %v6553_v32 }
  0xf0   : >> { %6150 = vmatprep.subr.bf16.mxu1 %v7117_v59 }
  0xf6   : >> { %6147 = vmatmul.mubr.msk.bf16.vlgmr.msra.gmra.mrb[4].mxu1 %vm1203_vm9, %v1248_v33 }
  0xf7   : >> { %6151 = vmatpush3.bf16.msra.mxu1 %v6554_v34  ;;  %6154 = vmatprep.mubr.msk.bf16.mxu1 %vm7118_vm7, %v7117_v59 }
  0xf8   : >> { %6152 = vmatprep.subr.bf16.mxu1 %v7117_v59 }
  0xfb   : >> { %6153 = vmatpush3.bf16.msra.mxu1 %v6555_v35 }
  0xfc   : >> { %6158 = vmatprep.subr.bf16.mxu1 %v7117_v59 }
 0x102   : >> { %6155 = vmatmul.mubr.msk.bf16.vlgmr.msra.gmra.mrb[4].mxu1 %vm1203_vm9, %v1309_v36 }
 0x103   : >> { %6159 = vmatpush3.bf16.msra.mxu1 %v7338_v1  ;;  %6162 = vmatprep.mubr.msk.bf16.mxu1 %vm7118_vm7, %v7117_v59 }
 0x104   : >> { %6160 = vmatprep.subr.bf16.mxu1 %v7117_v59 }
 0x107   : >> { %6161 = vmatpush3.bf16.msra.mxu1 %v7352_v4 }
 0x108   : >> { %6166 = vmatprep.subr.bf16.mxu1 %v7117_v59 }
 0x10e   : >> { %6163 = vmatmul.mubr.msk.bf16.vlgmr.msra.gmra.mrb[4].mxu1 %vm1203_vm9, %v1372_v40 }
 0x10f   : >> { %6167 = vmatpush3.bf16.msra.mxu1 %v6556_v41  ;;  %6170 = vmatprep.mubr.msk.bf16.mxu1 %vm7118_vm7, %v7117_v59 }
 0x110   : >> { %6168 = vmatprep.subr.bf16.mxu1 %v7117_v59 }
 0x113   : >> { %6169 = vmatpush3.bf16.msra.mxu1 %v6557_v42 }
 0x114   : >> { %6174 = vmatprep.subr.bf16.mxu1 %v7117_v59 }
 0x11a   : >> { %6171 = vmatmul.mubr.msk.bf16.vlgmr.msra.gmra.mrb[4].mxu1 %vm1203_vm9, %v1422_v43 }
 0x11b   : >> { %6175 = vmatpush3.bf16.msra.mxu1 %v7428_v13  ;;  %6178 = vmatprep.mubr.msk.bf16.mxu1 %vm7118_vm7, %v7117_v59 }
 0x11c   : >> { %6176 = vmatprep.subr.bf16.mxu1 %v7117_v59 }
 0x11f   : >> { %6177 = vmatpush3.bf16.msra.mxu1 %v7435_v14 }
 0x120   : >> { %6182 = vmatprep.subr.bf16.mxu1 %v7117_v59 }
 0x126   : >> { %6179 = vmatmul.mubr.msk.bf16.vlgmr.msra.gmra.mrb[4].mxu1 %vm1203_vm9, %v1485_v47 }
 0x127   : >> { %6183 = vmatpush3.bf16.msra.mxu1 %v6558_v48  ;;  %6186 = vmatprep.mubr.msk.bf16.mxu1 %vm7118_vm7, %v7117_v59 }
 0x128   : >> { %6184 = vmatprep.subr.bf16.mxu1 %v7117_v59 }
 0x12b   : >> { %6185 = vmatpush3.bf16.msra.mxu1 %v6559_v49 }
 0x12c   : >> { %6190 = vmatprep.subr.bf16.mxu1 %v7117_v59 }
 0x132   : >> { %6187 = vmatmul.mubr.msk.bf16.vlgmr.msra.gmra.mrb[4].mxu1 %vm1203_vm9, %v1535_v50 }
 0x133   : >> { %6191 = vmatpush3.bf16.msra.mxu1 %v7460_v17  ;;  %6194 = vmatprep.mubr.msk.bf16.mxu1 %vm7118_vm7, %v7117_v59 }
 0x134   : >> { %6192 = vmatprep.subr.bf16.mxu1 %v7117_v59 }
 0x137   : >> { %6193 = vmatpush3.bf16.msra.mxu1 %v7467_v18 }
 0x13e   : >> { %6195 = vmatmul.mubr.msk.bf16.vlgmr.msra.gmra.mrb[4].mxu1 %vm1203_vm9, %v1598_v54 }
 0x14e   : >> { %v786_v56 = vpop.f32.mrb[0].mxu0 }
 0x14f   : >> { %v794_v58 = vmul.f32 %v793_v55, %v786_v56  ;;  %v6036_v60 = vpop.f32.mrb[1].mxu0 }
 0x150   : >> { %v789_v61 = vpop.f32.mrb[2].mxu0 }
 0x151   : >> { %v802_v62 = vadd.f32 %v5288_v57, %v794_v58  ;;  %v6037_v63 = vpop.f32.mrb[3].mxu0 }
 0x153   : >> { %v804_v59 = vmul.f32 0.01, %v802_v62  ;;  %vm803_vm10 = vcmp.ge.f32.partialorder %v802_v62, 0.0 }
 0x155   : >> { %v805_v0 = vsel %vm803_vm10, %v802_v62, %v804_v59 }
 0x156   : >> { %v5731_v1 = vpack.c.bf16 %v805_v0, %v805_v0 }
 0x158   : >> { %1653 = vrot.lane.b32.xlu0 %v5731_v1, %s7120_s28 }
 0x1b5   : >> { %v993_v2 = vpop.f32.mrb[0].mxu1 }
 0x1b6   : >> { %v1000_v3 = vmul.f32 %v993_v2, %v793_v55  ;;  %v6084_v4 = vpop.f32.mrb[1].mxu1 }
 0x1b7   : >> { %v996_v5 = vpop.f32.mrb[2].mxu1 }
 0x1b8   : >> { %v1001_v6 = vadd.f32 %v5288_v57, %v1000_v3  ;;  %v6085_v7 = vpop.f32.mrb[3].mxu1 }
 0x1b9   : >> { %v1180_v8 = vpop.f32.mrb[4].mxu0 }
 0x1ba   : >> { %vm1002_vm11 = vcmp.ge.f32.partialorder %v1001_v6, 0.0  ;;  %v1003_v9 = vmul.f32 0.01, %v1001_v6  ;;  %v1187_v10 = vmul.f32 %v1180_v8, %v793_v55  ;;  %v6132_v11 = vpop.f32.mrb[5].mxu0 }
 0x1bb   : >> { %v1183_v12 = vpop.f32.mrb[6].mxu0 }
 0x1bc   : >> { %v1004_v13 = vsel %vm1002_vm11, %v1001_v6, %v1003_v9  ;;  %v1188_v14 = vadd.f32 %v5288_v57, %v1187_v10  ;;  %v6133_v15 = vpop.f32.mrb[7].mxu0 }
 0x1bd   : >> { %v1661_v16 = vpack.c.bf16 %v1004_v13, %v1004_v13 }
 0x1be   : >> { %v1190_v17 = vmul.f32 0.01, %v1188_v14  ;;  %vm1189_vm13 = vcmp.ge.f32.partialorder %v1188_v14, 0.0 }
 0x1bf   : >> { %5320 = vst.msk [vmem:[%s5162_s18 + $0xc] sm:$0x3] %vm1662_vm12, %v1661_v16 }
 0x1c0   : >> { %v1191_v18 = vsel %vm1189_vm13, %v1188_v14, %v1190_v17 }
 0x1c1   : >> { %v5732_v19 = vpack.c.bf16 %v1191_v18, %v1191_v18 }
 0x1c3   : >> { %1668 = vrot.lane.b32.xlu1 %v5732_v19, %s7120_s28 }
 0x1ca   : >> { %v1654_v20 = vpop.permute.xlu0 %1653 }
 0x1cb   : >> { %5319 = vst.msk [vmem:[%s5162_s18 + $0x8] sm:$0x3] %vm1659_vm14, %v1654_v20 }
 0x1d2   : >> { %v5324_v34 = vld [vmem:[%s5162_s18 + $0x8] sm:$0x7] }
 0x211   : >> { %v1636_v21 = vpop.f32.mrb[4].mxu1 }
 0x212   : >> { %v1643_v22 = vmul.f32 %v1636_v21, %v793_v55  ;;  %v6196_v23 = vpop.f32.mrb[5].mxu1 }
 0x213   : >> { %v1639_v24 = vpop.f32.mrb[6].mxu1 }
 0x214   : >> { %v1644_v25 = vadd.f32 %v5288_v57, %v1643_v22  ;;  %v6197_v26 = vpop.f32.mrb[7].mxu1 }
 0x216   : >> { %vm1645_vm15 = vcmp.ge.f32.partialorder %v1644_v25, 0.0  ;;  %v1646_v27 = vmul.f32 0.01, %v1644_v25 }
 0x218   : >> { %v1647_v28 = vsel %vm1645_vm15, %v1644_v25, %v1646_v27 }
 0x219   : >> { %v5733_v29 = vpack.c.bf16 %v1647_v28, %v1647_v28 }
 0x21b   : >> { %v1677_v30 = vshrl.u32 %v5733_v29, 16  ;;  %v1680_v32 = vshll.u32 %v5733_v29, 16 }
 0x21d   : >> { %v1679_v31 = vrot.slane %v1677_v30, 7 }
 0x21f   : >> { %v1682_v33 = vor.u32 %v1680_v32, %v1679_v31 }
 0x221   : >> { %v1688_v35 = vsel %vm1686_vm3, %v1682_v33, %v5324_v34 }
 0x222   : >> { %5325 = vst [vmem:[%s5162_s18 + $0x8] sm:$0x7] %v1688_v35 }
 0x230   : > { %472 = sbr.rel (!%p470_p1) target bundleno = 58 (0x3a), region = 131 }
 0x235   : >> { %v1669_v36 = vpop.permute.xlu1 %1668 }
 0x236   : >> { %5322 = vst.msk [vmem:[%s5162_s18 + $0xc] sm:$0x3] %vm1659_vm14, %v1669_v36 }
 0x237 LB: >> { %v7651_v37 = vld [vmem:[%s9038_s4 + $0xc0] sm:$0xff]   ;;  %v7122_v38 = vmov 0.0   ;;  %vm7123_vm4 = vmmov 0   ;;  %v7666_v41 = vld [vmem:[%s9038_s4 + $0xc8] sm:$0xff]   ;;  %v7679_v44 = vld [vmem:[%s9038_s4 + $0xd0] sm:$0xff]   ;;  %s5735_s22 = sshll.u32 %s7106_s19, 4  ;;  %s7106_s19 = sphi %s7643_s19, %s1695_s19  }
 0x238   : >> { %6238 = vmatprep.subr.bf16.mxu0 %v7122_v38  ;;  %v6561_v39 = vld [vmem:[%s9038_s4 + $0x80] sm:$0xff]   ;;  %5830 = vmatprep.subr.bf16.mxu1 %v7651_v37  ;;  %v6564_v42 = vld [vmem:[%s9038_s4 + $0x88] sm:$0xff]   ;;  %v6567_v45 = vld [vmem:[%s9038_s4 + $0x90] sm:$0xff]   ;;  %s7741_s20 = scalar_lea.vmem [#allocation2], %s5735_s22  ;;  %s5443_s24 = sshll.u32 %s7106_s19, 3 }
 0x239   : >> { %v6562_v40 = vld [vmem:[%s9038_s4 + $0x80] sm:$0xff]   ;;  %6254 = vmatprep.mubr.msk.bf16.mxu0 %vm7123_vm4, %v7122_v38  ;;  %6239 = vmatpush3.bf16.msra.mxu0 %v6561_v39  ;;  %v6565_v43 = vld [vmem:[%s9038_s4 + $0x88] sm:$0xff]   ;;  %v6568_v46 = vld [vmem:[%s9038_s4 + $0x90] sm:$0xff]   ;;  %s5179_s25 = scalar_lea.vmem [#allocation3], %s5443_s24  ;;  %s1695_s19 = sadd.s32 1, %s7106_s19  }
 0x23a   : >> { %5831 = vmatpush3.bf16.msra.mxu1 %v6562_v40  ;;  %6240 = vmatprep.subr.bf16.mxu0 %v7122_v38  ;;  %v7692_v47 = vld [vmem:[%s9038_s4 + $0xd8] sm:$0xff]   ;;  %v7705_v50 = vld [vmem:[%s9038_s4 + $0xe0] sm:$0xff]   ;;  %v7718_v53 = vld [vmem:[%s9038_s4 + $0xe8] sm:$0xff]   ;;  %p1692_p2 = scmp.ge.s32.totalorder %s1695_s19, 8  }
 0x23b   : >> { %5832 = vmatprep.subr.bf16.mxu1 %v7666_v41  ;;  %v6570_v48 = vld [vmem:[%s9038_s4 + $0x98] sm:$0xff]   ;;  %v6573_v51 = vld [vmem:[%s9038_s4 + $0xa0] sm:$0xff]   ;;  %v6576_v54 = vld [vmem:[%s9038_s4 + $0xa8] sm:$0xff]   ;;  %s8181_s22 = smov (%p1692_p2), 0  }
 0x23c   : >> { %v6571_v49 = vld [vmem:[%s9038_s4 + $0x98] sm:$0xff]   ;;  %v6574_v52 = vld [vmem:[%s9038_s4 + $0xa0] sm:$0xff]   ;;  %v6577_v55 = vld [vmem:[%s9038_s4 + $0xa8] sm:$0xff]  }
 0x23d   : >> { %6241 = vmatpush3.bf16.msra.mxu0 %v6564_v42  ;;  %v7732_v56 = vld [vmem:[%s9038_s4 + $0xf0] sm:$0xff]   ;;  %v5331_v60 = vld [vmem:[%s7741_s20 + $0x8] sm:$0x77]  ;;  %v7748_v61 = vld [vmem:[%s9038_s4 + $0xf8] sm:$0xff]  }
 0x23e   : >> { %5833 = vmatpush3.bf16.msra.mxu1 %v6565_v43  ;;  %6242 = vmatprep.subr.bf16.mxu0 %v7122_v38  ;;  %v6579_v57 = vld [vmem:[%s9038_s4 + $0xb0] sm:$0xff]   ;;  %v5339_v62 = vcombine.high %v5331_v60, %v5331_v60  ;;  %v6582_v63 = vld [vmem:[%s9038_s4 + $0xb8] sm:$0xff]   ;;  %v7761_v0 = vld [vmem:[%s9038_s4 + $0x40] sm:$0xff]   ;;  %v5338_v1 = vcombine.low %v5331_v60, %v5331_v60 }
 0x23f   : >> { %5834 = vmatprep.subr.bf16.mxu1 %v7679_v44  ;;  %v6580_v58 = vld [vmem:[%s9038_s4 + $0xb0] sm:$0xff]   ;;  %v6583_v59 = vld [vmem:[%s9038_s4 + $0xb8] sm:$0xff]   ;;  %v6587_v2 = vld [vmem:[%s9038_s4] sm:$0xff]  }
 0x240   : >> { %1915 = vmatprep.mubr.bf16.mxu1 %v5339_v62  ;;  %v7771_v3 = vld [vmem:[%s9038_s4 + $0x48] sm:$0xff]   ;;  %v7782_v5 = vld [vmem:[%s9038_s4 + $0x50] sm:$0xff]   ;;  %v1700_v7 = vld [vmem:[%s7741_s20] sm:$0x77]  ;;  %v2691_v16 = vshll.u32 %v5338_v1, 16  ;;  %v2689_v19 = vshrl.u32 %v5338_v1, 16 }
 0x241   : >> { %6243 = vmatpush3.bf16.msra.mxu0 %v6567_v45  ;;  %v6589_v4 = vld [vmem:[%s9038_s4 + $0x8] sm:$0xff]   ;;  %v6591_v6 = vld [vmem:[%s9038_s4 + $0x10] sm:$0xff]   ;;  %v7796_v8 = vld [vmem:[%s9038_s4 + $0x58] sm:$0xff]   ;;  %v7798_v9 = vcombine.high %v1700_v7, %v1700_v7  ;;  %v7860_v25 = vcombine.low %v1700_v7, %v1700_v7 }
 0x242   : >> { %5835 = vmatpush3.bf16.msra.mxu1 %v6568_v46  ;;  %6244 = vmatprep.subr.bf16.mxu0 %v7122_v38  ;;  %v6593_v10 = vld [vmem:[%s9038_s4 + $0x18] sm:$0xff]   ;;  %v7810_v11 = vld [vmem:[%s9038_s4 + $0x60] sm:$0xff]   ;;  %v7821_v13 = vld [vmem:[%s9038_s4 + $0x68] sm:$0xff]   ;;  %v2693_v20 = vrot.slane %v2691_v16, 1 }
 0x243   : >> { %5836 = vmatprep.subr.bf16.mxu1 %v7692_v47  ;;  %v6595_v12 = vld [vmem:[%s9038_s4 + $0x20] sm:$0xff]   ;;  %v6597_v14 = vld [vmem:[%s9038_s4 + $0x28] sm:$0xff]   ;;  %v7832_v15 = vld [vmem:[%s9038_s4 + $0x70] sm:$0xff]  }
 0x244   : >> { %v6599_v17 = vld [vmem:[%s9038_s4 + $0x30] sm:$0xff]   ;;  %v7843_v18 = vld [vmem:[%s9038_s4 + $0x78] sm:$0xff]   ;;  %v7854_v22 = vld [vmem:[%s9038_s4 + $0x140] sm:$0xff]   ;;  %v2694_v23 = vor.u32 %v2693_v20, %v2689_v19 }
 0x245   : >> { %6245 = vmatpush3.bf16.msra.mxu0 %v6570_v48  ;;  %v6601_v21 = vld [vmem:[%s9038_s4 + $0x38] sm:$0xff]   ;;  %v6605_v24 = vld [vmem:[%s9038_s4 + $0x100] sm:$0xff]   ;;  %v7869_v27 = vld [vmem:[%s9038_s4 + $0x148] sm:$0xff]  }
 0x246   : >> { %5837 = vmatpush3.bf16.msra.mxu1 %v6571_v49  ;;  %6246 = vmatprep.subr.bf16.mxu0 %v7122_v38  ;;  %v6606_v26 = vld [vmem:[%s9038_s4 + $0x100] sm:$0xff]   ;;  %v5334_v28 = vld [vmem:[%s7741_s20 + $0x10] sm:$0x77]  ;;  %v6608_v30 = vld [vmem:[%s9038_s4 + $0x108] sm:$0xff]  }
 0x247   : >> { %5838 = vmatprep.subr.bf16.mxu1 %v7705_v50  ;;  %v5375_v29 = vcombine.high %v5334_v28, %v5334_v28  ;;  %v6609_v31 = vld [vmem:[%s9038_s4 + $0x108] sm:$0xff]   ;;  %v7885_v32 = vld [vmem:[%s9038_s4 + $0x150] sm:$0xff]   ;;  %v7900_v35 = vld [vmem:[%s9038_s4 + $0x158] sm:$0xff]  }
 0x248   : >> { %v6611_v33 = vld [vmem:[%s9038_s4 + $0x110] sm:$0xff]   ;;  %v6614_v36 = vld [vmem:[%s9038_s4 + $0x118] sm:$0xff]   ;;  %v7913_v39 = vld [vmem:[%s9038_s4 + $0x160] sm:$0xff]  }
 0x249   : >> { %6247 = vmatpush3.bf16.msra.mxu0 %v6573_v51  ;;  %v6612_v34 = vld [vmem:[%s9038_s4 + $0x110] sm:$0xff]   ;;  %v6617_v40 = vld [vmem:[%s9038_s4 + $0x120] sm:$0xff]   ;;  %v7926_v42 = vld [vmem:[%s9038_s4 + $0x168] sm:$0xff]  }
 0x24a   : >> { %5839 = vmatpush3.bf16.msra.mxu1 %v6574_v52  ;;  %6248 = vmatprep.subr.bf16.mxu0 %v7122_v38  ;;  %v6620_v43 = vld [vmem:[%s9038_s4 + $0x128] sm:$0xff]   ;;  %v7939_v45 = vld [vmem:[%s9038_s4 + $0x170] sm:$0xff]   ;;  %v7952_v48 = vld [vmem:[%s9038_s4 + $0x178] sm:$0xff]  }
 0x24b   : >> { %5840 = vmatprep.subr.bf16.mxu1 %v7718_v53  ;;  %v6623_v46 = vld [vmem:[%s9038_s4 + $0x130] sm:$0xff]   ;;  %v6626_v49 = vld [vmem:[%s9038_s4 + $0x138] sm:$0xff]   ;;  %v7965_v51 = vld [vmem:[%s9038_s4 + $0x1c0] sm:$0xff]  }
 0x24c   : >> { %v5337_v52 = vld [vmem:[%s7741_s20 + $0x18] sm:$0x77]  ;;  %v6635_v60 = vld [vmem:[%s9038_s4 + $0x190] sm:$0xff]   ;;  %v6648_v20 = vld [vmem:[%s9038_s4 + $0x180] sm:$0xff]  }
 0x24d   : >> { %6249 = vmatpush3.bf16.msra.mxu0 %v6576_v54  ;;  %v6631_v54 = vld [vmem:[%s9038_s4 + $0x180] sm:$0xff]   ;;  %v6643_v7 = vld [vmem:[%s9038_s4 + $0x1b0] sm:$0xff]   ;;  %v6645_v16 = vld [vmem:[%s9038_s4 + $0x1b8] sm:$0xff]   ;;  %v8056_v19 = vcombine.low %v5337_v52, %v5337_v52 }
 0x24e   : >> { %5841 = vmatpush3.bf16.msra.mxu1 %v6577_v55  ;;  %6250 = vmatprep.subr.bf16.mxu0 %v7122_v38  ;;  %v7976_v55 = vld [vmem:[%s9038_s4 + $0x1c8] sm:$0xff]   ;;  %vm3069_vm7 = vmand %vm373_vm0, %vm1685_vm2 }
 0x24f   : >> { %5842 = vmatprep.subr.bf16.mxu1 %v7732_v56 }
 0x251   : >> { %6251 = vmatpush3.bf16.msra.mxu0 %v6579_v57  ;;  %v6633_v57 = vld [vmem:[%s9038_s4 + $0x188] sm:$0xff]  }
 0x252   : >> { %5843 = vmatpush3.bf16.msra.mxu1 %v6580_v58  ;;  %6252 = vmatprep.subr.bf16.mxu0 %v7122_v38  ;;  %v7989_v58 = vld [vmem:[%s9038_s4 + $0x1d0] sm:$0xff]  }
 0x253   : >> { %5844 = vmatprep.subr.bf16.mxu1 %v7748_v61 }
 0x255   : >> { %6253 = vmatpush3.bf16.msra.mxu0 %v6582_v63  ;;  %v8014_v63 = vld [vmem:[%s9038_s4 + $0x1e0] sm:$0xff]  }
 0x256   : >> { %5845 = vmatpush3.bf16.msra.mxu1 %v6583_v59  ;;  %6258 = vmatprep.subr.bf16.mxu0 %v7122_v38  ;;  %v6639_v59 = vld [vmem:[%s9038_s4 + $0x1a0] sm:$0xff]  }
 0x257   : >> { %5852 = vmatprep.subr.bf16.mxu1 %v7761_v0 }
 0x258   : >> { %6255 = vmatmul.mubr.bf16.vlgmr.msra.gmra.mrb[0].mxu0 %v5339_v62  ;;  %v6637_v62 = vld [vmem:[%s9038_s4 + $0x198] sm:$0xff]  }
 0x259   : >> { %1916 = vmatmul.mubr.bf16.vlgmr.msra.gmra.mrb[0].mxu1 %v5338_v1  ;;  %6259 = vmatpush3.bf16.msra.mxu0 %v7651_v37  ;;  %v6615_v37 = vld [vmem:[%s9038_s4 + $0x118] sm:$0xff]   ;;  %v8025_v1 = vld [vmem:[%s9038_s4 + $0x1e8] sm:$0xff]  }
 0x25a   : >> { %5853 = vmatpush3.bf16.msra.mxu1 %v6587_v2  ;;  %6260 = vmatprep.subr.bf16.mxu0 %v7122_v38  ;;  %v6641_v2 = vld [vmem:[%s9038_s4 + $0x1a8] sm:$0xff]  }
 0x25b   : >> { %5854 = vmatprep.subr.bf16.mxu1 %v7771_v3  ;;  %6274 = vmatprep.mubr.msk.bf16.mxu0 %vm7123_vm4, %v7122_v38 }
 0x25c   : >> { %2058 = vmatprep.mubr.bf16.mxu1 %v7798_v9 }
 0x25d   : >> { %6261 = vmatpush3.bf16.msra.mxu0 %v7666_v41  ;;  %v6618_v41 = vld [vmem:[%s9038_s4 + $0x120] sm:$0xff]  }
 0x25e   : >> { %5855 = vmatpush3.bf16.msra.mxu1 %v6589_v4  ;;  %6262 = vmatprep.subr.bf16.mxu0 %v7122_v38  ;;  %v8036_v4 = vld [vmem:[%s9038_s4 + $0x1f0] sm:$0xff]  }
 0x25f   : >> { %5856 = vmatprep.subr.bf16.mxu1 %v7782_v5 }
 0x261   : >> { %6263 = vmatpush3.bf16.msra.mxu0 %v7679_v44  ;;  %v6621_v44 = vld [vmem:[%s9038_s4 + $0x128] sm:$0xff]  }
 0x262   : >> { %5857 = vmatpush3.bf16.msra.mxu1 %v6591_v6  ;;  %6264 = vmatprep.subr.bf16.mxu0 %v7122_v38 }
 0x263   : >> { %5858 = vmatprep.subr.bf16.mxu1 %v7796_v8 }
 0x265   : >> { %6265 = vmatpush3.bf16.msra.mxu0 %v7692_v47  ;;  %v6624_v47 = vld [vmem:[%s9038_s4 + $0x130] sm:$0xff]  }
 0x266   : >> { %5859 = vmatpush3.bf16.msra.mxu1 %v6593_v10  ;;  %6266 = vmatprep.subr.bf16.mxu0 %v7122_v38  ;;  %v8047_v10 = vld [vmem:[%s9038_s4 + $0x1f8] sm:$0xff]  }
 0x267   : >> { %5860 = vmatprep.subr.bf16.mxu1 %v7810_v11 }
 0x269   : >> { %6267 = vmatpush3.bf16.msra.mxu0 %v7705_v50  ;;  %v6627_v50 = vld [vmem:[%s9038_s4 + $0x138] sm:$0xff]  }
 0x26a   : >> { %5861 = vmatpush3.bf16.msra.mxu1 %v6595_v12  ;;  %6268 = vmatprep.subr.bf16.mxu0 %v7122_v38 }
 0x26b   : >> { %5862 = vmatprep.subr.bf16.mxu1 %v7821_v13 }
 0x26d   : >> { %6269 = vmatpush3.bf16.msra.mxu0 %v7718_v53  ;;  %v5374_v53 = vcombine.low %v5334_v28, %v5334_v28  ;;  %v6660_v28 = vld [vmem:[%s9038_s4 + $0x20] sm:$0xff]  }
 0x26e   : >> { %5863 = vmatpush3.bf16.msra.mxu1 %v6597_v14  ;;  %6270 = vmatprep.subr.bf16.mxu0 %v7122_v38 }
 0x26f   : >> { %5864 = vmatprep.subr.bf16.mxu1 %v7832_v15  ;;  %v2845_v6 = vshll.u32 %v5374_v53, 16  ;;  %v2843_v12 = vshrl.u32 %v5374_v53, 16 }
 0x271   : >> { %6271 = vmatpush3.bf16.msra.mxu0 %v7732_v56  ;;  %v7978_v56 = vcombine.high %v5337_v52, %v5337_v52  ;;  %v2847_v14 = vrot.slane %v2845_v6, 1 }
 0x272   : >> { %5865 = vmatpush3.bf16.msra.mxu1 %v6599_v17  ;;  %6272 = vmatprep.subr.bf16.mxu0 %v7122_v38 }
 0x273   : >> { %5866 = vmatprep.subr.bf16.mxu1 %v7843_v18  ;;  %v2848_v17 = vor.u32 %v2847_v14, %v2843_v12 }
 0x275   : >> { %6273 = vmatpush3.bf16.msra.mxu0 %v7748_v61  ;;  %v8003_v61 = vld [vmem:[%s9038_s4 + $0x1d8] sm:$0xff]  }
 0x276   : >> { %5867 = vmatpush3.bf16.msra.mxu1 %v6601_v21  ;;  %6278 = vmatprep.subr.bf16.mxu0 %v7122_v38  ;;  %v6649_v21 = vld [vmem:[%s9038_s4 + $0x188] sm:$0xff]  }
 0x277   : >> { %5874 = vmatprep.subr.bf16.mxu1 %v7854_v22 }
 0x278   : >> { %6275 = vmatmul.mubr.bf16.vlgmr.msra.gmra.mrb[0].mxu0 %v2694_v23  ;;  %v2450_v23 = vshll.u32 %v7860_v25, 16 }
 0x279   : >> { %2059 = vmatmul.mubr.bf16.vlgmr.msra.gmra.mrb[4].mxu1 %v7860_v25  ;;  %6279 = vmatpush3.bf16.msra.mxu0 %v6605_v24  ;;  %v2448_v24 = vshrl.u32 %v7860_v25, 16  ;;  %v6659_v25 = vld [vmem:[%s9038_s4 + $0x18] sm:$0xff]  }
 0x27a   : >> { %5875 = vmatpush3.bf16.msra.mxu1 %v6606_v26  ;;  %6280 = vmatprep.subr.bf16.mxu0 %v7122_v38  ;;  %v2452_v26 = vrot.slane %v2450_v23, 1  ;;  %v5446_v23 = vld [vmem:[%s5179_s25 + $0x8] sm:$0x7] }
 0x27b   : >> { %5876 = vmatprep.subr.bf16.mxu1 %v7869_v27  ;;  %2233 = vmatprep.mubr.bf16.mxu1 %v5375_v29 }
 0x27c   : >> { %6294 = vmatprep.mubr.msk.bf16.mxu0 %vm7123_vm4, %v7122_v38 }
 0x27d   : >> { %6281 = vmatpush3.bf16.msra.mxu0 %v6608_v30  ;;  %v2999_v30 = vshll.u32 %v8056_v19, 16 }
 0x27e   : >> { %5877 = vmatpush3.bf16.msra.mxu1 %v6609_v31  ;;  %6282 = vmatprep.subr.bf16.mxu0 %v7122_v38  ;;  %v6662_v31 = vld [vmem:[%s9038_s4 + $0x30] sm:$0xff]  }
 0x27f   : >> { %5878 = vmatprep.subr.bf16.mxu1 %v7885_v32 }
 0x281   : >> { %6283 = vmatpush3.bf16.msra.mxu0 %v6611_v33  ;;  %v3001_v33 = vrot.slane %v2999_v30, 1 }
 0x282   : >> { %5879 = vmatpush3.bf16.msra.mxu1 %v6612_v34  ;;  %6284 = vmatprep.subr.bf16.mxu0 %v7122_v38  ;;  %v6663_v34 = vld [vmem:[%s9038_s4 + $0x38] sm:$0xff]  }
 0x283   : >> { %5880 = vmatprep.subr.bf16.mxu1 %v7900_v35 }
 0x285   : >> { %6285 = vmatpush3.bf16.msra.mxu0 %v6614_v36 }
 0x286   : >> { %5881 = vmatpush3.bf16.msra.mxu1 %v6615_v37  ;;  %6286 = vmatprep.subr.bf16.mxu0 %v7122_v38 }
 0x287   : >> { %5882 = vmatprep.subr.bf16.mxu1 %v7913_v39 }
 0x289   : >> { %6287 = vmatpush3.bf16.msra.mxu0 %v6617_v40 }
 0x28a   : >> { %5883 = vmatpush3.bf16.msra.mxu1 %v6618_v41  ;;  %6288 = vmatprep.subr.bf16.mxu0 %v7122_v38 }
 0x28b   : >> { %5884 = vmatprep.subr.bf16.mxu1 %v7926_v42 }
 0x28d   : >> { %6289 = vmatpush3.bf16.msra.mxu0 %v6620_v43 }
 0x28e   : >> { %5885 = vmatpush3.bf16.msra.mxu1 %v6621_v44  ;;  %6290 = vmatprep.subr.bf16.mxu0 %v7122_v38 }
 0x28f   : >> { %5886 = vmatprep.subr.bf16.mxu1 %v7939_v45 }
 0x291   : >> { %6291 = vmatpush3.bf16.msra.mxu0 %v6623_v46 }
 0x292   : >> { %5887 = vmatpush3.bf16.msra.mxu1 %v6624_v47  ;;  %6292 = vmatprep.subr.bf16.mxu0 %v7122_v38 }
 0x293   : >> { %5888 = vmatprep.subr.bf16.mxu1 %v7952_v48 }
 0x295   : >> { %6293 = vmatpush3.bf16.msra.mxu0 %v6626_v49 }
 0x296   : >> { %5889 = vmatpush3.bf16.msra.mxu1 %v6627_v50  ;;  %6298 = vmatprep.subr.bf16.mxu0 %v7122_v38 }
 0x297   : >> { %5896 = vmatprep.subr.bf16.mxu1 %v7965_v51 }
 0x298   : >> { %6295 = vmatmul.mubr.bf16.vlgmr.msra.gmra.mrb[0].mxu0 %v5375_v29  ;;  %v6661_v29 = vld [vmem:[%s9038_s4 + $0x28] sm:$0xff]  }
 0x299   : >> { %2234 = vmatmul.mubr.bf16.vlgmr.msra.gmra.mrb[8].mxu1 %v5374_v53  ;;  %6299 = vmatpush3.bf16.msra.mxu0 %v7854_v22  ;;  %v6650_v22 = vld [vmem:[%s9038_s4 + $0x190] sm:$0xff]  }
 0x29a   : >> { %5897 = vmatpush3.bf16.msra.mxu1 %v6631_v54  ;;  %6300 = vmatprep.subr.bf16.mxu0 %v7122_v38 }
 0x29b   : >> { %5898 = vmatprep.subr.bf16.mxu1 %v7976_v55  ;;  %2409 = vmatprep.mubr.bf16.mxu1 %v7978_v56 }
 0x29c   : >> { %6314 = vmatprep.mubr.msk.bf16.mxu0 %vm7123_vm4, %v7122_v38 }
 0x29d   : >> { %6301 = vmatpush3.bf16.msra.mxu0 %v7869_v27  ;;  %v6656_v27 = vld [vmem:[%s9038_s4] sm:$0xff]  }
 0x29e   : >> { %5899 = vmatpush3.bf16.msra.mxu1 %v6633_v57  ;;  %6302 = vmatprep.subr.bf16.mxu0 %v7122_v38  ;;  %v2418_v57 = vstv %s7287_s30 }
 0x29f   : >> { %5900 = vmatprep.subr.bf16.mxu1 %v7989_v58 }
 0x2a1   : >> { %6303 = vmatpush3.bf16.msra.mxu0 %v7885_v32  ;;  %v2997_v32 = vshrl.u32 %v8056_v19, 16 }
 0x2a2   : >> { %5901 = vmatpush3.bf16.msra.mxu1 %v6635_v60  ;;  %6304 = vmatprep.subr.bf16.mxu0 %v7122_v38  ;;  %v5410_v60 = vld [vmem:[%s9039_s5] ss:$0 sm:$0xff] }
 0x2a3   : >> { %5902 = vmatprep.subr.bf16.mxu1 %v8003_v61 }
 0x2a5   : >> { %6305 = vmatpush3.bf16.msra.mxu0 %v7900_v35  ;;  %v3002_v35 = vor.u32 %v3001_v33, %v2997_v32 }
 0x2a6   : >> { %5903 = vmatpush3.bf16.msra.mxu1 %v6637_v62  ;;  %6306 = vmatprep.subr.bf16.mxu0 %v7122_v38 }
 0x2a7   : >> { %5904 = vmatprep.subr.bf16.mxu1 %v8014_v63 }
 0x2a9   : >> { %6307 = vmatpush3.bf16.msra.mxu0 %v7913_v39 }
 0x2aa   : >> { %5905 = vmatpush3.bf16.msra.mxu1 %v6639_v59  ;;  %6308 = vmatprep.subr.bf16.mxu0 %v7122_v38 }
 0x2ab   : >> { %5906 = vmatprep.subr.bf16.mxu1 %v8025_v1 }
 0x2ad   : >> { %6309 = vmatpush3.bf16.msra.mxu0 %v7926_v42 }
 0x2ae   : >> { %5907 = vmatpush3.bf16.msra.mxu1 %v6641_v2  ;;  %6310 = vmatprep.subr.bf16.mxu0 %v7122_v38 }
 0x2af   : >> { %5908 = vmatprep.subr.bf16.mxu1 %v8036_v4 }
 0x2b1   : >> { %6311 = vmatpush3.bf16.msra.mxu0 %v7939_v45 }
 0x2b2   : >> { %5909 = vmatpush3.bf16.msra.mxu1 %v6643_v7  ;;  %6312 = vmatprep.subr.bf16.mxu0 %v7122_v38 }
 0x2b3   : >> { %5910 = vmatprep.subr.bf16.mxu1 %v8047_v10 }
 0x2b5   : >> { %6313 = vmatpush3.bf16.msra.mxu0 %v7952_v48 }
 0x2b6   : >> { %5911 = vmatpush3.bf16.msra.mxu1 %v6645_v16  ;;  %6318 = vmatprep.subr.bf16.mxu0 %v7122_v38 }
 0x2b7   : >> { %6198 = vmatprep.subr.bf16.mxu1 %v7122_v38 }
 0x2b8   : >> { %6315 = vmatmul.mubr.bf16.vlgmr.msra.gmra.mrb[0].mxu0 %v2848_v17 }
 0x2b9   : >> { %2410 = vmatmul.mubr.bf16.vlgmr.msra.gmra.mrb[12].mxu1 %v8056_v19  ;;  %6319 = vmatpush3.bf16.msra.mxu0 %v6648_v20 }
 0x2ba   : >> { %6199 = vmatpush3.bf16.msra.mxu1 %v7761_v0  ;;  %6320 = vmatprep.subr.bf16.mxu0 %v7122_v38  ;;  %v6651_v0 = vld [vmem:[%s9038_s4 + $0x198] sm:$0xff]  }
 0x2bb   : >> { %6200 = vmatprep.subr.bf16.mxu1 %v7122_v38  ;;  %6334 = vmatprep.mubr.msk.bf16.mxu0 %vm7123_vm4, %v7122_v38 }
 0x2bc   : >> { %6214 = vmatprep.mubr.msk.bf16.mxu1 %vm7123_vm4, %v7122_v38 }
 0x2bd   : >> { %6321 = vmatpush3.bf16.msra.mxu0 %v6649_v21 }
 0x2be   : >> { %6201 = vmatpush3.bf16.msra.mxu1 %v7771_v3  ;;  %6322 = vmatprep.subr.bf16.mxu0 %v7122_v38  ;;  %v6652_v3 = vld [vmem:[%s9038_s4 + $0x1a0] sm:$0xff]  }
 0x2bf   : >> { %6202 = vmatprep.subr.bf16.mxu1 %v7122_v38 }
 0x2c1   : >> { %6323 = vmatpush3.bf16.msra.mxu0 %v6650_v22 }
 0x2c2   : >> { %6203 = vmatpush3.bf16.msra.mxu1 %v7782_v5  ;;  %6324 = vmatprep.subr.bf16.mxu0 %v7122_v38  ;;  %v6653_v5 = vld [vmem:[%s9038_s4 + $0x1a8] sm:$0xff]  }
 0x2c3   : >> { %6204 = vmatprep.subr.bf16.mxu1 %v7122_v38 }
 0x2c5   : >> { %6325 = vmatpush3.bf16.msra.mxu0 %v6651_v0 }
 0x2c6   : >> { %6205 = vmatpush3.bf16.msra.mxu1 %v7796_v8  ;;  %6326 = vmatprep.subr.bf16.mxu0 %v7122_v38  ;;  %v6654_v8 = vld [vmem:[%s9038_s4 + $0x1b0] sm:$0xff]  }
 0x2c7   : >> { %6206 = vmatprep.subr.bf16.mxu1 %v7122_v38 }
 0x2c9   : >> { %6327 = vmatpush3.bf16.msra.mxu0 %v6652_v3 }
 0x2ca   : >> { %6207 = vmatpush3.bf16.msra.mxu1 %v7810_v11  ;;  %6328 = vmatprep.subr.bf16.mxu0 %v7122_v38  ;;  %v6655_v11 = vld [vmem:[%s9038_s4 + $0x1b8] sm:$0xff]  }
 0x2cb   : >> { %6208 = vmatprep.subr.bf16.mxu1 %v7122_v38 }
 0x2cd   : >> { %6329 = vmatpush3.bf16.msra.mxu0 %v6653_v5 }
 0x2ce   : >> { %6209 = vmatpush3.bf16.msra.mxu1 %v7821_v13  ;;  %6330 = vmatprep.subr.bf16.mxu0 %v7122_v38  ;;  %v2453_v13 = vor.u32 %v2452_v26, %v2448_v24  ;;  %v8179_v26 = vmov (%p1692_p2), 0.0  }
 0x2cf   : >> { %6210 = vmatprep.subr.bf16.mxu1 %v7122_v38 }
 0x2d1   : >> { %6331 = vmatpush3.bf16.msra.mxu0 %v6654_v8 }
 0x2d2   : >> { %6211 = vmatpush3.bf16.msra.mxu1 %v7832_v15  ;;  %6332 = vmatprep.subr.bf16.mxu0 %v7122_v38  ;;  %v6657_v15 = vld [vmem:[%s9038_s4 + $0x8] sm:$0xff]  }
 0x2d3   : >> { %6212 = vmatprep.subr.bf16.mxu1 %v7122_v38 }
 0x2d5   : >> { %6333 = vmatpush3.bf16.msra.mxu0 %v6655_v11 }
 0x2d6   : >> { %6213 = vmatpush3.bf16.msra.mxu1 %v7843_v18  ;;  %6338 = vmatprep.subr.bf16.mxu0 %v7122_v38  ;;  %v6658_v18 = vld [vmem:[%s9038_s4 + $0x10] sm:$0xff]  }
 0x2d7   : >> { %6218 = vmatprep.subr.bf16.mxu1 %v7122_v38 }
 0x2d8   : >> { %6335 = vmatmul.mubr.bf16.vlgmr.msra.gmra.mrb[0].mxu0 %v7978_v56 }
 0x2d9   : >> { %6339 = vmatpush3.bf16.msra.mxu0 %v7965_v51  ;;  %6215 = vmatmul.mubr.bf16.vlgmr.msra.gmra.mrb[16].mxu1 %v2453_v13 }
 0x2da   : >> { %6219 = vmatpush3.bf16.msra.mxu1 %v6656_v27  ;;  %6340 = vmatprep.subr.bf16.mxu0 %v7122_v38 }
 0x2db   : >> { %6220 = vmatprep.subr.bf16.mxu1 %v7122_v38  ;;  %6354 = vmatprep.mubr.msk.bf16.mxu0 %vm7123_vm4, %v7122_v38 }
 0x2dc   : >> { %6234 = vmatprep.mubr.msk.bf16.mxu1 %vm7123_vm4, %v7122_v38 }
 0x2dd   : >> { %6341 = vmatpush3.bf16.msra.mxu0 %v7976_v55 }
 0x2de   : >> { %6221 = vmatpush3.bf16.msra.mxu1 %v6657_v15  ;;  %6342 = vmatprep.subr.bf16.mxu0 %v7122_v38 }
 0x2df   : >> { %6222 = vmatprep.subr.bf16.mxu1 %v7122_v38 }
 0x2e1   : >> { %6343 = vmatpush3.bf16.msra.mxu0 %v7989_v58 }
 0x2e2   : >> { %6223 = vmatpush3.bf16.msra.mxu1 %v6658_v18  ;;  %6344 = vmatprep.subr.bf16.mxu0 %v7122_v38 }
 0x2e3   : >> { %6224 = vmatprep.subr.bf16.mxu1 %v7122_v38 }
 0x2e5   : >> { %6345 = vmatpush3.bf16.msra.mxu0 %v8003_v61 }
 0x2e6   : >> { %6225 = vmatpush3.bf16.msra.mxu1 %v6659_v25  ;;  %6346 = vmatprep.subr.bf16.mxu0 %v7122_v38 }
 0x2e7   : >> { %6226 = vmatprep.subr.bf16.mxu1 %v7122_v38 }
 0x2e9   : >> { %6347 = vmatpush3.bf16.msra.mxu0 %v8014_v63 }
 0x2ea   : >> { %6227 = vmatpush3.bf16.msra.mxu1 %v6660_v28  ;;  %6348 = vmatprep.subr.bf16.mxu0 %v7122_v38 }
 0x2eb   : >> { %6228 = vmatprep.subr.bf16.mxu1 %v7122_v38 }
 0x2ed   : >> { %6349 = vmatpush3.bf16.msra.mxu0 %v8025_v1 }
 0x2ee   : >> { %6229 = vmatpush3.bf16.msra.mxu1 %v6661_v29  ;;  %6350 = vmatprep.subr.bf16.mxu0 %v7122_v38 }
 0x2ef   : >> { %6230 = vmatprep.subr.bf16.mxu1 %v7122_v38 }
 0x2f1   : >> { %6351 = vmatpush3.bf16.msra.mxu0 %v8036_v4 }
 0x2f2   : >> { %6231 = vmatpush3.bf16.msra.mxu1 %v6662_v31  ;;  %6352 = vmatprep.subr.bf16.mxu0 %v7122_v38 }
 0x2f3   : >> { %6232 = vmatprep.subr.bf16.mxu1 %v7122_v38 }
 0x2f5   : >> { %6353 = vmatpush3.bf16.msra.mxu0 %v8047_v10 }
 0x2f6   : >> { %6233 = vmatpush3.bf16.msra.mxu1 %v6663_v34 }
 0x2f8   : >> { %6355 = vmatmul.mubr.bf16.vlgmr.msra.gmra.mrb[0].mxu0 %v3002_v35 }
 0x2f9   : >> { %6235 = vmatmul.mubr.bf16.vlgmr.msra.gmra.mrb[16].mxu1 %v7798_v9 }
 0x32c   : >> { %v5846_v36 = vpop.f32.mrb[0].mxu1 }
 0x32d   : >> { %v5847_v37 = vpop.f32.mrb[1].mxu1 }
 0x32e   : >> { %v5848_v39 = vadd.f32 %v5847_v37, %v5846_v36  ;;  %v5849_v40 = vpop.f32.mrb[2].mxu1 }
 0x32f   : >> { %v5850_v41 = vpop.f32.mrb[3].mxu1 }
 0x34c   : >> { %v5868_v42 = vpop.f32.mrb[4].mxu1 }
 0x34d   : >> { %v5869_v43 = vpop.f32.mrb[5].mxu1 }
 0x34e   : >> { %v5870_v44 = vadd.f32 %v5869_v43, %v5868_v42  ;;  %v5871_v45 = vpop.f32.mrb[6].mxu1 }
 0x34f   : >> { %v5872_v46 = vpop.f32.mrb[7].mxu1 }
 0x350   : >> { %v2061_v47 = vadd.f32 %v5870_v44, %v5848_v39 }
 0x36c   : >> { %v5890_v38 = vpop.f32.mrb[8].mxu1 }
 0x36d   : >> { %v5891_v48 = vpop.f32.mrb[9].mxu1 }
 0x36e   : >> { %v5892_v49 = vadd.f32 %v5891_v48, %v5890_v38  ;;  %v5893_v50 = vpop.f32.mrb[10].mxu1 }
 0x36f   : >> { %v5894_v51 = vpop.f32.mrb[11].mxu1 }
 0x370   : >> { %v2241_v52 = vadd.f32 %v5892_v49, %v2061_v47 }
 0x38c   : >> { %v5912_v9 = vpop.f32.mrb[12].mxu1 }
 0x38d   : >> { %v5913_v53 = vpop.f32.mrb[13].mxu1 }
 0x38e   : >> { %v5914_v54 = vadd.f32 %v5913_v53, %v5912_v9  ;;  %v5915_v55 = vpop.f32.mrb[14].mxu1 }
 0x38f   : >> { %v5916_v56 = vpop.f32.mrb[15].mxu1 }
 0x390   : >> { %v2417_v58 = vadd.f32 %v5914_v54, %v2241_v52 }
 0x392   : >> { %v2419_v61 = vmul.f32 %v2418_v57, %v2417_v58 }
 0x394   : >> { %v2427_v62 = vadd.f32 %v5410_v60, %v2419_v61 }
 0x396   : >> { %vm2428_vm5 = vcmp.ge.f32.partialorder %v2427_v62, 0.0  ;;  %v2429_v63 = vmul.f32 0.01, %v2427_v62 }
 0x398   : >> { %v2430_v59 = vsel %vm2428_vm5, %v2427_v62, %v2429_v63 }
 0x399   : >> { %v3050_v1 = vpack.c.bf16 %v2430_v59, %v2430_v59 }
 0x39b   : >> { %5444 = vst [vmem:[%s5179_s25 + $0xc] sm:$0x3] %v3050_v1 }
 0x3cb   : >> { %v3038_v2 = vpop.f32.mrb[0].mxu0 }
 0x3cc   : >> { %v2577_v4 = vpop.f32.mrb[16].mxu1  ;;  %v6356_v6 = vpop.f32.mrb[1].mxu0 }
 0x3cd   : >> { %v6422_v7 = vadd.f32 %v3038_v2, %v2577_v4  ;;  %v6236_v10 = vpop.f32.mrb[17].mxu1  ;;  %v3041_v12 = vpop.f32.mrb[2].mxu0 }
 0x3ce   : >> { %v2580_v14 = vpop.f32.mrb[18].mxu1  ;;  %v6357_v16 = vpop.f32.mrb[3].mxu0 }
 0x3cf   : >> { %v3045_v17 = vmul.f32 %v6422_v7, %v2418_v57  ;;  %v6237_v19 = vpop.f32.mrb[19].mxu1 }
 0x3d1   : >> { %v3046_v20 = vadd.f32 %v5410_v60, %v3045_v17 }
 0x3d3   : >> { %vm3047_vm6 = vcmp.ge.f32.partialorder %v3046_v20, 0.0  ;;  %v3048_v21 = vmul.f32 0.01, %v3046_v20 }
 0x3d5   : >> { %v3049_v22 = vsel %vm3047_vm6, %v3046_v20, %v3048_v21 }
 0x3d6   : >> { %v5739_v0 = vpack.c.bf16 %v3049_v22, %v3049_v22 }
 0x3d8   : >> { %v3061_v3 = vshrl.u32 %v5739_v0, 16  ;;  %v3064_v8 = vshll.u32 %v5739_v0, 16 }
 0x3d9   : > { %1694 = sbr.rel (!%p1692_p2) target bundleno = 567 (0x237), region = 142 }
 0x3da   : >> { %v3063_v5 = vrot.slane %v3061_v3, 7 }
 0x3dc   : >> { %v3066_v11 = vor.u32 %v3064_v8, %v3063_v5 }
 0x3de   : >> { %v3071_v24 = vsel %vm3069_vm7, %v3066_v11, %v5446_v23 }
 0x3df   : >> { %5447 = vst [vmem:[%s5179_s25 + $0x8] sm:$0x7] %v3071_v24 }
 0x3e0 LB: >> { %v6664_v13 = vld [vmem:[%s9040_s6 + $0x104] ss:$8 sps:$4 sm:$0xff]   ;;  %v6668_v15 = vld [vmem:[%s9040_s6 + $0x100] ss:$8 sps:$4 sm:$0xff]   ;;  %v6670_v25 = vld [vmem:[%s9040_s6 + $0x114] ss:$8 sps:$4 sm:$0xff]   ;;  %s7114_s22 = sphi %s8181_s22, %s3078_s22   ;;  %v7110_v26 = vphi %v8179_v26, %v9048_v26  }
 0x3e1   : >> { %v6666_v27 = vld [vmem:[%s9040_s6 + $0x404] ss:$8 sps:$4 sm:$0xff]   ;;  %3345 = vmatprep.subr.bf16.mxu1 %v6664_v13  ;;  %v6669_v18 = vld [vmem:[%s9040_s6 + $0x400] ss:$8 sps:$4 sm:$0xff]   ;;  %v6672_v28 = vld [vmem:[%s9040_s6 + $0x414] ss:$8 sps:$4 sm:$0xff]  }
 0x3e2   : >> { %4281 = vmatprep.subr.bf16.mxu0 %v6666_v27  ;;  %3346 = vmatpush1.bf16.msra.mxu1 %v6668_v15  ;;  %v6674_v29 = vld [vmem:[%s9040_s6 + $0x110] ss:$8 sps:$4 sm:$0xff]   ;;  %v6676_v31 = vld [vmem:[%s9040_s6 + $0x124] ss:$8 sps:$4 sm:$0xff]   ;;  %v6680_v33 = vld [vmem:[%s9040_s6 + $0x120] ss:$8 sps:$4 sm:$0xff]  }
 0x3e3   : >> { %4282 = vmatpush1.bf16.msra.mxu0 %v6669_v18  ;;  %3347 = vmatprep.subr.bf16.mxu1 %v6670_v25  ;;  %v6675_v30 = vld [vmem:[%s9040_s6 + $0x410] ss:$8 sps:$4 sm:$0xff]   ;;  %v6678_v32 = vld [vmem:[%s9040_s6 + $0x424] ss:$8 sps:$4 sm:$0xff]   ;;  %v6681_v34 = vld [vmem:[%s9040_s6 + $0x420] ss:$8 sps:$4 sm:$0xff]  }
 0x3e4   : >> { %4283 = vmatprep.subr.bf16.mxu0 %v6672_v28  ;;  %v6682_v35 = vld [vmem:[%s9040_s6 + $0x134] ss:$8 sps:$4 sm:$0xff]   ;;  %v6686_v37 = vld [vmem:[%s9040_s6 + $0x130] ss:$8 sps:$4 sm:$0xff]   ;;  %v6688_v40 = vld [vmem:[%s9040_s6 + $0x144] ss:$8 sps:$4 sm:$0xff]  }
 0x3e5   : >> { %v6684_v36 = vld [vmem:[%s9040_s6 + $0x434] ss:$8 sps:$4 sm:$0xff]   ;;  %v6687_v39 = vld [vmem:[%s9040_s6 + $0x430] ss:$8 sps:$4 sm:$0xff]   ;;  %v6690_v41 = vld [vmem:[%s9040_s6 + $0x444] ss:$8 sps:$4 sm:$0xff]  }
 0x3e6   : >> { %3348 = vmatpush1.bf16.msra.mxu1 %v6674_v29  ;;  %v6692_v42 = vld [vmem:[%s9040_s6 + $0x140] ss:$8 sps:$4 sm:$0xff]   ;;  %v6694_v44 = vld [vmem:[%s9040_s6 + $0x154] ss:$8 sps:$4 sm:$0xff]   ;;  %v6698_v46 = vld [vmem:[%s9040_s6 + $0x150] ss:$8 sps:$4 sm:$0xff]  }
 0x3e7   : >> { %4284 = vmatpush1.bf16.msra.mxu0 %v6675_v30  ;;  %3349 = vmatprep.subr.bf16.mxu1 %v6676_v31  ;;  %v6693_v43 = vld [vmem:[%s9040_s6 + $0x440] ss:$8 sps:$4 sm:$0xff]   ;;  %v6696_v45 = vld [vmem:[%s9040_s6 + $0x454] ss:$8 sps:$4 sm:$0xff]   ;;  %v6699_v47 = vld [vmem:[%s9040_s6 + $0x450] ss:$8 sps:$4 sm:$0xff]  }
 0x3e8   : >> { %4285 = vmatprep.subr.bf16.mxu0 %v6678_v32  ;;  %v6700_v38 = vld [vmem:[%s9040_s6 + $0x164] ss:$8 sps:$4 sm:$0xff]   ;;  %v6704_v49 = vld [vmem:[%s9040_s6 + $0x160] ss:$8 sps:$4 sm:$0xff]   ;;  %v6706_v51 = vld [vmem:[%s9040_s6 + $0x174] ss:$8 sps:$4 sm:$0xff]  }
 0x3e9   : >> { %v6702_v48 = vld [vmem:[%s9040_s6 + $0x464] ss:$8 sps:$4 sm:$0xff]   ;;  %v6705_v50 = vld [vmem:[%s9040_s6 + $0x460] ss:$8 sps:$4 sm:$0xff]   ;;  %v6708_v52 = vld [vmem:[%s9040_s6 + $0x474] ss:$8 sps:$4 sm:$0xff]  }
 0x3ea   : >> { %3350 = vmatpush1.bf16.msra.mxu1 %v6680_v33  ;;  %v6710_v9 = vld [vmem:[%s9040_s6 + $0x170] ss:$8 sps:$4 sm:$0xff]   ;;  %v6712_v54 = vld [vmem:[%s9040_s6 + $0x184] ss:$8 sps:$4 sm:$0xff]   ;;  %v6716_v56 = vld [vmem:[%s9040_s6 + $0x180] ss:$8 sps:$4 sm:$0xff]  }
 0x3eb   : >> { %4286 = vmatpush1.bf16.msra.mxu0 %v6681_v34  ;;  %3351 = vmatprep.subr.bf16.mxu1 %v6682_v35  ;;  %v6711_v53 = vld [vmem:[%s9040_s6 + $0x470] ss:$8 sps:$4 sm:$0xff]   ;;  %v6714_v55 = vld [vmem:[%s9040_s6 + $0x484] ss:$8 sps:$4 sm:$0xff]   ;;  %v6717_v57 = vld [vmem:[%s9040_s6 + $0x480] ss:$8 sps:$4 sm:$0xff]  }
 0x3ec   : >> { %4287 = vmatprep.subr.bf16.mxu0 %v6684_v36  ;;  %v6718_v58 = vld [vmem:[%s9040_s6 + $0x194] ss:$8 sps:$4 sm:$0xff]   ;;  %v6722_v61 = vld [vmem:[%s9040_s6 + $0x190] ss:$8 sps:$4 sm:$0xff]   ;;  %v6724_v63 = vld [vmem:[%s9040_s6 + $0x1a4] ss:$8 sps:$4 sm:$0xff]  }
 0x3ed   : >> { %v6720_v60 = vld [vmem:[%s9040_s6 + $0x494] ss:$8 sps:$4 sm:$0xff]   ;;  %v6723_v62 = vld [vmem:[%s9040_s6 + $0x490] ss:$8 sps:$4 sm:$0xff]   ;;  %s5741_s28 = sshll.u32 %s7114_s22, 4  ;;  %vm5099_vm9 = vcmask 1043456  }
 0x3ee   : >> { %3352 = vmatpush1.bf16.msra.mxu1 %v6686_v37  ;;  %v6726_v59 = vld [vmem:[%s9040_s6 + $0x4a4] ss:$8 sps:$4 sm:$0xff]   ;;  %v6728_v1 = vld [vmem:[%s9040_s6 + $0x1a0] ss:$8 sps:$4 sm:$0xff]   ;;  %v6730_v4 = vld [vmem:[%s9040_s6 + $0x1b4] ss:$8 sps:$4 sm:$0xff]  }
 0x3ef   : >> { %4288 = vmatpush1.bf16.msra.mxu0 %v6687_v39  ;;  %3353 = vmatprep.subr.bf16.mxu1 %v6688_v40  ;;  %v6729_v2 = vld [vmem:[%s9040_s6 + $0x4a0] ss:$8 sps:$4 sm:$0xff]   ;;  %v6732_v6 = vld [vmem:[%s9040_s6 + $0x4b4] ss:$8 sps:$4 sm:$0xff]   ;;  %v6734_v7 = vld [vmem:[%s9040_s6 + $0x1b0] ss:$8 sps:$4 sm:$0xff]  }
 0x3f0   : >> { %4289 = vmatprep.subr.bf16.mxu0 %v6690_v41  ;;  %s8331_s19 = scalar_lea.vmem [#allocation3], %s5741_s28  ;;  %v6735_v12 = vld [vmem:[%s9040_s6 + $0x4b0] ss:$8 sps:$4 sm:$0xff]   ;;  %v6736_v16 = vld [vmem:[%s9040_s6 + $0x1c4] ss:$8 sps:$4 sm:$0xff]  }
 0x3f1   : >> { %v3084_v10 = vld [vmem:[%s8331_s19] sm:$0x77]  ;;  %v5456_v17 = vld [vmem:[%s8331_s19 + $0x10] sm:$0x77] }
 0x3f2   : >> { %3354 = vmatpush1.bf16.msra.mxu1 %v6692_v42  ;;  %v8337_v14 = vcombine.high %v3084_v10, %v3084_v10  ;;  %v6738_v19 = vld [vmem:[%s9040_s6 + $0x4c4] ss:$8 sps:$4 sm:$0xff]   ;;  %v5593_v22 = vcombine.high %v5456_v17, %v5456_v17  ;;  %v6740_v0 = vld [vmem:[%s9040_s6 + $0x1c0] ss:$8 sps:$4 sm:$0xff]   ;;  %v6742_v8 = vld [vmem:[%s9040_s6 + $0x1d4] ss:$8 sps:$4 sm:$0xff]   ;;  %v8366_v27 = vcombine.low %v3084_v10, %v3084_v10 }
 0x3f3   : >> { %4290 = vmatpush1.bf16.msra.mxu0 %v6693_v43  ;;  %3355 = vmatprep.subr.bf16.mxu1 %v6694_v44  ;;  %v6741_v5 = vld [vmem:[%s9040_s6 + $0x4c0] ss:$8 sps:$4 sm:$0xff]   ;;  %v6744_v23 = vld [vmem:[%s9040_s6 + $0x4d4] ss:$8 sps:$4 sm:$0xff]   ;;  %v6746_v24 = vld [vmem:[%s9040_s6 + $0x1d0] ss:$8 sps:$4 sm:$0xff]  }
 0x3f4   : >> { %4291 = vmatprep.subr.bf16.mxu0 %v6696_v45  ;;  %v3177_v20 = vshrl.u32 %v8337_v14, 16  ;;  %v3179_v21 = vshll.u32 %v8337_v14, 16  ;;  %4313 = vmatprep.mubr.bf16.mxu0 %v5593_v22  ;;  %v6747_v13 = vld [vmem:[%s9040_s6 + $0x4d0] ss:$8 sps:$4 sm:$0xff]   ;;  %v6748_v15 = vld [vmem:[%s9040_s6 + $0x1e4] ss:$8 sps:$4 sm:$0xff]   ;;  %v8406_v45 = vcombine.low %v5456_v17, %v5456_v17 }
 0x3f5   : >> { %v6750_v18 = vld [vmem:[%s9040_s6 + $0x4e4] ss:$8 sps:$4 sm:$0xff]   ;;  %v6752_v25 = vld [vmem:[%s9040_s6 + $0x1e0] ss:$8 sps:$4 sm:$0xff]   ;;  %v3172_v29 = vshll.u32 %v8366_v27, 16  ;;  %v4366_v33 = vshll.u32 %v5593_v22, 16 }
 0x3f6   : >> { %3356 = vmatpush1.bf16.msra.mxu1 %v6698_v46  ;;  %v3181_v3 = vrot.slane %v3179_v21, 1  ;;  %v6753_v28 = vld [vmem:[%s9040_s6 + $0x4e0] ss:$8 sps:$4 sm:$0xff]   ;;  %v6754_v30 = vld [vmem:[%s9040_s6 + $0x1f4] ss:$8 sps:$4 sm:$0xff]   ;;  %v3170_v35 = vshrl.u32 %v8366_v27, 16 }
 0x3f7   : >> { %4292 = vmatpush1.bf16.msra.mxu0 %v6699_v47  ;;  %3357 = vmatprep.subr.bf16.mxu1 %v6700_v38  ;;  %v6756_v31 = vld [vmem:[%s9040_s6 + $0x4f4] ss:$8 sps:$4 sm:$0xff]   ;;  %v6758_v32 = vld [vmem:[%s9040_s6 + $0x1f0] ss:$8 sps:$4 sm:$0xff]   ;;  %v3174_v36 = vrot.slane %v3172_v29, 1  ;;  %v4364_v40 = vshrl.u32 %v5593_v22, 16 }
 0x3f8   : >> { %4293 = vmatprep.subr.bf16.mxu0 %v6702_v48  ;;  %v3182_v11 = vor.u32 %v3181_v3, %v3177_v20  ;;  %v6759_v34 = vld [vmem:[%s9040_s6 + $0x4f0] ss:$8 sps:$4 sm:$0xff]   ;;  %v6764_v37 = vld [vmem:[%s9040_s6 + $0x4] ss:$8 sps:$4 sm:$0xff]   ;;  %v4368_v41 = vrot.slane %v4366_v33, 1 }
 0x3f9   : >> { %v6768_v39 = vld [vmem:[%s9040_s6 + $0x504] ss:$8 sps:$4 sm:$0xff]   ;;  %v6762_v42 = vld [vmem:[%s9040_s6] ss:$8 sps:$4 sm:$0xff]   ;;  %v3175_v44 = vor.u32 %v3174_v36, %v3170_v35  ;;  %v6772_v46 = vld [vmem:[%s9040_s6 + $0x14] ss:$8 sps:$4 sm:$0xff]  }
 0x3fa   : >> { %3358 = vmatpush1.bf16.msra.mxu1 %v6704_v49  ;;  %3377 = vmatprep.mubr.bf16.mxu1 %v3182_v11  ;;  %v6766_v43 = vld [vmem:[%s9040_s6 + $0x500] ss:$8 sps:$4 sm:$0xff]   ;;  %v6775_v47 = vld [vmem:[%s9040_s6 + $0x514] ss:$8 sps:$4 sm:$0xff]   ;;  %v4369_v38 = vor.u32 %v4368_v41, %v4364_v40  ;;  %v6770_v48 = vld [vmem:[%s9040_s6 + $0x10] ss:$8 sps:$4 sm:$0xff]  }
 0x3fb   : >> { %4294 = vmatpush1.bf16.msra.mxu0 %v6705_v50  ;;  %3359 = vmatprep.subr.bf16.mxu1 %v6706_v51  ;;  %v6773_v49 = vld [vmem:[%s9040_s6 + $0x510] ss:$8 sps:$4 sm:$0xff]   ;;  %v6778_v50 = vld [vmem:[%s9040_s6 + $0x24] ss:$8 sps:$4 sm:$0xff]   ;;  %v6808_v10 = vld [vmem:[%s9040_s6 + $0x74] ss:$8 sps:$4 sm:$0xff]  }
 0x3fc   : >> { %4295 = vmatprep.subr.bf16.mxu0 %v6708_v52  ;;  %v6781_v51 = vld [vmem:[%s9040_s6 + $0x524] ss:$8 sps:$4 sm:$0xff]   ;;  %v6776_v52 = vld [vmem:[%s9040_s6 + $0x20] ss:$8 sps:$4 sm:$0xff]   ;;  %v6820_v22 = vld [vmem:[%s9040_s6 + $0x94] ss:$8 sps:$4 sm:$0xff]  }
 0x3fd   : >> { %v6814_v17 = vld [vmem:[%s9040_s6 + $0x84] ss:$8 sps:$4 sm:$0xff]   ;;  %v6812_v20 = vld [vmem:[%s9040_s6 + $0x80] ss:$8 sps:$4 sm:$0xff]   ;;  %v6818_v3 = vld [vmem:[%s9040_s6 + $0x90] ss:$8 sps:$4 sm:$0xff]  }
 0x3fe   : >> { %3360 = vmatpush1.bf16.msra.mxu1 %v6710_v9  ;;  %v6779_v9 = vld [vmem:[%s9040_s6 + $0x520] ss:$8 sps:$4 sm:$0xff]   ;;  %v6841_v29 = vld [vmem:[%s9040_s6 + $0x5c4] ss:$8 sps:$4 sm:$0xff]   ;;  %v6847_v33 = vld [vmem:[%s9040_s6 + $0x5d4] ss:$8 sps:$4 sm:$0xff]  }
 0x3ff   : >> { %4296 = vmatpush1.bf16.msra.mxu0 %v6711_v53  ;;  %3361 = vmatprep.subr.bf16.mxu1 %v6712_v54  ;;  %v6784_v53 = vld [vmem:[%s9040_s6 + $0x34] ss:$8 sps:$4 sm:$0xff]   ;;  %v6815_v21 = vld [vmem:[%s9040_s6 + $0x580] ss:$8 sps:$4 sm:$0xff]   ;;  %v6845_v35 = vld [vmem:[%s9040_s6 + $0x5d0] ss:$8 sps:$4 sm:$0xff]  }
 0x400   : >> { %4297 = vmatprep.subr.bf16.mxu0 %v6714_v55  ;;  %v6787_v54 = vld [vmem:[%s9040_s6 + $0x534] ss:$8 sps:$4 sm:$0xff]   ;;  %v6782_v55 = vld [vmem:[%s9040_s6 + $0x30] ss:$8 sps:$4 sm:$0xff]   ;;  %v6824_v11 = vld [vmem:[%s9040_s6 + $0xa0] ss:$8 sps:$4 sm:$0xff]  }
 0x401   : >> { %v6850_v36 = vld [vmem:[%s9040_s6 + $0xe4] ss:$8 sps:$4 sm:$0xff]   ;;  %v6848_v40 = vld [vmem:[%s9040_s6 + $0xe0] ss:$8 sps:$4 sm:$0xff]  }
 0x402   : >> { %3362 = vmatpush1.bf16.msra.mxu1 %v6716_v56  ;;  %v6785_v56 = vld [vmem:[%s9040_s6 + $0x530] ss:$8 sps:$4 sm:$0xff]   ;;  %v6851_v41 = vld [vmem:[%s9040_s6 + $0x5e0] ss:$8 sps:$4 sm:$0xff]  }
 0x403   : >> { %4298 = vmatpush1.bf16.msra.mxu0 %v6717_v57  ;;  %3363 = vmatprep.subr.bf16.mxu1 %v6718_v58  ;;  %v6790_v57 = vld [vmem:[%s9040_s6 + $0x44] ss:$8 sps:$4 sm:$0xff]  }
 0x404   : >> { %4299 = vmatprep.subr.bf16.mxu0 %v6720_v60  ;;  %v6793_v58 = vld [vmem:[%s9040_s6 + $0x544] ss:$8 sps:$4 sm:$0xff]   ;;  %v6788_v60 = vld [vmem:[%s9040_s6 + $0x40] ss:$8 sps:$4 sm:$0xff]  }
 0x406   : >> { %3364 = vmatpush1.bf16.msra.mxu1 %v6722_v61  ;;  %v6791_v61 = vld [vmem:[%s9040_s6 + $0x540] ss:$8 sps:$4 sm:$0xff]  }
 0x407   : >> { %4300 = vmatpush1.bf16.msra.mxu0 %v6723_v62  ;;  %3365 = vmatprep.subr.bf16.mxu1 %v6724_v63  ;;  %v6796_v62 = vld [vmem:[%s9040_s6 + $0x54] ss:$8 sps:$4 sm:$0xff]  }
 0x408   : >> { %4301 = vmatprep.subr.bf16.mxu0 %v6726_v59  ;;  %v6799_v63 = vld [vmem:[%s9040_s6 + $0x554] ss:$8 sps:$4 sm:$0xff]   ;;  %v6794_v59 = vld [vmem:[%s9040_s6 + $0x50] ss:$8 sps:$4 sm:$0xff]  }
 0x40a   : >> { %3366 = vmatpush1.bf16.msra.mxu1 %v6728_v1  ;;  %v6797_v1 = vld [vmem:[%s9040_s6 + $0x550] ss:$8 sps:$4 sm:$0xff]  }
 0x40b   : >> { %4302 = vmatpush1.bf16.msra.mxu0 %v6729_v2  ;;  %3367 = vmatprep.subr.bf16.mxu1 %v6730_v4  ;;  %v6802_v2 = vld [vmem:[%s9040_s6 + $0x64] ss:$8 sps:$4 sm:$0xff]  }
 0x40c   : >> { %4303 = vmatprep.subr.bf16.mxu0 %v6732_v6  ;;  %v6805_v4 = vld [vmem:[%s9040_s6 + $0x564] ss:$8 sps:$4 sm:$0xff]   ;;  %v6800_v6 = vld [vmem:[%s9040_s6 + $0x60] ss:$8 sps:$4 sm:$0xff]  }
 0x40e   : >> { %3368 = vmatpush1.bf16.msra.mxu1 %v6734_v7  ;;  %v6803_v7 = vld [vmem:[%s9040_s6 + $0x560] ss:$8 sps:$4 sm:$0xff]  }
 0x40f   : >> { %4304 = vmatpush1.bf16.msra.mxu0 %v6735_v12  ;;  %3369 = vmatprep.subr.bf16.mxu1 %v6736_v16  ;;  %v6811_v12 = vld [vmem:[%s9040_s6 + $0x574] ss:$8 sps:$4 sm:$0xff]   ;;  %v6809_v16 = vld [vmem:[%s9040_s6 + $0x570] ss:$8 sps:$4 sm:$0xff]  }
 0x410   : >> { %4305 = vmatprep.subr.bf16.mxu0 %v6738_v19  ;;  %v6817_v19 = vld [vmem:[%s9040_s6 + $0x584] ss:$8 sps:$4 sm:$0xff]  }
 0x412   : >> { %3370 = vmatpush1.bf16.msra.mxu1 %v6740_v0  ;;  %v6823_v0 = vld [vmem:[%s9040_s6 + $0x594] ss:$8 sps:$4 sm:$0xff]  }
 0x413   : >> { %4306 = vmatpush1.bf16.msra.mxu0 %v6741_v5  ;;  %3371 = vmatprep.subr.bf16.mxu1 %v6742_v8  ;;  %v6821_v5 = vld [vmem:[%s9040_s6 + $0x590] ss:$8 sps:$4 sm:$0xff]   ;;  %v6826_v8 = vld [vmem:[%s9040_s6 + $0xa4] ss:$8 sps:$4 sm:$0xff]  }
 0x414   : >> { %4307 = vmatprep.subr.bf16.mxu0 %v6744_v23  ;;  %v6829_v23 = vld [vmem:[%s9040_s6 + $0x5a4] ss:$8 sps:$4 sm:$0xff]  }
 0x416   : >> { %3372 = vmatpush1.bf16.msra.mxu1 %v6746_v24  ;;  %v6827_v24 = vld [vmem:[%s9040_s6 + $0x5a0] ss:$8 sps:$4 sm:$0xff]  }
 0x417   : >> { %4308 = vmatpush1.bf16.msra.mxu0 %v6747_v13  ;;  %3373 = vmatprep.subr.bf16.mxu1 %v6748_v15  ;;  %v6832_v13 = vld [vmem:[%s9040_s6 + $0xb4] ss:$8 sps:$4 sm:$0xff]  }
 0x418   : >> { %4309 = vmatprep.subr.bf16.mxu0 %v6750_v18  ;;  %v6835_v15 = vld [vmem:[%s9040_s6 + $0x5b4] ss:$8 sps:$4 sm:$0xff]   ;;  %v6830_v18 = vld [vmem:[%s9040_s6 + $0xb0] ss:$8 sps:$4 sm:$0xff]  }
 0x41a   : >> { %3374 = vmatpush1.bf16.msra.mxu1 %v6752_v25  ;;  %v6833_v25 = vld [vmem:[%s9040_s6 + $0x5b0] ss:$8 sps:$4 sm:$0xff]  }
 0x41b   : >> { %4310 = vmatpush1.bf16.msra.mxu0 %v6753_v28  ;;  %3375 = vmatprep.subr.bf16.mxu1 %v6754_v30  ;;  %v6838_v28 = vld [vmem:[%s9040_s6 + $0xc4] ss:$8 sps:$4 sm:$0xff]   ;;  %v6836_v30 = vld [vmem:[%s9040_s6 + $0xc0] ss:$8 sps:$4 sm:$0xff]  }
 0x41c   : >> { %4311 = vmatprep.subr.bf16.mxu0 %v6756_v31  ;;  %v6839_v31 = vld [vmem:[%s9040_s6 + $0x5c0] ss:$8 sps:$4 sm:$0xff]  }
 0x41e   : >> { %3376 = vmatpush1.bf16.msra.mxu1 %v6758_v32  ;;  %v6844_v32 = vld [vmem:[%s9040_s6 + $0xd4] ss:$8 sps:$4 sm:$0xff]  }
 0x41f   : >> { %4312 = vmatpush1.bf16.msra.mxu0 %v6759_v34  ;;  %3548 = vmatprep.subr.bf16.mxu1 %v6764_v37  ;;  %v6842_v34 = vld [vmem:[%s9040_s6 + $0xd0] ss:$8 sps:$4 sm:$0xff]   ;;  %v6853_v37 = vld [vmem:[%s9040_s6 + $0x5e4] ss:$8 sps:$4 sm:$0xff]  }
 0x420   : >> { %4532 = vmatprep.subr.bf16.mxu0 %v6768_v39  ;;  %v4359_v39 = vshll.u32 %v8406_v45, 16 }
 0x421   : >> { %3378 = vmatmul.mubr.bf16.vlgmr.msra.gmra.mrb[0].mxu1 %v3175_v44  ;;  %v4357_v44 = vshrl.u32 %v8406_v45, 16 }
 0x422   : >> { %4314 = vmatmul.mubr.bf16.vlgmr.msra.gmra.mrb[0].mxu0 %v8406_v45  ;;  %3549 = vmatpush1.bf16.msra.mxu1 %v6762_v42  ;;  %v6856_v42 = vld [vmem:[%s9040_s6 + $0xf4] ss:$8 sps:$4 sm:$0xff]   ;;  %v6865_v45 = vld [vmem:[%s9040_s6 + $0x604] ss:$8 sps:$4 sm:$0xff]  }
 0x423   : >> { %4533 = vmatpush1.bf16.msra.mxu0 %v6766_v43  ;;  %3550 = vmatprep.subr.bf16.mxu1 %v6772_v46  ;;  %v6859_v43 = vld [vmem:[%s9040_s6 + $0x5f4] ss:$8 sps:$4 sm:$0xff]   ;;  %v4361_v46 = vrot.slane %v4359_v39, 1  ;;  %v6937_v39 = vld [vmem:[%s9040_s6 + $0x6c4] ss:$8 sps:$4 sm:$0xff]  }
 0x424   : >> { %4534 = vmatprep.subr.bf16.mxu0 %v6775_v47  ;;  %3580 = vmatprep.mubr.bf16.mxu1 %v8337_v14  ;;  %v6806_v14 = vld [vmem:[%s9040_s6 + $0x70] ss:$8 sps:$4 sm:$0xff]  }
 0x425   : >> { %4564 = vmatprep.mubr.bf16.mxu0 %v4369_v38  ;;  %v6854_v47 = vld [vmem:[%s9040_s6 + $0xf0] ss:$8 sps:$4 sm:$0xff]  }
 0x426   : >> { %3551 = vmatpush1.bf16.msra.mxu1 %v6770_v48  ;;  %v6857_v38 = vld [vmem:[%s9040_s6 + $0x5f0] ss:$8 sps:$4 sm:$0xff]   ;;  %v6862_v48 = vld [vmem:[%s9040_s6 + $0x204] ss:$8 sps:$4 sm:$0xff]  }
 0x427   : >> { %4535 = vmatpush1.bf16.msra.mxu0 %v6773_v49  ;;  %3552 = vmatprep.subr.bf16.mxu1 %v6778_v50  ;;  %v6860_v49 = vld [vmem:[%s9040_s6 + $0x200] ss:$8 sps:$4 sm:$0xff]  }
 0x428   : >> { %4536 = vmatprep.subr.bf16.mxu0 %v6781_v51  ;;  %v6863_v50 = vld [vmem:[%s9040_s6 + $0x600] ss:$8 sps:$4 sm:$0xff]   ;;  %v4362_v51 = vor.u32 %v4361_v46, %v4357_v44  ;;  %v6938_v44 = vld [vmem:[%s9040_s6 + $0x2d0] ss:$8 sps:$4 sm:$0xff]  }
 0x429   : >> { %v6941_v46 = vld [vmem:[%s9040_s6 + $0x6d0] ss:$8 sps:$4 sm:$0xff]  }
 0x42a   : >> { %3553 = vmatpush1.bf16.msra.mxu1 %v6776_v52  ;;  %v6868_v52 = vld [vmem:[%s9040_s6 + $0x214] ss:$8 sps:$4 sm:$0xff]  }
 0x42b   : >> { %4537 = vmatpush1.bf16.msra.mxu0 %v6779_v9  ;;  %3554 = vmatprep.subr.bf16.mxu1 %v6784_v53  ;;  %v6871_v9 = vld [vmem:[%s9040_s6 + $0x614] ss:$8 sps:$4 sm:$0xff]   ;;  %v8611_v53 = vld [vmem:[%s8331_s19 + $0x8] sm:$0x77] }
 0x42c   : >> { %4538 = vmatprep.subr.bf16.mxu0 %v6787_v54  ;;  %v8615_v54 = vcombine.high %v8611_v53, %v8611_v53 }
 0x42e   : >> { %3555 = vmatpush1.bf16.msra.mxu1 %v6782_v55  ;;  %v8619_v55 = vld [vmem:[%s8331_s19 + $0x18] sm:$0x77]  ;;  %s5745_s19 = sshll.u32 %s7114_s22, 3  ;;  %s3078_s22 = sadd.s32 1, %s7114_s22  }
 0x42f   : >> { %4539 = vmatpush1.bf16.msra.mxu0 %v6785_v56  ;;  %3556 = vmatprep.subr.bf16.mxu1 %v6790_v57  ;;  %v6866_v56 = vld [vmem:[%s9040_s6 + $0x210] ss:$8 sps:$4 sm:$0xff]   ;;  %s5092_s18 = scalar_lea.vmem %s9042_s8, %s5745_s19  ;;  %p3075_p3 = scmp.ge.s32.totalorder %s3078_s22, 4  }
 0x430   : >> { %4540 = vmatprep.subr.bf16.mxu0 %v6793_v58  ;;  %v6869_v57 = vld [vmem:[%s9040_s6 + $0x610] ss:$8 sps:$4 sm:$0xff]   ;;  %v8629_v58 = vcombine.high %v8619_v55, %v8619_v55  ;;  %vm5117_vm10 = vcmask (%p3075_p3), 0  }
 0x432   : >> { %3557 = vmatpush1.bf16.msra.mxu1 %v6788_v60  ;;  %v6877_v60 = vld [vmem:[%s9040_s6 + $0x624] ss:$8 sps:$4 sm:$0xff]  }
 0x433   : >> { %4541 = vmatpush1.bf16.msra.mxu0 %v6791_v61  ;;  %3558 = vmatprep.subr.bf16.mxu1 %v6796_v62  ;;  %v6872_v61 = vld [vmem:[%s9040_s6 + $0x220] ss:$8 sps:$4 sm:$0xff]  }
 0x434   : >> { %4542 = vmatprep.subr.bf16.mxu0 %v6799_v63  ;;  %v6875_v62 = vld [vmem:[%s9040_s6 + $0x620] ss:$8 sps:$4 sm:$0xff]   ;;  %v6880_v63 = vld [vmem:[%s9040_s6 + $0x234] ss:$8 sps:$4 sm:$0xff]  }
 0x436   : >> { %3559 = vmatpush1.bf16.msra.mxu1 %v6794_v59  ;;  %v6883_v59 = vld [vmem:[%s9040_s6 + $0x634] ss:$8 sps:$4 sm:$0xff]  }
 0x437   : >> { %4543 = vmatpush1.bf16.msra.mxu0 %v6797_v1  ;;  %3560 = vmatprep.subr.bf16.mxu1 %v6802_v2  ;;  %v6878_v1 = vld [vmem:[%s9040_s6 + $0x230] ss:$8 sps:$4 sm:$0xff]  }
 0x438   : >> { %4544 = vmatprep.subr.bf16.mxu0 %v6805_v4  ;;  %v6881_v2 = vld [vmem:[%s9040_s6 + $0x630] ss:$8 sps:$4 sm:$0xff]   ;;  %v6886_v4 = vld [vmem:[%s9040_s6 + $0x244] ss:$8 sps:$4 sm:$0xff]  }
 0x43a   : >> { %3561 = vmatpush1.bf16.msra.mxu1 %v6800_v6  ;;  %v6889_v6 = vld [vmem:[%s9040_s6 + $0x644] ss:$8 sps:$4 sm:$0xff]  }
 0x43b   : >> { %4545 = vmatpush1.bf16.msra.mxu0 %v6803_v7  ;;  %3562 = vmatprep.subr.bf16.mxu1 %v6808_v10  ;;  %v6884_v7 = vld [vmem:[%s9040_s6 + $0x240] ss:$8 sps:$4 sm:$0xff]  }
 0x43c   : >> { %4546 = vmatprep.subr.bf16.mxu0 %v6811_v12  ;;  %v6887_v10 = vld [vmem:[%s9040_s6 + $0x640] ss:$8 sps:$4 sm:$0xff]   ;;  %v6892_v12 = vld [vmem:[%s9040_s6 + $0x254] ss:$8 sps:$4 sm:$0xff]  }
 0x43e   : >> { %3563 = vmatpush1.bf16.msra.mxu1 %v6806_v14  ;;  %v6895_v14 = vld [vmem:[%s9040_s6 + $0x654] ss:$8 sps:$4 sm:$0xff]  }
 0x43f   : >> { %4547 = vmatpush1.bf16.msra.mxu0 %v6809_v16  ;;  %3564 = vmatprep.subr.bf16.mxu1 %v6814_v17  ;;  %v6890_v16 = vld [vmem:[%s9040_s6 + $0x250] ss:$8 sps:$4 sm:$0xff]  }
 0x440   : >> { %4548 = vmatprep.subr.bf16.mxu0 %v6817_v19  ;;  %v6893_v17 = vld [vmem:[%s9040_s6 + $0x650] ss:$8 sps:$4 sm:$0xff]   ;;  %v6898_v19 = vld [vmem:[%s9040_s6 + $0x264] ss:$8 sps:$4 sm:$0xff]  }
 0x442   : >> { %3565 = vmatpush1.bf16.msra.mxu1 %v6812_v20  ;;  %v6901_v20 = vld [vmem:[%s9040_s6 + $0x664] ss:$8 sps:$4 sm:$0xff]  }
 0x443   : >> { %4549 = vmatpush1.bf16.msra.mxu0 %v6815_v21  ;;  %3566 = vmatprep.subr.bf16.mxu1 %v6820_v22  ;;  %v6896_v21 = vld [vmem:[%s9040_s6 + $0x260] ss:$8 sps:$4 sm:$0xff]  }
 0x444   : >> { %4550 = vmatprep.subr.bf16.mxu0 %v6823_v0  ;;  %v6899_v22 = vld [vmem:[%s9040_s6 + $0x660] ss:$8 sps:$4 sm:$0xff]   ;;  %v6904_v0 = vld [vmem:[%s9040_s6 + $0x274] ss:$8 sps:$4 sm:$0xff]  }
 0x446   : >> { %3567 = vmatpush1.bf16.msra.mxu1 %v6818_v3  ;;  %v6907_v3 = vld [vmem:[%s9040_s6 + $0x674] ss:$8 sps:$4 sm:$0xff]  }
 0x447   : >> { %4551 = vmatpush1.bf16.msra.mxu0 %v6821_v5  ;;  %3568 = vmatprep.subr.bf16.mxu1 %v6826_v8  ;;  %v6902_v5 = vld [vmem:[%s9040_s6 + $0x270] ss:$8 sps:$4 sm:$0xff]  }
 0x448   : >> { %4552 = vmatprep.subr.bf16.mxu0 %v6829_v23  ;;  %v6905_v8 = vld [vmem:[%s9040_s6 + $0x670] ss:$8 sps:$4 sm:$0xff]   ;;  %v6910_v23 = vld [vmem:[%s9040_s6 + $0x284] ss:$8 sps:$4 sm:$0xff]  }
 0x44a   : >> { %3569 = vmatpush1.bf16.msra.mxu1 %v6824_v11  ;;  %v6913_v11 = vld [vmem:[%s9040_s6 + $0x684] ss:$8 sps:$4 sm:$0xff]  }
 0x44b   : >> { %4553 = vmatpush1.bf16.msra.mxu0 %v6827_v24  ;;  %3570 = vmatprep.subr.bf16.mxu1 %v6832_v13  ;;  %v6908_v24 = vld [vmem:[%s9040_s6 + $0x280] ss:$8 sps:$4 sm:$0xff]  }
 0x44c   : >> { %4554 = vmatprep.subr.bf16.mxu0 %v6835_v15  ;;  %v6911_v13 = vld [vmem:[%s9040_s6 + $0x680] ss:$8 sps:$4 sm:$0xff]   ;;  %v6916_v15 = vld [vmem:[%s9040_s6 + $0x294] ss:$8 sps:$4 sm:$0xff]  }
 0x44e   : >> { %3571 = vmatpush1.bf16.msra.mxu1 %v6830_v18  ;;  %v6919_v18 = vld [vmem:[%s9040_s6 + $0x694] ss:$8 sps:$4 sm:$0xff]  }
 0x44f   : >> { %4555 = vmatpush1.bf16.msra.mxu0 %v6833_v25  ;;  %3572 = vmatprep.subr.bf16.mxu1 %v6838_v28  ;;  %v6914_v25 = vld [vmem:[%s9040_s6 + $0x290] ss:$8 sps:$4 sm:$0xff]  }
 0x450   : >> { %4556 = vmatprep.subr.bf16.mxu0 %v6841_v29  ;;  %v6917_v28 = vld [vmem:[%s9040_s6 + $0x690] ss:$8 sps:$4 sm:$0xff]   ;;  %v6922_v29 = vld [vmem:[%s9040_s6 + $0x2a4] ss:$8 sps:$4 sm:$0xff]  }
 0x452   : >> { %3573 = vmatpush1.bf16.msra.mxu1 %v6836_v30  ;;  %v6925_v30 = vld [vmem:[%s9040_s6 + $0x6a4] ss:$8 sps:$4 sm:$0xff]  }
 0x453   : >> { %4557 = vmatpush1.bf16.msra.mxu0 %v6839_v31  ;;  %3574 = vmatprep.subr.bf16.mxu1 %v6844_v32  ;;  %v6920_v31 = vld [vmem:[%s9040_s6 + $0x2a0] ss:$8 sps:$4 sm:$0xff]  }
 0x454   : >> { %4558 = vmatprep.subr.bf16.mxu0 %v6847_v33  ;;  %v6923_v32 = vld [vmem:[%s9040_s6 + $0x6a0] ss:$8 sps:$4 sm:$0xff]   ;;  %v6928_v33 = vld [vmem:[%s9040_s6 + $0x2b4] ss:$8 sps:$4 sm:$0xff]  }
 0x456   : >> { %3575 = vmatpush1.bf16.msra.mxu1 %v6842_v34  ;;  %v6931_v34 = vld [vmem:[%s9040_s6 + $0x6b4] ss:$8 sps:$4 sm:$0xff]  }
 0x457   : >> { %4559 = vmatpush1.bf16.msra.mxu0 %v6845_v35  ;;  %3576 = vmatprep.subr.bf16.mxu1 %v6850_v36  ;;  %v6926_v35 = vld [vmem:[%s9040_s6 + $0x2b0] ss:$8 sps:$4 sm:$0xff]  }
 0x458   : >> { %4560 = vmatprep.subr.bf16.mxu0 %v6853_v37  ;;  %v6929_v36 = vld [vmem:[%s9040_s6 + $0x6b0] ss:$8 sps:$4 sm:$0xff]   ;;  %v6934_v37 = vld [vmem:[%s9040_s6 + $0x2c4] ss:$8 sps:$4 sm:$0xff]  }
 0x45a   : >> { %3577 = vmatpush1.bf16.msra.mxu1 %v6848_v40  ;;  %v6932_v40 = vld [vmem:[%s9040_s6 + $0x2c0] ss:$8 sps:$4 sm:$0xff]  }
 0x45b   : >> { %4561 = vmatpush1.bf16.msra.mxu0 %v6851_v41  ;;  %3578 = vmatprep.subr.bf16.mxu1 %v6856_v42  ;;  %v6935_v41 = vld [vmem:[%s9040_s6 + $0x6c0] ss:$8 sps:$4 sm:$0xff]   ;;  %v6940_v42 = vld [vmem:[%s9040_s6 + $0x2d4] ss:$8 sps:$4 sm:$0xff]  }
 0x45c   : >> { %4562 = vmatprep.subr.bf16.mxu0 %v6859_v43  ;;  %v6943_v43 = vld [vmem:[%s9040_s6 + $0x6d4] ss:$8 sps:$4 sm:$0xff]  }
 0x45e   : >> { %3579 = vmatpush1.bf16.msra.mxu1 %v6854_v47  ;;  %v6946_v47 = vld [vmem:[%s9040_s6 + $0x2e4] ss:$8 sps:$4 sm:$0xff]  }
 0x45f   : >> { %4563 = vmatpush1.bf16.msra.mxu0 %v6857_v38  ;;  %3788 = vmatprep.subr.bf16.mxu1 %v6862_v48  ;;  %v6949_v38 = vld [vmem:[%s9040_s6 + $0x6e4] ss:$8 sps:$4 sm:$0xff]   ;;  %v6944_v48 = vld [vmem:[%s9040_s6 + $0x2e0] ss:$8 sps:$4 sm:$0xff]  }
 0x460   : >> { %4774 = vmatprep.subr.bf16.mxu0 %v6865_v45  ;;  %v6947_v45 = vld [vmem:[%s9040_s6 + $0x6e0] ss:$8 sps:$4 sm:$0xff]  }
 0x461   : >> { %3581 = vmatmul.mubr.bf16.vlgmr.msra.gmra.mrb[0].mxu1 %v8366_v27  ;;  %v6874_v27 = vld [vmem:[%s9040_s6 + $0x224] ss:$8 sps:$4 sm:$0xff]  }
 0x462   : >> { %4565 = vmatmul.mubr.bf16.vlgmr.msra.gmra.mrb[0].mxu0 %v4362_v51  ;;  %3789 = vmatpush1.bf16.msra.mxu1 %v6860_v49  ;;  %v6952_v49 = vld [vmem:[%s9040_s6 + $0x2f4] ss:$8 sps:$4 sm:$0xff]   ;;  %v3873_v51 = vshll.u32 %v8615_v54, 16 }
 0x463   : >> { %4775 = vmatpush1.bf16.msra.mxu0 %v6863_v50  ;;  %3790 = vmatprep.subr.bf16.mxu1 %v6868_v52  ;;  %v6955_v50 = vld [vmem:[%s9040_s6 + $0x6f4] ss:$8 sps:$4 sm:$0xff]   ;;  %v4859_v52 = vshll.u32 %v8629_v58, 16 }
 0x464   : >> { %4776 = vmatprep.subr.bf16.mxu0 %v6871_v9  ;;  %3820 = vmatprep.mubr.bf16.mxu1 %v8615_v54  ;;  %v6950_v9 = vld [vmem:[%s9040_s6 + $0x2f0] ss:$8 sps:$4 sm:$0xff]  }
 0x465   : >> { %4806 = vmatprep.mubr.bf16.mxu0 %v8629_v58 }
 0x466   : >> { %3791 = vmatpush1.bf16.msra.mxu1 %v6866_v56  ;;  %v6953_v56 = vld [vmem:[%s9040_s6 + $0x6f0] ss:$8 sps:$4 sm:$0xff]  }
 0x467   : >> { %4777 = vmatpush1.bf16.msra.mxu0 %v6869_v57  ;;  %3792 = vmatprep.subr.bf16.mxu1 %v6874_v27  ;;  %v6960_v57 = vld [vmem:[%s9040_s6 + $0x304] ss:$8 sps:$4 sm:$0xff]  }
 0x468   : >> { %4778 = vmatprep.subr.bf16.mxu0 %v6877_v60  ;;  %v6965_v27 = vld [vmem:[%s9040_s6 + $0x704] ss:$8 sps:$4 sm:$0xff]   ;;  %v3871_v60 = vshrl.u32 %v8615_v54, 16  ;;  %v6963_v54 = vld [vmem:[%s9040_s6 + $0x700] ss:$8 sps:$4 sm:$0xff]  }
 0x46a   : >> { %3793 = vmatpush1.bf16.msra.mxu1 %v6872_v61  ;;  %v3875_v61 = vrot.slane %v3873_v51, 1  ;;  %v7035_v51 = vld [vmem:[%s9040_s6 + $0x7c0] ss:$8 sps:$4 sm:$0xff]  }
 0x46b   : >> { %4779 = vmatpush1.bf16.msra.mxu0 %v6875_v62  ;;  %3794 = vmatprep.subr.bf16.mxu1 %v6880_v63  ;;  %v4857_v62 = vshrl.u32 %v8629_v58, 16  ;;  %v4861_v63 = vrot.slane %v4859_v52, 1  ;;  %v7040_v52 = vld [vmem:[%s9040_s6 + $0x3d4] ss:$8 sps:$4 sm:$0xff]  }
 0x46c   : >> { %4780 = vmatprep.subr.bf16.mxu0 %v6883_v59  ;;  %v8813_v59 = vcombine.low %v8611_v53, %v8611_v53  ;;  %v6968_v53 = vld [vmem:[%s9040_s6 + $0x314] ss:$8 sps:$4 sm:$0xff]   ;;  %v3876_v58 = vor.u32 %v3875_v61, %v3871_v60  ;;  %v7049_v60 = vld [vmem:[%s9040_s6 + $0x7e4] ss:$8 sps:$4 sm:$0xff]  }
 0x46e   : >> { %3795 = vmatpush1.bf16.msra.mxu1 %v6878_v1  ;;  %v8817_v1 = vcombine.low %v8619_v55, %v8619_v55  ;;  %v6971_v55 = vld [vmem:[%s9040_s6 + $0x714] ss:$8 sps:$4 sm:$0xff]   ;;  %v3866_v61 = vshll.u32 %v8813_v59, 16 }
 0x46f   : >> { %4781 = vmatpush1.bf16.msra.mxu0 %v6881_v2  ;;  %3796 = vmatprep.subr.bf16.mxu1 %v6886_v4  ;;  %v6958_v2 = vld [vmem:[%s9040_s6 + $0x300] ss:$8 sps:$4 sm:$0xff]   ;;  %v4862_v4 = vor.u32 %v4861_v63, %v4857_v62 }
 0x470   : >> { %4782 = vmatprep.subr.bf16.mxu0 %v6889_v6  ;;  %v6966_v6 = vld [vmem:[%s9040_s6 + $0x310] ss:$8 sps:$4 sm:$0xff]   ;;  %v4852_v62 = vshll.u32 %v8817_v1, 16  ;;  %v7044_v63 = vld [vmem:[%s9040_s6 + $0x3e0] ss:$8 sps:$4 sm:$0xff]  }
 0x472   : >> { %3797 = vmatpush1.bf16.msra.mxu1 %v6884_v7  ;;  %v6969_v7 = vld [vmem:[%s9040_s6 + $0x710] ss:$8 sps:$4 sm:$0xff]  }
 0x473   : >> { %4783 = vmatpush1.bf16.msra.mxu0 %v6887_v10  ;;  %3798 = vmatprep.subr.bf16.mxu1 %v6892_v12  ;;  %v6974_v10 = vld [vmem:[%s9040_s6 + $0x324] ss:$8 sps:$4 sm:$0xff]  }
 0x474   : >> { %4784 = vmatprep.subr.bf16.mxu0 %v6895_v14  ;;  %v6977_v12 = vld [vmem:[%s9040_s6 + $0x724] ss:$8 sps:$4 sm:$0xff]   ;;  %v6972_v14 = vld [vmem:[%s9040_s6 + $0x320] ss:$8 sps:$4 sm:$0xff]  }
 0x476   : >> { %3799 = vmatpush1.bf16.msra.mxu1 %v6890_v16  ;;  %v6975_v16 = vld [vmem:[%s9040_s6 + $0x720] ss:$8 sps:$4 sm:$0xff]  }
 0x477   : >> { %4785 = vmatpush1.bf16.msra.mxu0 %v6893_v17  ;;  %3800 = vmatprep.subr.bf16.mxu1 %v6898_v19  ;;  %v6980_v17 = vld [vmem:[%s9040_s6 + $0x334] ss:$8 sps:$4 sm:$0xff]  }
 0x478   : >> { %4786 = vmatprep.subr.bf16.mxu0 %v6901_v20  ;;  %v6983_v19 = vld [vmem:[%s9040_s6 + $0x734] ss:$8 sps:$4 sm:$0xff]   ;;  %v6978_v20 = vld [vmem:[%s9040_s6 + $0x330] ss:$8 sps:$4 sm:$0xff]  }
 0x47a   : >> { %3801 = vmatpush1.bf16.msra.mxu1 %v6896_v21  ;;  %v6981_v21 = vld [vmem:[%s9040_s6 + $0x730] ss:$8 sps:$4 sm:$0xff]  }
 0x47b   : >> { %4787 = vmatpush1.bf16.msra.mxu0 %v6899_v22  ;;  %3802 = vmatprep.subr.bf16.mxu1 %v6904_v0  ;;  %v6986_v22 = vld [vmem:[%s9040_s6 + $0x344] ss:$8 sps:$4 sm:$0xff]  }
 0x47c   : >> { %4788 = vmatprep.subr.bf16.mxu0 %v6907_v3  ;;  %v6989_v0 = vld [vmem:[%s9040_s6 + $0x744] ss:$8 sps:$4 sm:$0xff]   ;;  %v6984_v3 = vld [vmem:[%s9040_s6 + $0x340] ss:$8 sps:$4 sm:$0xff]  }
 0x47e   : >> { %3803 = vmatpush1.bf16.msra.mxu1 %v6902_v5  ;;  %v6987_v5 = vld [vmem:[%s9040_s6 + $0x740] ss:$8 sps:$4 sm:$0xff]  }
 0x47f   : >> { %4789 = vmatpush1.bf16.msra.mxu0 %v6905_v8  ;;  %3804 = vmatprep.subr.bf16.mxu1 %v6910_v23  ;;  %v6992_v8 = vld [vmem:[%s9040_s6 + $0x354] ss:$8 sps:$4 sm:$0xff]  }
 0x480   : >> { %4790 = vmatprep.subr.bf16.mxu0 %v6913_v11  ;;  %v6995_v23 = vld [vmem:[%s9040_s6 + $0x754] ss:$8 sps:$4 sm:$0xff]   ;;  %v6990_v11 = vld [vmem:[%s9040_s6 + $0x350] ss:$8 sps:$4 sm:$0xff]  }
 0x482   : >> { %3805 = vmatpush1.bf16.msra.mxu1 %v6908_v24  ;;  %v6993_v24 = vld [vmem:[%s9040_s6 + $0x750] ss:$8 sps:$4 sm:$0xff]  }
 0x483   : >> { %4791 = vmatpush1.bf16.msra.mxu0 %v6911_v13  ;;  %3806 = vmatprep.subr.bf16.mxu1 %v6916_v15  ;;  %v6998_v13 = vld [vmem:[%s9040_s6 + $0x364] ss:$8 sps:$4 sm:$0xff]  }
 0x484   : >> { %4792 = vmatprep.subr.bf16.mxu0 %v6919_v18  ;;  %v7001_v15 = vld [vmem:[%s9040_s6 + $0x764] ss:$8 sps:$4 sm:$0xff]   ;;  %v6996_v18 = vld [vmem:[%s9040_s6 + $0x360] ss:$8 sps:$4 sm:$0xff]  }
 0x486   : >> { %3807 = vmatpush1.bf16.msra.mxu1 %v6914_v25  ;;  %v6999_v25 = vld [vmem:[%s9040_s6 + $0x760] ss:$8 sps:$4 sm:$0xff]  }
 0x487   : >> { %4793 = vmatpush1.bf16.msra.mxu0 %v6917_v28  ;;  %3808 = vmatprep.subr.bf16.mxu1 %v6922_v29  ;;  %v7004_v28 = vld [vmem:[%s9040_s6 + $0x374] ss:$8 sps:$4 sm:$0xff]  }
 0x488   : >> { %4794 = vmatprep.subr.bf16.mxu0 %v6925_v30  ;;  %v7007_v29 = vld [vmem:[%s9040_s6 + $0x774] ss:$8 sps:$4 sm:$0xff]   ;;  %v7002_v30 = vld [vmem:[%s9040_s6 + $0x370] ss:$8 sps:$4 sm:$0xff]  }
 0x48a   : >> { %3809 = vmatpush1.bf16.msra.mxu1 %v6920_v31  ;;  %v7005_v31 = vld [vmem:[%s9040_s6 + $0x770] ss:$8 sps:$4 sm:$0xff]  }
 0x48b   : >> { %4795 = vmatpush1.bf16.msra.mxu0 %v6923_v32  ;;  %3810 = vmatprep.subr.bf16.mxu1 %v6928_v33  ;;  %v7010_v32 = vld [vmem:[%s9040_s6 + $0x384] ss:$8 sps:$4 sm:$0xff]  }
 0x48c   : >> { %4796 = vmatprep.subr.bf16.mxu0 %v6931_v34  ;;  %v7013_v33 = vld [vmem:[%s9040_s6 + $0x784] ss:$8 sps:$4 sm:$0xff]   ;;  %v7008_v34 = vld [vmem:[%s9040_s6 + $0x380] ss:$8 sps:$4 sm:$0xff]  }
 0x48e   : >> { %3811 = vmatpush1.bf16.msra.mxu1 %v6926_v35  ;;  %v7011_v35 = vld [vmem:[%s9040_s6 + $0x780] ss:$8 sps:$4 sm:$0xff]  }
 0x48f   : >> { %4797 = vmatpush1.bf16.msra.mxu0 %v6929_v36  ;;  %3812 = vmatprep.subr.bf16.mxu1 %v6934_v37  ;;  %v7016_v36 = vld [vmem:[%s9040_s6 + $0x394] ss:$8 sps:$4 sm:$0xff]  }
 0x490   : >> { %4798 = vmatprep.subr.bf16.mxu0 %v6937_v39  ;;  %v7019_v37 = vld [vmem:[%s9040_s6 + $0x794] ss:$8 sps:$4 sm:$0xff]   ;;  %v7014_v39 = vld [vmem:[%s9040_s6 + $0x390] ss:$8 sps:$4 sm:$0xff]  }
 0x492   : >> { %3813 = vmatpush1.bf16.msra.mxu1 %v6932_v40  ;;  %v7017_v40 = vld [vmem:[%s9040_s6 + $0x790] ss:$8 sps:$4 sm:$0xff]  }
 0x493   : >> { %4799 = vmatpush1.bf16.msra.mxu0 %v6935_v41  ;;  %3814 = vmatprep.subr.bf16.mxu1 %v6940_v42  ;;  %v7022_v41 = vld [vmem:[%s9040_s6 + $0x3a4] ss:$8 sps:$4 sm:$0xff]  }
 0x494   : >> { %4800 = vmatprep.subr.bf16.mxu0 %v6943_v43  ;;  %v7025_v42 = vld [vmem:[%s9040_s6 + $0x7a4] ss:$8 sps:$4 sm:$0xff]   ;;  %v7020_v43 = vld [vmem:[%s9040_s6 + $0x3a0] ss:$8 sps:$4 sm:$0xff]  }
 0x496   : >> { %3815 = vmatpush1.bf16.msra.mxu1 %v6938_v44  ;;  %v7023_v44 = vld [vmem:[%s9040_s6 + $0x7a0] ss:$8 sps:$4 sm:$0xff]  }
 0x497   : >> { %4801 = vmatpush1.bf16.msra.mxu0 %v6941_v46  ;;  %3816 = vmatprep.subr.bf16.mxu1 %v6946_v47  ;;  %v7028_v46 = vld [vmem:[%s9040_s6 + $0x3b4] ss:$8 sps:$4 sm:$0xff]  }
 0x498   : >> { %4802 = vmatprep.subr.bf16.mxu0 %v6949_v38  ;;  %v7031_v47 = vld [vmem:[%s9040_s6 + $0x7b4] ss:$8 sps:$4 sm:$0xff]   ;;  %v7026_v38 = vld [vmem:[%s9040_s6 + $0x3b0] ss:$8 sps:$4 sm:$0xff]  }
 0x49a   : >> { %3817 = vmatpush1.bf16.msra.mxu1 %v6944_v48  ;;  %v7029_v48 = vld [vmem:[%s9040_s6 + $0x7b0] ss:$8 sps:$4 sm:$0xff]  }
 0x49b   : >> { %4803 = vmatpush1.bf16.msra.mxu0 %v6947_v45  ;;  %3818 = vmatprep.subr.bf16.mxu1 %v6952_v49  ;;  %v7034_v45 = vld [vmem:[%s9040_s6 + $0x3c4] ss:$8 sps:$4 sm:$0xff]  }
 0x49c   : >> { %4804 = vmatprep.subr.bf16.mxu0 %v6955_v50  ;;  %v7037_v49 = vld [vmem:[%s9040_s6 + $0x7c4] ss:$8 sps:$4 sm:$0xff]   ;;  %v7032_v50 = vld [vmem:[%s9040_s6 + $0x3c0] ss:$8 sps:$4 sm:$0xff]  }
 0x49e   : >> { %3819 = vmatpush1.bf16.msra.mxu1 %v6950_v9  ;;  %v7043_v9 = vld [vmem:[%s9040_s6 + $0x7d4] ss:$8 sps:$4 sm:$0xff]  }
 0x49f   : >> { %4805 = vmatpush1.bf16.msra.mxu0 %v6953_v56  ;;  %4039 = vmatprep.subr.bf16.mxu1 %v6960_v57  ;;  %v7038_v56 = vld [vmem:[%s9040_s6 + $0x3d0] ss:$8 sps:$4 sm:$0xff]  }
 0x4a0   : >> { %5025 = vmatprep.subr.bf16.mxu0 %v6965_v27  ;;  %v7041_v57 = vld [vmem:[%s9040_s6 + $0x7d0] ss:$8 sps:$4 sm:$0xff]   ;;  %v7046_v27 = vld [vmem:[%s9040_s6 + $0x3e4] ss:$8 sps:$4 sm:$0xff]  }
 0x4a1   : >> { %3821 = vmatmul.mubr.bf16.vlgmr.msra.gmra.mrb[0].mxu1 %v8813_v59 }
 0x4a2   : >> { %4807 = vmatmul.mubr.bf16.vlgmr.msra.gmra.mrb[0].mxu0 %v8817_v1  ;;  %4040 = vmatpush1.bf16.msra.mxu1 %v6958_v2  ;;  %v7047_v2 = vld [vmem:[%s9040_s6 + $0x7e0] ss:$8 sps:$4 sm:$0xff]  }
 0x4a3   : >> { %5026 = vmatpush1.bf16.msra.mxu0 %v6963_v54  ;;  %4041 = vmatprep.subr.bf16.mxu1 %v6968_v53  ;;  %v7052_v54 = vld [vmem:[%s9040_s6 + $0x3f4] ss:$8 sps:$4 sm:$0xff]  }
 0x4a4   : >> { %5027 = vmatprep.subr.bf16.mxu0 %v6971_v55  ;;  %4071 = vmatprep.mubr.bf16.mxu1 %v3876_v58  ;;  %v7055_v53 = vld [vmem:[%s9040_s6 + $0x7f4] ss:$8 sps:$4 sm:$0xff]   ;;  %v3864_v55 = vshrl.u32 %v8813_v59, 16  ;;  %v3868_v58 = vrot.slane %v3866_v61, 1 }
 0x4a5   : >> { %5057 = vmatprep.mubr.bf16.mxu0 %v4862_v4  ;;  %v4850_v4 = vshrl.u32 %v8817_v1, 16  ;;  %v5073_v1 = vlaneseq }
 0x4a6   : >> { %4042 = vmatpush1.bf16.msra.mxu1 %v6966_v6  ;;  %v4854_v6 = vrot.slane %v4852_v62, 1 }
 0x4a7   : >> { %5028 = vmatpush1.bf16.msra.mxu0 %v6969_v7  ;;  %4043 = vmatprep.subr.bf16.mxu1 %v6974_v10  ;;  %v7050_v7 = vld [vmem:[%s9040_s6 + $0x3f0] ss:$8 sps:$4 sm:$0xff]  }
 0x4a8   : >> { %5029 = vmatprep.subr.bf16.mxu0 %v6977_v12  ;;  %v7053_v10 = vld [vmem:[%s9040_s6 + $0x7f0] ss:$8 sps:$4 sm:$0xff]   ;;  %v3869_v12 = vor.u32 %v3868_v58, %v3864_v55  ;;  %v4855_v59 = vor.u32 %v4854_v6, %v4850_v4 }
 0x4aa   : >> { %4044 = vmatpush1.bf16.msra.mxu1 %v6972_v14  ;;  %v5074_v14 = vshrl.u32 %v5073_v1, 7 }
 0x4ab   : >> { %5030 = vmatpush1.bf16.msra.mxu0 %v6975_v16  ;;  %4045 = vmatprep.subr.bf16.mxu1 %v6980_v17  ;;  %v5071_v17 = vld [vmem:[%s9041_s7] sm:$0x3] }
 0x4ac   : >> { %5031 = vmatprep.subr.bf16.mxu0 %v6983_v19  ;;  %v5075_v16 = vsub.s32 0, %v5074_v14  ;;  %v5079_v19 = vsub.s32 1, %v5074_v14 }
 0x4ae   : >> { %4046 = vmatpush1.bf16.msra.mxu1 %v6978_v20 }
 0x4af   : >> { %5032 = vmatpush1.bf16.msra.mxu0 %v6981_v21  ;;  %4047 = vmatprep.subr.bf16.mxu1 %v6986_v22  ;;  %v5068_v22 = vstv %s7289_s11 }
 0x4b0   : >> { %5033 = vmatprep.subr.bf16.mxu0 %v6989_v0 }
 0x4b2   : >> { %4048 = vmatpush1.bf16.msra.mxu1 %v6984_v3  ;;  %v5076_v3 = vrot.slane %v5071_v17, %v5075_v16 }
 0x4b3   : >> { %5034 = vmatpush1.bf16.msra.mxu0 %v6987_v5  ;;  %4049 = vmatprep.subr.bf16.mxu1 %v6992_v8 }
 0x4b4   : >> { %5035 = vmatprep.subr.bf16.mxu0 %v6995_v23 }
 0x4b6   : >> { %4050 = vmatpush1.bf16.msra.mxu1 %v6990_v11  ;;  %v5080_v11 = vrot.slane %v5071_v17, %v5079_v19 }
 0x4b7   : >> { %5036 = vmatpush1.bf16.msra.mxu0 %v6993_v24  ;;  %4051 = vmatprep.subr.bf16.mxu1 %v6998_v13 }
 0x4b8   : >> { %5037 = vmatprep.subr.bf16.mxu0 %v7001_v15 }
 0x4ba   : >> { %4052 = vmatpush1.bf16.msra.mxu1 %v6996_v18 }
 0x4bb   : >> { %5038 = vmatpush1.bf16.msra.mxu0 %v6999_v25  ;;  %4053 = vmatprep.subr.bf16.mxu1 %v7004_v28 }
 0x4bc   : >> { %5039 = vmatprep.subr.bf16.mxu0 %v7007_v29  ;;  %v5093_v29 = vld [vmem:[%s5092_s18] sm:$0xff] }
 0x4be   : >> { %4054 = vmatpush1.bf16.msra.mxu1 %v7002_v30 }
 0x4bf   : >> { %5040 = vmatpush1.bf16.msra.mxu0 %v7005_v31  ;;  %4055 = vmatprep.subr.bf16.mxu1 %v7010_v32 }
 0x4c0   : >> { %5041 = vmatprep.subr.bf16.mxu0 %v7013_v33  ;;  %v5095_v33 = vcombine.high %v5093_v29, %v5093_v29 }
 0x4c2   : >> { %4056 = vmatpush1.bf16.msra.mxu1 %v7008_v34 }
 0x4c3   : >> { %5042 = vmatpush1.bf16.msra.mxu0 %v7011_v35  ;;  %4057 = vmatprep.subr.bf16.mxu1 %v7016_v36 }
 0x4c4   : >> { %5043 = vmatprep.subr.bf16.mxu0 %v7019_v37 }
 0x4c6   : >> { %4058 = vmatpush1.bf16.msra.mxu1 %v7014_v39 }
 0x4c7   : >> { %5044 = vmatpush1.bf16.msra.mxu0 %v7017_v40  ;;  %4059 = vmatprep.subr.bf16.mxu1 %v7022_v41 }
 0x4c8   : >> { %5045 = vmatprep.subr.bf16.mxu0 %v7025_v42 }
 0x4ca   : >> { %4060 = vmatpush1.bf16.msra.mxu1 %v7020_v43 }
 0x4cb   : >> { %5046 = vmatpush1.bf16.msra.mxu0 %v7023_v44  ;;  %4061 = vmatprep.subr.bf16.mxu1 %v7028_v46 }
 0x4cc   : >> { %5047 = vmatprep.subr.bf16.mxu0 %v7031_v47 }
 0x4ce   : >> { %4062 = vmatpush1.bf16.msra.mxu1 %v7026_v38 }
 0x4cf   : >> { %5048 = vmatpush1.bf16.msra.mxu0 %v7029_v48  ;;  %4063 = vmatprep.subr.bf16.mxu1 %v7034_v45 }
 0x4d0   : >> { %5049 = vmatprep.subr.bf16.mxu0 %v7037_v49 }
 0x4d2   : >> { %4064 = vmatpush1.bf16.msra.mxu1 %v7032_v50 }
 0x4d3   : >> { %5050 = vmatpush1.bf16.msra.mxu0 %v7035_v51  ;;  %4065 = vmatprep.subr.bf16.mxu1 %v7040_v52  ;;  %v5113_v51 = vstv (%p3075_p3), %s7291_s12  ;;  %v5115_v52 = vld [vmem:[#allocation4] sm:$0x1] (%p3075_p3) }
 0x4d4   : >> { %5051 = vmatprep.subr.bf16.mxu0 %v7043_v9 }
 0x4d6   : >> { %4066 = vmatpush1.bf16.msra.mxu1 %v7038_v56 }
 0x4d7   : >> { %5052 = vmatpush1.bf16.msra.mxu0 %v7041_v57  ;;  %4067 = vmatprep.subr.bf16.mxu1 %v7046_v27 }
 0x4d8   : >> { %5053 = vmatprep.subr.bf16.mxu0 %v7049_v60 }
 0x4da   : >> { %4068 = vmatpush1.bf16.msra.mxu1 %v7044_v63 }
 0x4db   : >> { %5054 = vmatpush1.bf16.msra.mxu0 %v7047_v2  ;;  %4069 = vmatprep.subr.bf16.mxu1 %v7052_v54 }
 0x4dc   : >> { %5055 = vmatprep.subr.bf16.mxu0 %v7055_v53 }
 0x4de   : >> { %4070 = vmatpush1.bf16.msra.mxu1 %v7050_v7 }
 0x4df   : >> { %5056 = vmatpush1.bf16.msra.mxu0 %v7053_v10 }
 0x4e1   : >> { %4072 = vmatmul.mubr.bf16.vlgmr.msra.gmra.mrb[0].mxu1 %v3869_v12 }
 0x4e2   : >> { %5058 = vmatmul.mubr.bf16.vlgmr.msra.gmra.mrb[0].mxu0 %v4855_v59 }
 0x5b4   : >> { %v4073_v20 = vpop.f32.mrb[0].mxu1 }
 0x5b5   : >> { %v5059_v21 = vpop.f32.mrb[0].mxu0  ;;  %v4075_v5 = vpop.f32.mrb[1].mxu1 }
 0x5b6   : >> { %v6447_v0 = vadd.f32 %v5059_v21, %v4073_v20  ;;  %v5061_v8 = vpop.f32.mrb[1].mxu0  ;;  %v4077_v24 = vpop.f32.mrb[2].mxu1 }
 0x5b7   : >> { %v6448_v23 = vadd.f32 %v5061_v8, %v4075_v5  ;;  %v5063_v13 = vpop.f32.mrb[2].mxu0  ;;  %v4078_v18 = vpop.f32.mrb[3].mxu1 }
 0x5b8   : >> { %v5069_v15 = vmul.f32 %v6447_v0, %v5068_v22  ;;  %v5064_v25 = vpop.f32.mrb[3].mxu0 }
 0x5b9   : >> { %v5070_v28 = vmul.f32 %v6448_v23, %v5068_v22 }
 0x5ba   : >> { %v5083_v30 = vadd.f32 %v5076_v3, %v5069_v15 }
 0x5bb   : >> { %v5084_v31 = vadd.f32 %v5080_v11, %v5070_v28 }
 0x5bc   : >> { %vm5085_vm0 = vcmp.ge.f32.partialorder %v5083_v30, 0.0  ;;  %v5087_v32 = vmul.f32 0.01, %v5083_v30 }
 0x5bd   : >> { %vm5086_vm8 = vcmp.ge.f32.partialorder %v5084_v31, 0.0  ;;  %v5088_v34 = vmul.f32 0.01, %v5084_v31 }
 0x5be   : >> { %v5089_v35 = vsel %vm5085_vm0, %v5083_v30, %v5087_v32 }
 0x5bf   : >> { %v5090_v36 = vsel %vm5086_vm8, %v5084_v31, %v5088_v34  ;;  %v5097_v37 = vmul.f32 %v5093_v29, %v5089_v35 }
 0x5c0   : >> { %v5098_v39 = vmul.f32 %v5095_v33, %v5090_v36 }
 0x5c1   : >> { %v5100_v40 = vsel %vm5099_vm9, %v5097_v37, 0.0 }
 0x5c2   : >> { %v5101_v41 = vsel %vm5099_vm9, %v5098_v39, 0.0 }
 0x5c3   : >> { %v5102_v42 = vadd.f32 %v5101_v41, %v5100_v40 }
 0x5c5   : >> { %5103 = vadd.xlane.f32.xlu0 %v5102_v42 }
 0x652   : >> { %v5104_v43 = vpop.xlane.xlu0 %5103 }
 0x653   : >> { %v5105_v44 = vsel %vm5099_vm9, %v5104_v43, 0.0 }
 0x654   : >> { %v5106_v46 = vrot.slane %v5105_v44, 4 }
 0x656   : >> { %v5107_v47 = vadd.f32 %v5106_v46, %v5105_v44 }
 0x658   : >> { %v5108_v38 = vrot.slane %v5107_v47, 2 }
 0x65a   : >> { %v5109_v48 = vadd.f32 %v5108_v38, %v5107_v47 }
 0x65c   : >> { %v5110_v45 = vrot.slane %v5109_v48, 1  ;;  %3077 = sbr.rel (!%p3075_p3) target bundleno = 992 (0x3e0), region = 153 }
 0x65e   : >> { %v5111_v49 = vadd.f32 %v5110_v45, %v5109_v48 }
 0x660   : >> { %v5112_v50 = vadd.f32 %v7110_v26, %v5111_v49  }
 0x662   : >> { %v9048_v26 = vmov %v5112_v50  ;;  %v5114_v9 = vmul.f32 (%p3075_p3), %v5113_v51, %v5112_v50 }
 0x664   : > { %v5116_v56 = vadd.f32 %v5115_v52, %v5114_v9 }
 0x666   : > { %5118 = vst.msk [vmem:[%s371_s26] sm:$0x1] %vm5117_vm10, %v5116_v56 }
 0x667 PF: > { %s23_s15 = sadd.s32 1, %s7098_s15  }
 0x668   : > { %p20_p4 = scmp.ge.s32.totalorder %s23_s15, 4  }
 0x66a   :  { %22 = sbr.rel (!%p20_p4) target bundleno = 4 (0x4), region = 164 }
 0x671   :  { %5136 = vsyncpa [#allocation6], 1 }
 0x672   :  { %5138 = vsyncpa [#allocation6 + $0x1], 1 }

</bundles_post_ra>
